<compile_context>
chip_gen: v7x
topology: tpu7x:2x2x1
jax: 0.10.0
libtpu: 0.0.40
codegen_flags: <defaults>
</compile_context>

<pallas_src>
import jax
import jax.numpy as jnp
from jax import lax
from jax.experimental import pallas as pl
from jax.experimental.pallas import tpu as pltpu


# Real / padded node counts per pyramid level.
_N = (50, 25, 12, 6, 3, 1)
_NP = tuple(-(-n // 8) * 8 for n in _N)          # (56, 32, 16, 8, 8, 8)

# Ordered parameter names == positional order of the pallas_call operands.
_PARAM_NAMES = (
    "A0", "A1", "A2", "A3", "A4",
    "g1_Wt", "g1_b", "g2_Wt", "g2_b", "g3_Wt", "g3_b",
    "g4_Wt", "g4_b", "g5_Wt", "g5_b",
    "fc1_Wt", "fc1_b", "fc2_Wt", "fc2_b",
    "g6_Wta", "g6_Wtb", "g6_b",
    "g7_Wta", "g7_Wtb", "g7_b",
    "g8_Wta", "g8_Wtb", "g8_b",
    "g9_Wta", "g9_Wtb", "g9_b",
    "g10_Wta", "g10_Wtb", "g10_b",
    "p1_W", "p1_b", "p2_W", "p2_b", "p3_W", "p3_b", "p4_W", "p4_b", "p5_W", "p5_b",
    "u6_W", "u6_b", "u7_W", "u7_b", "u8_W", "u8_b", "u9_W", "u9_b", "u10_W", "u10_b",
)


# ----------------------------------------------------------------------------
# Fused kernel: one grid step == one batch element, straight-line code.
# ----------------------------------------------------------------------------
def _graph_unet_kernel(x_ref, *refs):
    out_ref = refs[-1]
    p = dict(zip(_PARAM_NAMES, refs[:-1]))

    def laplacian(a_ref):
        # D[j] = (sum_i A[i, j] + 1e-5) ** -0.5 ;  L[i, j] = D[i] * A[i, j] * D[j]
        A = a_ref[...]
        d = lax.rsqrt(jnp.sum(A, axis=0, keepdims=True) + 1e-5)      # (1, N)
        return d.T * A * d

    # Each adjacency is used by an encoder and a decoder GraphConv: build once.
    L0 = laplacian(p["A0"])
    L1 = laplacian(p["A1"])
    L2 = laplacian(p["A2"])
    L3 = laplacian(p["A3"])
    L4 = laplacian(p["A4"])

    def gconv(L, X, wt, b, relu=True):
        Y = jnp.dot(L, X, preferred_element_type=jnp.float32)
        Z = jnp.dot(Y, wt[...], preferred_element_type=jnp.float32) + b[...]
        return jnp.maximum(Z, 0.0) if relu else Z

    def gconv_skip(L, Xe, Xd, wta, wtb, b, relu=True):
        # GraphConv(cat([Xe, Xd], feat)) without materializing the concat.
        Ye = jnp.dot(L, Xe, preferred_element_type=jnp.float32)
        Yd = jnp.dot(L, Xd, preferred_element_type=jnp.float32)
        Z = (jnp.dot(Ye, wta[...], preferred_element_type=jnp.float32)
             + jnp.dot(Yd, wtb[...], preferred_element_type=jnp.float32)
             + b[...])
        return jnp.maximum(Z, 0.0) if relu else Z

    def node_fc(w, b, X):
        # GraphPool / GraphUnpool: W (out_nodes, in_nodes) @ X + column bias.
        return jnp.dot(w[...], X, preferred_element_type=jnp.float32) + b[...]

    def feat_fc(wt, b, X, relu=True):
        Z = jnp.dot(X, wt[...], preferred_element_type=jnp.float32) + b[...]
        return jnp.maximum(Z, 0.0) if relu else Z

    x = x_ref[...].astype(jnp.float32)                               # (56, Fin)

    # ------------------------------ Encoder ------------------------------
    X0 = gconv(L0, x, p["g1_Wt"], p["g1_b"])                         # (56, 4)
    X1 = node_fc(p["p1_W"], p["p1_b"], X0)                           # (32, 4)
    X1 = gconv(L1, X1, p["g2_Wt"], p["g2_b"])                        # (32, 8)
    X2 = node_fc(p["p2_W"], p["p2_b"], X1)                           # (16, 8)
    X2 = gconv(L2, X2, p["g3_Wt"], p["g3_b"])                        # (16, 16)
    X3 = node_fc(p["p3_W"], p["p3_b"], X2)                           # (8, 16)
    X3 = gconv(L3, X3, p["g4_Wt"], p["g4_b"])                        # (8, 32)
    X4 = node_fc(p["p4_W"], p["p4_b"], X3)                           # (8, 32)
    X4 = gconv(L4, X4, p["g5_Wt"], p["g5_b"])                        # (8, 64)
    X5 = node_fc(p["p5_W"], p["p5_b"], X4)                           # (8, 64)

    # ----------------------------- Bottleneck ----------------------------
    g = feat_fc(p["fc1_Wt"], p["fc1_b"], X5)                         # (8, 20)
    g = feat_fc(p["fc2_Wt"], p["fc2_b"], g)                          # (8, 64)

    # ------------------------------ Decoder ------------------------------
    X6 = node_fc(p["u6_W"], p["u6_b"], g)                            # (8, 64)
    X6 = gconv_skip(L4, X4, X6, p["g6_Wta"], p["g6_Wtb"], p["g6_b"])       # (8, 32)
    X7 = node_fc(p["u7_W"], p["u7_b"], X6)                           # (8, 32)
    X7 = gconv_skip(L3, X3, X7, p["g7_Wta"], p["g7_Wtb"], p["g7_b"])       # (8, 16)
    X8 = node_fc(p["u8_W"], p["u8_b"], X7)                           # (16, 16)
    X8 = gconv_skip(L2, X2, X8, p["g8_Wta"], p["g8_Wtb"], p["g8_b"])       # (16, 8)
    X9 = node_fc(p["u9_W"], p["u9_b"], X8)                           # (32, 8)
    X9 = gconv_skip(L1, X1, X9, p["g9_Wta"], p["g9_Wtb"], p["g9_b"])       # (32, 4)
    X10 = node_fc(p["u10_W"], p["u10_b"], X9)                        # (56, 4)
    X10 = gconv_skip(L0, X0, X10, p["g10_Wta"], p["g10_Wtb"], p["g10_b"],
                     relu=False)                                     # (56, 3)

    out_ref[...] = X10.astype(out_ref.dtype)


# ----------------------------------------------------------------------------
# Wrapper: one pallas_call for the whole forward, grid over the batch.
# ----------------------------------------------------------------------------
def graph_unet_forward(X, params):
    """X: (B, 50, in_features)  ->  (B, 50, out_features)."""
    B, N, Fin = X.shape
    assert N == _N[0], f"expected {_N[0]} nodes, got {N}"
    NP0 = _NP[0]
    Fout = params["g10_b"].shape[1]

    # Zero-pad node axis to a sublane multiple; trivial row-major flatten so the
    # kernel sees lane-major (nodes, features) blocks of (56, Fin)/(56, Fout).
    Xp = jnp.zeros((B, NP0, Fin), jnp.float32).at[:, :N, :].set(X)
    Xf = Xp.reshape(B * NP0, Fin)

    param_list = [params[n] for n in _PARAM_NAMES]
    # Parameters: full-array blocks with a constant index map -> resident in
    # VMEM and shared by every grid step (no re-fetch across the batch axis).
    param_specs = [
        pl.BlockSpec(a.shape, lambda b, nd=a.ndim: (0,) * nd) for a in param_list
    ]

    out_flat = pl.pallas_call(
        _graph_unet_kernel,
        out_shape=jax.ShapeDtypeStruct((B * NP0, Fout), jnp.float32),
        grid=(B,),
        in_specs=[pl.BlockSpec((NP0, Fin), lambda b: (b, 0))] + param_specs,
        out_specs=pl.BlockSpec((NP0, Fout), lambda b: (b, 0)),
        compiler_params=pltpu.CompilerParams(
            dimension_semantics=("parallel",)),   # 2 TCs on v7x; serial elsewhere
    )(Xf, *param_list)

    return out_flat.reshape(B, NP0, Fout)[:, :N, :]


# ----------------------------------------------------------------------------
# Parameters in PyTorch layout (Linear: W (out, in), b (out,)), deterministic
# init matching nn.Linear defaults: U(-1/sqrt(fan_in), +1/sqrt(fan_in)).
# ----------------------------------------------------------------------------
def init_torch_params(key, in_features=2, out_features=3):
    keys = iter(jax.random.split(key, 64))

    def linear(in_f, out_f):
        kw, kb = jax.random.split(next(keys))
        bound = 1.0 / (in_f ** 0.5)
        W = jax.random.uniform(kw, (out_f, in_f), jnp.float32, -bound, bound)
        b = jax.random.uniform(kb, (out_f,), jnp.float32, -bound, bound)
        return W, b

    tp = {}
    # Adjacency parameters (identity at init).  A_5 exists in the PyTorch
    # module but is never used in forward, so it is omitted here.
    for i in range(5):
        tp[f"A{i}"] = jnp.eye(_N[i], dtype=jnp.float32)

    dims = {
        "g1": (in_features, 4), "g2": (4, 8), "g3": (8, 16), "g4": (16, 32),
        "g5": (32, 64), "fc1": (64, 20), "fc2": (20, 64),
        "g6": (128, 32), "g7": (64, 16), "g8": (32, 8), "g9": (16, 4),
        "g10": (8, out_features),
        "p1": (50, 25), "p2": (25, 12), "p3": (12, 6), "p4": (6, 3), "p5": (3, 1),
        "u6": (1, 3), "u7": (3, 6), "u8": (6, 12), "u9": (12, 25), "u10": (25, 50),
    }
    for name, (fi, fo) in dims.items():
        W, b = linear(fi, fo)
        tp[name + "_W"] = W
        tp[name + "_b"] = b
    return tp


def _zero_pad(a, shape):
    return jnp.pad(a, [(0, s - d) for s, d in zip(shape, a.shape)])


def pack_params(tp):
    """PyTorch-layout params -> padded / transposed / split kernel layout."""
    p = {}

    # Adjacencies, zero-padded: padded rows/cols of A are zero, so the padded
    # Laplacian rows/cols are zero too.
    for i in range(5):
        p[f"A{i}"] = _zero_pad(tp[f"A{i}"], (_NP[i], _NP[i]))

    # Encoder GraphConvs + bottleneck fcs: Wt = W.T (in, out), bias (1, out).
    for name in ("g1", "g2", "g3", "g4", "g5", "fc1", "fc2"):
        W, b = tp[name + "_W"], tp[name + "_b"]
        p[name + "_Wt"] = W.T
        p[name + "_b"] = b.reshape(1, -1)

    # Decoder GraphConvs: split Wt into skip (top) and upsampled (bottom)
    # halves so the kernel never materializes the concatenation.
    for name in ("g6", "g7", "g8", "g9", "g10"):
        W, b = tp[name + "_W"], tp[name + "_b"]
        Wt = W.T
        half = Wt.shape[0] // 2
        p[name + "_Wta"] = Wt[:half]
        p[name + "_Wtb"] = Wt[half:]
        p[name + "_b"] = b.reshape(1, -1)

    # GraphPool / GraphUnpool: weight (out_nodes, in_nodes), column bias,
    # zero-padded so padded node rows/cols contribute nothing.
    pool_levels = {
        "p1": (0, 1), "p2": (1, 2), "p3": (2, 3), "p4": (3, 4), "p5": (4, 5),
        "u6": (5, 4), "u7": (4, 3), "u8": (3, 2), "u9": (2, 1), "u10": (1, 0),
    }
    for name, (li, lo) in pool_levels.items():
        W, b = tp[name + "_W"], tp[name + "_b"]
        p[name + "_W"] = _zero_pad(W, (_NP[lo], _NP[li]))
        p[name + "_b"] = _zero_pad(b.reshape(-1, 1), (_NP[lo], 1))

    return p


# ----------------------------------------------------------------------------
# Pure-JAX reference (mirrors the PyTorch forward exactly, unpadded).
# ----------------------------------------------------------------------------
def reference_forward(X, tp):
    def laplacian(A):
        d = lax.rsqrt(jnp.sum(A, axis=0) + 1e-5)
        return d[:, None] * A * d[None, :]

    def gconv(name, X, A, relu=True):
        W, b = tp[name + "_W"], tp[name + "_b"]
        L = laplacian(A)
        Z = jnp.einsum("ij,bjf->bif", L, X) @ W.T + b
        return jnp.maximum(Z, 0.0) if relu else Z

    def node_fc(name, X):
        W, b = tp[name + "_W"], tp[name + "_b"]
        return jnp.einsum("oi,bif->bof", W, X) + b[None, :, None]

    def feat_fc(name, X):
        W, b = tp[name + "_W"], tp[name + "_b"]
        return jnp.maximum(X @ W.T + b, 0.0)

    A0, A1, A2, A3, A4 = (tp[f"A{i}"] for i in range(5))
    X0 = gconv("g1", X, A0)
    X1 = node_fc("p1", X0)
    X1 = gconv("g2", X1, A1)
    X2 = node_fc("p2", X1)
    X2 = gconv("g3", X2, A2)
    X3 = node_fc("p3", X2)
    X3 = gconv("g4", X3, A3)
    X4 = node_fc("p4", X3)
    X4 = gconv("g5", X4, A4)
    X5 = node_fc("p5", X4)
    g = feat_fc("fc1", X5)
    g = feat_fc("fc2", g)
    X6 = node_fc("u6", g)
    X6 = gconv("g6", jnp.concatenate([X4, X6], axis=2), A4)
    X7 = node_fc("u7", X6)
    X7 = gconv("g7", jnp.concatenate([X3, X7], axis=2), A3)
    X8 = node_fc("u8", X7)
    X8 = gconv("g8", jnp.concatenate([X2, X8], axis=2), A2)
    X9 = node_fc("u9", X8)
    X9 = gconv("g9", jnp.concatenate([X1, X9], axis=2), A1)
    X10 = node_fc("u10", X9)
    X10 = gconv("g10", jnp.concatenate([X0, X10], axis=2), A0, relu=False)
    return X10


if __name__ == "__main__":
    key = jax.random.PRNGKey(0)
    kp, kx = jax.random.split(key)

    tp = init_torch_params(kp, in_features=2, out_features=3)
    params = pack_params(tp)

    B = 2
    X = jax.random.normal(kx, (B, 50, 2), dtype=jnp.float32)  # (batch, 50 nodes, 2 feats)

    fwd = jax.jit(graph_unet_forward)
    out = jax.block_until_ready(fwd(X, params))

    assert out.shape == (B, 50, 3), out.shape
    assert bool(jnp.all(jnp.isfinite(out)))

    # Numerical check against the pure-JAX reference of the PyTorch forward.
    ref = jax.block_until_ready(jax.jit(reference_forward)(X, tp))
    err = float(jnp.max(jnp.abs(out - ref)))
    tol = 5e-2 * (1.0 + float(jnp.max(jnp.abs(ref))))
    assert err < tol, f"max abs err {err} (tol {tol})"

    print("KERNEL_OK")
</pallas_src>

<mosaic_0001>
module attributes {stable_mosaic.version = 11 : i64} {
  func.func @_graph_unet_kernel(%arg0: i32, %arg1: memref<56x2xf32, #tpu.memory_space<vmem>>, %arg2: memref<56x56xf32, #tpu.memory_space<vmem>>, %arg3: memref<32x32xf32, #tpu.memory_space<vmem>>, %arg4: memref<16x16xf32, #tpu.memory_space<vmem>>, %arg5: memref<8x8xf32, #tpu.memory_space<vmem>>, %arg6: memref<8x8xf32, #tpu.memory_space<vmem>>, %arg7: memref<2x4xf32, #tpu.memory_space<vmem>>, %arg8: memref<1x4xf32, #tpu.memory_space<vmem>>, %arg9: memref<4x8xf32, #tpu.memory_space<vmem>>, %arg10: memref<1x8xf32, #tpu.memory_space<vmem>>, %arg11: memref<8x16xf32, #tpu.memory_space<vmem>>, %arg12: memref<1x16xf32, #tpu.memory_space<vmem>>, %arg13: memref<16x32xf32, #tpu.memory_space<vmem>>, %arg14: memref<1x32xf32, #tpu.memory_space<vmem>>, %arg15: memref<32x64xf32, #tpu.memory_space<vmem>>, %arg16: memref<1x64xf32, #tpu.memory_space<vmem>>, %arg17: memref<64x20xf32, #tpu.memory_space<vmem>>, %arg18: memref<1x20xf32, #tpu.memory_space<vmem>>, %arg19: memref<20x64xf32, #tpu.memory_space<vmem>>, %arg20: memref<1x64xf32, #tpu.memory_space<vmem>>, %arg21: memref<64x32xf32, #tpu.memory_space<vmem>>, %arg22: memref<64x32xf32, #tpu.memory_space<vmem>>, %arg23: memref<1x32xf32, #tpu.memory_space<vmem>>, %arg24: memref<32x16xf32, #tpu.memory_space<vmem>>, %arg25: memref<32x16xf32, #tpu.memory_space<vmem>>, %arg26: memref<1x16xf32, #tpu.memory_space<vmem>>, %arg27: memref<16x8xf32, #tpu.memory_space<vmem>>, %arg28: memref<16x8xf32, #tpu.memory_space<vmem>>, %arg29: memref<1x8xf32, #tpu.memory_space<vmem>>, %arg30: memref<8x4xf32, #tpu.memory_space<vmem>>, %arg31: memref<8x4xf32, #tpu.memory_space<vmem>>, %arg32: memref<1x4xf32, #tpu.memory_space<vmem>>, %arg33: memref<4x3xf32, #tpu.memory_space<vmem>>, %arg34: memref<4x3xf32, #tpu.memory_space<vmem>>, %arg35: memref<1x3xf32, #tpu.memory_space<vmem>>, %arg36: memref<32x56xf32, #tpu.memory_space<vmem>>, %arg37: memref<32x1xf32, #tpu.memory_space<vmem>>, %arg38: memref<16x32xf32, #tpu.memory_space<vmem>>, %arg39: memref<16x1xf32, #tpu.memory_space<vmem>>, %arg40: memref<8x16xf32, #tpu.memory_space<vmem>>, %arg41: memref<8x1xf32, #tpu.memory_space<vmem>>, %arg42: memref<8x8xf32, #tpu.memory_space<vmem>>, %arg43: memref<8x1xf32, #tpu.memory_space<vmem>>, %arg44: memref<8x8xf32, #tpu.memory_space<vmem>>, %arg45: memref<8x1xf32, #tpu.memory_space<vmem>>, %arg46: memref<8x8xf32, #tpu.memory_space<vmem>>, %arg47: memref<8x1xf32, #tpu.memory_space<vmem>>, %arg48: memref<8x8xf32, #tpu.memory_space<vmem>>, %arg49: memref<8x1xf32, #tpu.memory_space<vmem>>, %arg50: memref<16x8xf32, #tpu.memory_space<vmem>>, %arg51: memref<16x1xf32, #tpu.memory_space<vmem>>, %arg52: memref<32x16xf32, #tpu.memory_space<vmem>>, %arg53: memref<32x1xf32, #tpu.memory_space<vmem>>, %arg54: memref<56x32xf32, #tpu.memory_space<vmem>>, %arg55: memref<56x1xf32, #tpu.memory_space<vmem>>, %arg56: memref<56x3xf32, #tpu.memory_space<vmem>>) attributes {dimension_semantics = [#tpu.dimension_semantics<parallel>], iteration_bounds = array<i64: 2>, scalar_prefetch = 0 : i64, scratch_operands = 0 : i64, tpu.core_type = #tpu.core_type<tc>, window_params = [{transform_indices = @transform_0, window_bounds = array<i64: 56, 2>}, {pipeline_mode = #tpu.pipeline_mode<synchronous>, transform_indices = @transform_1, window_bounds = array<i64: 56, 56>}, {pipeline_mode = #tpu.pipeline_mode<synchronous>, transform_indices = @transform_2, window_bounds = array<i64: 32, 32>}, {pipeline_mode = #tpu.pipeline_mode<synchronous>, transform_indices = @transform_3, window_bounds = array<i64: 16, 16>}, {pipeline_mode = #tpu.pipeline_mode<synchronous>, transform_indices = @transform_4, window_bounds = array<i64: 8, 8>}, {pipeline_mode = #tpu.pipeline_mode<synchronous>, transform_indices = @transform_5, window_bounds = array<i64: 8, 8>}, {pipeline_mode = #tpu.pipeline_mode<synchronous>, transform_indices = @transform_6, window_bounds = array<i64: 2, 4>}, {pipeline_mode = #tpu.pipeline_mode<synchronous>, transform_indices = @transform_7, window_bounds = array<i64: 1, 4>}, {pipeline_mode = #tpu.pipeline_mode<synchronous>, transform_indices = @transform_8, window_bounds = array<i64: 4, 8>}, {pipeline_mode = #tpu.pipeline_mode<synchronous>, transform_indices = @transform_9, window_bounds = array<i64: 1, 8>}, {pipeline_mode = #tpu.pipeline_mode<synchronous>, transform_indices = @transform_10, window_bounds = array<i64: 8, 16>}, {pipeline_mode = #tpu.pipeline_mode<synchronous>, transform_indices = @transform_11, window_bounds = array<i64: 1, 16>}, {pipeline_mode = #tpu.pipeline_mode<synchronous>, transform_indices = @transform_12, window_bounds = array<i64: 16, 32>}, {pipeline_mode = #tpu.pipeline_mode<synchronous>, transform_indices = @transform_13, window_bounds = array<i64: 1, 32>}, {pipeline_mode = #tpu.pipeline_mode<synchronous>, transform_indices = @transform_14, window_bounds = array<i64: 32, 64>}, {pipeline_mode = #tpu.pipeline_mode<synchronous>, transform_indices = @transform_15, window_bounds = array<i64: 1, 64>}, {pipeline_mode = #tpu.pipeline_mode<synchronous>, transform_indices = @transform_16, window_bounds = array<i64: 64, 20>}, {pipeline_mode = #tpu.pipeline_mode<synchronous>, transform_indices = @transform_17, window_bounds = array<i64: 1, 20>}, {pipeline_mode = #tpu.pipeline_mode<synchronous>, transform_indices = @transform_18, window_bounds = array<i64: 20, 64>}, {pipeline_mode = #tpu.pipeline_mode<synchronous>, transform_indices = @transform_19, window_bounds = array<i64: 1, 64>}, {pipeline_mode = #tpu.pipeline_mode<synchronous>, transform_indices = @transform_20, window_bounds = array<i64: 64, 32>}, {pipeline_mode = #tpu.pipeline_mode<synchronous>, transform_indices = @transform_21, window_bounds = array<i64: 64, 32>}, {pipeline_mode = #tpu.pipeline_mode<synchronous>, transform_indices = @transform_22, window_bounds = array<i64: 1, 32>}, {pipeline_mode = #tpu.pipeline_mode<synchronous>, transform_indices = @transform_23, window_bounds = array<i64: 32, 16>}, {pipeline_mode = #tpu.pipeline_mode<synchronous>, transform_indices = @transform_24, window_bounds = array<i64: 32, 16>}, {pipeline_mode = #tpu.pipeline_mode<synchronous>, transform_indices = @transform_25, window_bounds = array<i64: 1, 16>}, {pipeline_mode = #tpu.pipeline_mode<synchronous>, transform_indices = @transform_26, window_bounds = array<i64: 16, 8>}, {pipeline_mode = #tpu.pipeline_mode<synchronous>, transform_indices = @transform_27, window_bounds = array<i64: 16, 8>}, {pipeline_mode = #tpu.pipeline_mode<synchronous>, transform_indices = @transform_28, window_bounds = array<i64: 1, 8>}, {pipeline_mode = #tpu.pipeline_mode<synchronous>, transform_indices = @transform_29, window_bounds = array<i64: 8, 4>}, {pipeline_mode = #tpu.pipeline_mode<synchronous>, transform_indices = @transform_30, window_bounds = array<i64: 8, 4>}, {pipeline_mode = #tpu.pipeline_mode<synchronous>, transform_indices = @transform_31, window_bounds = array<i64: 1, 4>}, {pipeline_mode = #tpu.pipeline_mode<synchronous>, transform_indices = @transform_32, window_bounds = array<i64: 4, 3>}, {pipeline_mode = #tpu.pipeline_mode<synchronous>, transform_indices = @transform_33, window_bounds = array<i64: 4, 3>}, {pipeline_mode = #tpu.pipeline_mode<synchronous>, transform_indices = @transform_34, window_bounds = array<i64: 1, 3>}, {pipeline_mode = #tpu.pipeline_mode<synchronous>, transform_indices = @transform_35, window_bounds = array<i64: 32, 56>}, {pipeline_mode = #tpu.pipeline_mode<synchronous>, transform_indices = @transform_36, window_bounds = array<i64: 32, 1>}, {pipeline_mode = #tpu.pipeline_mode<synchronous>, transform_indices = @transform_37, window_bounds = array<i64: 16, 32>}, {pipeline_mode = #tpu.pipeline_mode<synchronous>, transform_indices = @transform_38, window_bounds = array<i64: 16, 1>}, {pipeline_mode = #tpu.pipeline_mode<synchronous>, transform_indices = @transform_39, window_bounds = array<i64: 8, 16>}, {pipeline_mode = #tpu.pipeline_mode<synchronous>, transform_indices = @transform_40, window_bounds = array<i64: 8, 1>}, {pipeline_mode = #tpu.pipeline_mode<synchronous>, transform_indices = @transform_41, window_bounds = array<i64: 8, 8>}, {pipeline_mode = #tpu.pipeline_mode<synchronous>, transform_indices = @transform_42, window_bounds = array<i64: 8, 1>}, {pipeline_mode = #tpu.pipeline_mode<synchronous>, transform_indices = @transform_43, window_bounds = array<i64: 8, 8>}, {pipeline_mode = #tpu.pipeline_mode<synchronous>, transform_indices = @transform_44, window_bounds = array<i64: 8, 1>}, {pipeline_mode = #tpu.pipeline_mode<synchronous>, transform_indices = @transform_45, window_bounds = array<i64: 8, 8>}, {pipeline_mode = #tpu.pipeline_mode<synchronous>, transform_indices = @transform_46, window_bounds = array<i64: 8, 1>}, {pipeline_mode = #tpu.pipeline_mode<synchronous>, transform_indices = @transform_47, window_bounds = array<i64: 8, 8>}, {pipeline_mode = #tpu.pipeline_mode<synchronous>, transform_indices = @transform_48, window_bounds = array<i64: 8, 1>}, {pipeline_mode = #tpu.pipeline_mode<synchronous>, transform_indices = @transform_49, window_bounds = array<i64: 16, 8>}, {pipeline_mode = #tpu.pipeline_mode<synchronous>, transform_indices = @transform_50, window_bounds = array<i64: 16, 1>}, {pipeline_mode = #tpu.pipeline_mode<synchronous>, transform_indices = @transform_51, window_bounds = array<i64: 32, 16>}, {pipeline_mode = #tpu.pipeline_mode<synchronous>, transform_indices = @transform_52, window_bounds = array<i64: 32, 1>}, {pipeline_mode = #tpu.pipeline_mode<synchronous>, transform_indices = @transform_53, window_bounds = array<i64: 56, 32>}, {pipeline_mode = #tpu.pipeline_mode<synchronous>, transform_indices = @transform_54, window_bounds = array<i64: 56, 1>}, {transform_indices = @transform_55, window_bounds = array<i64: 56, 3>}]} {
    %c0 = arith.constant 0 : index
    %c0_0 = arith.constant 0 : index
    %0 = vector.load %arg2[%c0, %c0_0] : memref<56x56xf32, #tpu.memory_space<vmem>>, vector<56x56xf32>
    %cst = arith.constant dense<0.000000e+00> : vector<56xf32>
    %1 = vector.multi_reduction <add>, %0, %cst [0] : vector<56x56xf32> to vector<56xf32>
    %2 = vector.shape_cast %1 : vector<56xf32> to vector<1x56xf32>
    %cst_1 = arith.constant 9.99999974E-6 : f32
    %3 = vector.broadcast %cst_1 : f32 to vector<1x56xf32>
    %4 = arith.addf %2, %3 : vector<1x56xf32>
    %5 = math.rsqrt %4 : vector<1x56xf32>
    %6 = tpu.transpose %5, [1, 0] : vector<1x56xf32> -> vector<56x1xf32>
    %7 = vector.broadcast %6 : vector<56x1xf32> to vector<56x56xf32>
    %8 = arith.mulf %7, %0 : vector<56x56xf32>
    %9 = vector.broadcast %5 : vector<1x56xf32> to vector<56x56xf32>
    %10 = arith.mulf %8, %9 : vector<56x56xf32>
    %c0_2 = arith.constant 0 : index
    %c0_3 = arith.constant 0 : index
    %11 = vector.load %arg3[%c0_2, %c0_3] : memref<32x32xf32, #tpu.memory_space<vmem>>, vector<32x32xf32>
    %cst_4 = arith.constant dense<0.000000e+00> : vector<32xf32>
    %12 = vector.multi_reduction <add>, %11, %cst_4 [0] : vector<32x32xf32> to vector<32xf32>
    %13 = vector.shape_cast %12 : vector<32xf32> to vector<1x32xf32>
    %cst_5 = arith.constant 9.99999974E-6 : f32
    %14 = vector.broadcast %cst_5 : f32 to vector<1x32xf32>
    %15 = arith.addf %13, %14 : vector<1x32xf32>
    %16 = math.rsqrt %15 : vector<1x32xf32>
    %17 = tpu.transpose %16, [1, 0] : vector<1x32xf32> -> vector<32x1xf32>
    %18 = vector.broadcast %17 : vector<32x1xf32> to vector<32x32xf32>
    %19 = arith.mulf %18, %11 : vector<32x32xf32>
    %20 = vector.broadcast %16 : vector<1x32xf32> to vector<32x32xf32>
    %21 = arith.mulf %19, %20 : vector<32x32xf32>
    %c0_6 = arith.constant 0 : index
    %c0_7 = arith.constant 0 : index
    %22 = vector.load %arg4[%c0_6, %c0_7] : memref<16x16xf32, #tpu.memory_space<vmem>>, vector<16x16xf32>
    %cst_8 = arith.constant dense<0.000000e+00> : vector<16xf32>
    %23 = vector.multi_reduction <add>, %22, %cst_8 [0] : vector<16x16xf32> to vector<16xf32>
    %24 = vector.shape_cast %23 : vector<16xf32> to vector<1x16xf32>
    %cst_9 = arith.constant 9.99999974E-6 : f32
    %25 = vector.broadcast %cst_9 : f32 to vector<1x16xf32>
    %26 = arith.addf %24, %25 : vector<1x16xf32>
    %27 = math.rsqrt %26 : vector<1x16xf32>
    %28 = tpu.transpose %27, [1, 0] : vector<1x16xf32> -> vector<16x1xf32>
    %29 = vector.broadcast %28 : vector<16x1xf32> to vector<16x16xf32>
    %30 = arith.mulf %29, %22 : vector<16x16xf32>
    %31 = vector.broadcast %27 : vector<1x16xf32> to vector<16x16xf32>
    %32 = arith.mulf %30, %31 : vector<16x16xf32>
    %c0_10 = arith.constant 0 : index
    %c0_11 = arith.constant 0 : index
    %33 = vector.load %arg5[%c0_10, %c0_11] : memref<8x8xf32, #tpu.memory_space<vmem>>, vector<8x8xf32>
    %cst_12 = arith.constant dense<0.000000e+00> : vector<8xf32>
    %34 = vector.multi_reduction <add>, %33, %cst_12 [0] : vector<8x8xf32> to vector<8xf32>
    %35 = vector.shape_cast %34 : vector<8xf32> to vector<1x8xf32>
    %cst_13 = arith.constant 9.99999974E-6 : f32
    %36 = vector.broadcast %cst_13 : f32 to vector<1x8xf32>
    %37 = arith.addf %35, %36 : vector<1x8xf32>
    %38 = math.rsqrt %37 : vector<1x8xf32>
    %39 = tpu.transpose %38, [1, 0] : vector<1x8xf32> -> vector<8x1xf32>
    %40 = vector.broadcast %39 : vector<8x1xf32> to vector<8x8xf32>
    %41 = arith.mulf %40, %33 : vector<8x8xf32>
    %42 = vector.broadcast %38 : vector<1x8xf32> to vector<8x8xf32>
    %43 = arith.mulf %41, %42 : vector<8x8xf32>
    %c0_14 = arith.constant 0 : index
    %c0_15 = arith.constant 0 : index
    %44 = vector.load %arg6[%c0_14, %c0_15] : memref<8x8xf32, #tpu.memory_space<vmem>>, vector<8x8xf32>
    %cst_16 = arith.constant dense<0.000000e+00> : vector<8xf32>
    %45 = vector.multi_reduction <add>, %44, %cst_16 [0] : vector<8x8xf32> to vector<8xf32>
    %46 = vector.shape_cast %45 : vector<8xf32> to vector<1x8xf32>
    %cst_17 = arith.constant 9.99999974E-6 : f32
    %47 = vector.broadcast %cst_17 : f32 to vector<1x8xf32>
    %48 = arith.addf %46, %47 : vector<1x8xf32>
    %49 = math.rsqrt %48 : vector<1x8xf32>
    %50 = tpu.transpose %49, [1, 0] : vector<1x8xf32> -> vector<8x1xf32>
    %51 = vector.broadcast %50 : vector<8x1xf32> to vector<8x8xf32>
    %52 = arith.mulf %51, %44 : vector<8x8xf32>
    %53 = vector.broadcast %49 : vector<1x8xf32> to vector<8x8xf32>
    %54 = arith.mulf %52, %53 : vector<8x8xf32>
    %c0_18 = arith.constant 0 : index
    %c0_19 = arith.constant 0 : index
    %55 = vector.load %arg1[%c0_18, %c0_19] : memref<56x2xf32, #tpu.memory_space<vmem>>, vector<56x2xf32>
    %cst_20 = arith.constant dense<0.000000e+00> : vector<56x2xf32>
    %56 = tpu.matmul %10, %55, %cst_20 {dimension_numbers = #tpu.dot_dimension_numbers<[1], [0], [0], [1], [0, 0, 1, 1], [], []>} : vector<56x56xf32>, vector<56x2xf32>, vector<56x2xf32> -> vector<56x2xf32>
    %c0_21 = arith.constant 0 : index
    %c0_22 = arith.constant 0 : index
    %57 = vector.load %arg7[%c0_21, %c0_22] : memref<2x4xf32, #tpu.memory_space<vmem>>, vector<2x4xf32>
    %cst_23 = arith.constant dense<0.000000e+00> : vector<56x4xf32>
    %58 = tpu.matmul %56, %57, %cst_23 {dimension_numbers = #tpu.dot_dimension_numbers<[1], [0], [0], [1], [0, 0, 1, 1], [], []>} : vector<56x2xf32>, vector<2x4xf32>, vector<56x4xf32> -> vector<56x4xf32>
    %c0_24 = arith.constant 0 : index
    %c0_25 = arith.constant 0 : index
    %59 = vector.load %arg8[%c0_24, %c0_25] : memref<1x4xf32, #tpu.memory_space<vmem>>, vector<1x4xf32>
    %60 = vector.broadcast %59 : vector<1x4xf32> to vector<56x4xf32>
    %61 = arith.addf %58, %60 : vector<56x4xf32>
    %cst_26 = arith.constant 0.000000e+00 : f32
    %62 = vector.broadcast %cst_26 : f32 to vector<56x4xf32>
    %63 = arith.maximumf %61, %62 : vector<56x4xf32>
    %c0_27 = arith.constant 0 : index
    %c0_28 = arith.constant 0 : index
    %64 = vector.load %arg36[%c0_27, %c0_28] : memref<32x56xf32, #tpu.memory_space<vmem>>, vector<32x56xf32>
    %cst_29 = arith.constant dense<0.000000e+00> : vector<32x4xf32>
    %65 = tpu.matmul %64, %63, %cst_29 {dimension_numbers = #tpu.dot_dimension_numbers<[1], [0], [0], [1], [0, 0, 1, 1], [], []>} : vector<32x56xf32>, vector<56x4xf32>, vector<32x4xf32> -> vector<32x4xf32>
    %c0_30 = arith.constant 0 : index
    %c0_31 = arith.constant 0 : index
    %66 = vector.load %arg37[%c0_30, %c0_31] : memref<32x1xf32, #tpu.memory_space<vmem>>, vector<32x1xf32>
    %67 = vector.broadcast %66 : vector<32x1xf32> to vector<32x4xf32>
    %68 = arith.addf %65, %67 : vector<32x4xf32>
    %cst_32 = arith.constant dense<0.000000e+00> : vector<32x4xf32>
    %69 = tpu.matmul %21, %68, %cst_32 {dimension_numbers = #tpu.dot_dimension_numbers<[1], [0], [0], [1], [0, 0, 1, 1], [], []>} : vector<32x32xf32>, vector<32x4xf32>, vector<32x4xf32> -> vector<32x4xf32>
    %c0_33 = arith.constant 0 : index
    %c0_34 = arith.constant 0 : index
    %70 = vector.load %arg9[%c0_33, %c0_34] : memref<4x8xf32, #tpu.memory_space<vmem>>, vector<4x8xf32>
    %cst_35 = arith.constant dense<0.000000e+00> : vector<32x8xf32>
    %71 = tpu.matmul %69, %70, %cst_35 {dimension_numbers = #tpu.dot_dimension_numbers<[1], [0], [0], [1], [0, 0, 1, 1], [], []>} : vector<32x4xf32>, vector<4x8xf32>, vector<32x8xf32> -> vector<32x8xf32>
    %c0_36 = arith.constant 0 : index
    %c0_37 = arith.constant 0 : index
    %72 = vector.load %arg10[%c0_36, %c0_37] : memref<1x8xf32, #tpu.memory_space<vmem>>, vector<1x8xf32>
    %73 = vector.broadcast %72 : vector<1x8xf32> to vector<32x8xf32>
    %74 = arith.addf %71, %73 : vector<32x8xf32>
    %cst_38 = arith.constant 0.000000e+00 : f32
    %75 = vector.broadcast %cst_38 : f32 to vector<32x8xf32>
    %76 = arith.maximumf %74, %75 : vector<32x8xf32>
    %c0_39 = arith.constant 0 : index
    %c0_40 = arith.constant 0 : index
    %77 = vector.load %arg38[%c0_39, %c0_40] : memref<16x32xf32, #tpu.memory_space<vmem>>, vector<16x32xf32>
    %cst_41 = arith.constant dense<0.000000e+00> : vector<16x8xf32>
    %78 = tpu.matmul %77, %76, %cst_41 {dimension_numbers = #tpu.dot_dimension_numbers<[1], [0], [0], [1], [0, 0, 1, 1], [], []>} : vector<16x32xf32>, vector<32x8xf32>, vector<16x8xf32> -> vector<16x8xf32>
    %c0_42 = arith.constant 0 : index
    %c0_43 = arith.constant 0 : index
    %79 = vector.load %arg39[%c0_42, %c0_43] : memref<16x1xf32, #tpu.memory_space<vmem>>, vector<16x1xf32>
    %80 = vector.broadcast %79 : vector<16x1xf32> to vector<16x8xf32>
    %81 = arith.addf %78, %80 : vector<16x8xf32>
    %cst_44 = arith.constant dense<0.000000e+00> : vector<16x8xf32>
    %82 = tpu.matmul %32, %81, %cst_44 {dimension_numbers = #tpu.dot_dimension_numbers<[1], [0], [0], [1], [0, 0, 1, 1], [], []>} : vector<16x16xf32>, vector<16x8xf32>, vector<16x8xf32> -> vector<16x8xf32>
    %c0_45 = arith.constant 0 : index
    %c0_46 = arith.constant 0 : index
    %83 = vector.load %arg11[%c0_45, %c0_46] : memref<8x16xf32, #tpu.memory_space<vmem>>, vector<8x16xf32>
    %cst_47 = arith.constant dense<0.000000e+00> : vector<16x16xf32>
    %84 = tpu.matmul %82, %83, %cst_47 {dimension_numbers = #tpu.dot_dimension_numbers<[1], [0], [0], [1], [0, 0, 1, 1], [], []>} : vector<16x8xf32>, vector<8x16xf32>, vector<16x16xf32> -> vector<16x16xf32>
    %c0_48 = arith.constant 0 : index
    %c0_49 = arith.constant 0 : index
    %85 = vector.load %arg12[%c0_48, %c0_49] : memref<1x16xf32, #tpu.memory_space<vmem>>, vector<1x16xf32>
    %86 = vector.broadcast %85 : vector<1x16xf32> to vector<16x16xf32>
    %87 = arith.addf %84, %86 : vector<16x16xf32>
    %cst_50 = arith.constant 0.000000e+00 : f32
    %88 = vector.broadcast %cst_50 : f32 to vector<16x16xf32>
    %89 = arith.maximumf %87, %88 : vector<16x16xf32>
    %c0_51 = arith.constant 0 : index
    %c0_52 = arith.constant 0 : index
    %90 = vector.load %arg40[%c0_51, %c0_52] : memref<8x16xf32, #tpu.memory_space<vmem>>, vector<8x16xf32>
    %cst_53 = arith.constant dense<0.000000e+00> : vector<8x16xf32>
    %91 = tpu.matmul %90, %89, %cst_53 {dimension_numbers = #tpu.dot_dimension_numbers<[1], [0], [0], [1], [0, 0, 1, 1], [], []>} : vector<8x16xf32>, vector<16x16xf32>, vector<8x16xf32> -> vector<8x16xf32>
    %c0_54 = arith.constant 0 : index
    %c0_55 = arith.constant 0 : index
    %92 = vector.load %arg41[%c0_54, %c0_55] : memref<8x1xf32, #tpu.memory_space<vmem>>, vector<8x1xf32>
    %93 = vector.broadcast %92 : vector<8x1xf32> to vector<8x16xf32>
    %94 = arith.addf %91, %93 : vector<8x16xf32>
    %cst_56 = arith.constant dense<0.000000e+00> : vector<8x16xf32>
    %95 = tpu.matmul %43, %94, %cst_56 {dimension_numbers = #tpu.dot_dimension_numbers<[1], [0], [0], [1], [0, 0, 1, 1], [], []>} : vector<8x8xf32>, vector<8x16xf32>, vector<8x16xf32> -> vector<8x16xf32>
    %c0_57 = arith.constant 0 : index
    %c0_58 = arith.constant 0 : index
    %96 = vector.load %arg13[%c0_57, %c0_58] : memref<16x32xf32, #tpu.memory_space<vmem>>, vector<16x32xf32>
    %cst_59 = arith.constant dense<0.000000e+00> : vector<8x32xf32>
    %97 = tpu.matmul %95, %96, %cst_59 {dimension_numbers = #tpu.dot_dimension_numbers<[1], [0], [0], [1], [0, 0, 1, 1], [], []>} : vector<8x16xf32>, vector<16x32xf32>, vector<8x32xf32> -> vector<8x32xf32>
    %c0_60 = arith.constant 0 : index
    %c0_61 = arith.constant 0 : index
    %98 = vector.load %arg14[%c0_60, %c0_61] : memref<1x32xf32, #tpu.memory_space<vmem>>, vector<1x32xf32>
    %99 = vector.broadcast %98 : vector<1x32xf32> to vector<8x32xf32>
    %100 = arith.addf %97, %99 : vector<8x32xf32>
    %cst_62 = arith.constant 0.000000e+00 : f32
    %101 = vector.broadcast %cst_62 : f32 to vector<8x32xf32>
    %102 = arith.maximumf %100, %101 : vector<8x32xf32>
    %c0_63 = arith.constant 0 : index
    %c0_64 = arith.constant 0 : index
    %103 = vector.load %arg42[%c0_63, %c0_64] : memref<8x8xf32, #tpu.memory_space<vmem>>, vector<8x8xf32>
    %cst_65 = arith.constant dense<0.000000e+00> : vector<8x32xf32>
    %104 = tpu.matmul %103, %102, %cst_65 {dimension_numbers = #tpu.dot_dimension_numbers<[1], [0], [0], [1], [0, 0, 1, 1], [], []>} : vector<8x8xf32>, vector<8x32xf32>, vector<8x32xf32> -> vector<8x32xf32>
    %c0_66 = arith.constant 0 : index
    %c0_67 = arith.constant 0 : index
    %105 = vector.load %arg43[%c0_66, %c0_67] : memref<8x1xf32, #tpu.memory_space<vmem>>, vector<8x1xf32>
    %106 = vector.broadcast %105 : vector<8x1xf32> to vector<8x32xf32>
    %107 = arith.addf %104, %106 : vector<8x32xf32>
    %cst_68 = arith.constant dense<0.000000e+00> : vector<8x32xf32>
    %108 = tpu.matmul %54, %107, %cst_68 {dimension_numbers = #tpu.dot_dimension_numbers<[1], [0], [0], [1], [0, 0, 1, 1], [], []>} : vector<8x8xf32>, vector<8x32xf32>, vector<8x32xf32> -> vector<8x32xf32>
    %c0_69 = arith.constant 0 : index
    %c0_70 = arith.constant 0 : index
    %109 = vector.load %arg15[%c0_69, %c0_70] : memref<32x64xf32, #tpu.memory_space<vmem>>, vector<32x64xf32>
    %cst_71 = arith.constant dense<0.000000e+00> : vector<8x64xf32>
    %110 = tpu.matmul %108, %109, %cst_71 {dimension_numbers = #tpu.dot_dimension_numbers<[1], [0], [0], [1], [0, 0, 1, 1], [], []>} : vector<8x32xf32>, vector<32x64xf32>, vector<8x64xf32> -> vector<8x64xf32>
    %c0_72 = arith.constant 0 : index
    %c0_73 = arith.constant 0 : index
    %111 = vector.load %arg16[%c0_72, %c0_73] : memref<1x64xf32, #tpu.memory_space<vmem>>, vector<1x64xf32>
    %112 = vector.broadcast %111 : vector<1x64xf32> to vector<8x64xf32>
    %113 = arith.addf %110, %112 : vector<8x64xf32>
    %cst_74 = arith.constant 0.000000e+00 : f32
    %114 = vector.broadcast %cst_74 : f32 to vector<8x64xf32>
    %115 = arith.maximumf %113, %114 : vector<8x64xf32>
    %c0_75 = arith.constant 0 : index
    %c0_76 = arith.constant 0 : index
    %116 = vector.load %arg44[%c0_75, %c0_76] : memref<8x8xf32, #tpu.memory_space<vmem>>, vector<8x8xf32>
    %cst_77 = arith.constant dense<0.000000e+00> : vector<8x64xf32>
    %117 = tpu.matmul %116, %115, %cst_77 {dimension_numbers = #tpu.dot_dimension_numbers<[1], [0], [0], [1], [0, 0, 1, 1], [], []>} : vector<8x8xf32>, vector<8x64xf32>, vector<8x64xf32> -> vector<8x64xf32>
    %c0_78 = arith.constant 0 : index
    %c0_79 = arith.constant 0 : index
    %118 = vector.load %arg45[%c0_78, %c0_79] : memref<8x1xf32, #tpu.memory_space<vmem>>, vector<8x1xf32>
    %119 = vector.broadcast %118 : vector<8x1xf32> to vector<8x64xf32>
    %120 = arith.addf %117, %119 : vector<8x64xf32>
    %c0_80 = arith.constant 0 : index
    %c0_81 = arith.constant 0 : index
    %121 = vector.load %arg17[%c0_80, %c0_81] : memref<64x20xf32, #tpu.memory_space<vmem>>, vector<64x20xf32>
    %cst_82 = arith.constant dense<0.000000e+00> : vector<8x20xf32>
    %122 = tpu.matmul %120, %121, %cst_82 {dimension_numbers = #tpu.dot_dimension_numbers<[1], [0], [0], [1], [0, 0, 1, 1], [], []>} : vector<8x64xf32>, vector<64x20xf32>, vector<8x20xf32> -> vector<8x20xf32>
    %c0_83 = arith.constant 0 : index
    %c0_84 = arith.constant 0 : index
    %123 = vector.load %arg18[%c0_83, %c0_84] : memref<1x20xf32, #tpu.memory_space<vmem>>, vector<1x20xf32>
    %124 = vector.broadcast %123 : vector<1x20xf32> to vector<8x20xf32>
    %125 = arith.addf %122, %124 : vector<8x20xf32>
    %cst_85 = arith.constant 0.000000e+00 : f32
    %126 = vector.broadcast %cst_85 : f32 to vector<8x20xf32>
    %127 = arith.maximumf %125, %126 : vector<8x20xf32>
    %c0_86 = arith.constant 0 : index
    %c0_87 = arith.constant 0 : index
    %128 = vector.load %arg19[%c0_86, %c0_87] : memref<20x64xf32, #tpu.memory_space<vmem>>, vector<20x64xf32>
    %cst_88 = arith.constant dense<0.000000e+00> : vector<8x64xf32>
    %129 = tpu.matmul %127, %128, %cst_88 {dimension_numbers = #tpu.dot_dimension_numbers<[1], [0], [0], [1], [0, 0, 1, 1], [], []>} : vector<8x20xf32>, vector<20x64xf32>, vector<8x64xf32> -> vector<8x64xf32>
    %c0_89 = arith.constant 0 : index
    %c0_90 = arith.constant 0 : index
    %130 = vector.load %arg20[%c0_89, %c0_90] : memref<1x64xf32, #tpu.memory_space<vmem>>, vector<1x64xf32>
    %131 = vector.broadcast %130 : vector<1x64xf32> to vector<8x64xf32>
    %132 = arith.addf %129, %131 : vector<8x64xf32>
    %cst_91 = arith.constant 0.000000e+00 : f32
    %133 = vector.broadcast %cst_91 : f32 to vector<8x64xf32>
    %134 = arith.maximumf %132, %133 : vector<8x64xf32>
    %c0_92 = arith.constant 0 : index
    %c0_93 = arith.constant 0 : index
    %135 = vector.load %arg46[%c0_92, %c0_93] : memref<8x8xf32, #tpu.memory_space<vmem>>, vector<8x8xf32>
    %cst_94 = arith.constant dense<0.000000e+00> : vector<8x64xf32>
    %136 = tpu.matmul %135, %134, %cst_94 {dimension_numbers = #tpu.dot_dimension_numbers<[1], [0], [0], [1], [0, 0, 1, 1], [], []>} : vector<8x8xf32>, vector<8x64xf32>, vector<8x64xf32> -> vector<8x64xf32>
    %c0_95 = arith.constant 0 : index
    %c0_96 = arith.constant 0 : index
    %137 = vector.load %arg47[%c0_95, %c0_96] : memref<8x1xf32, #tpu.memory_space<vmem>>, vector<8x1xf32>
    %138 = vector.broadcast %137 : vector<8x1xf32> to vector<8x64xf32>
    %139 = arith.addf %136, %138 : vector<8x64xf32>
    %cst_97 = arith.constant dense<0.000000e+00> : vector<8x64xf32>
    %140 = tpu.matmul %54, %115, %cst_97 {dimension_numbers = #tpu.dot_dimension_numbers<[1], [0], [0], [1], [0, 0, 1, 1], [], []>} : vector<8x8xf32>, vector<8x64xf32>, vector<8x64xf32> -> vector<8x64xf32>
    %cst_98 = arith.constant dense<0.000000e+00> : vector<8x64xf32>
    %141 = tpu.matmul %54, %139, %cst_98 {dimension_numbers = #tpu.dot_dimension_numbers<[1], [0], [0], [1], [0, 0, 1, 1], [], []>} : vector<8x8xf32>, vector<8x64xf32>, vector<8x64xf32> -> vector<8x64xf32>
    %c0_99 = arith.constant 0 : index
    %c0_100 = arith.constant 0 : index
    %142 = vector.load %arg21[%c0_99, %c0_100] : memref<64x32xf32, #tpu.memory_space<vmem>>, vector<64x32xf32>
    %cst_101 = arith.constant dense<0.000000e+00> : vector<8x32xf32>
    %143 = tpu.matmul %140, %142, %cst_101 {dimension_numbers = #tpu.dot_dimension_numbers<[1], [0], [0], [1], [0, 0, 1, 1], [], []>} : vector<8x64xf32>, vector<64x32xf32>, vector<8x32xf32> -> vector<8x32xf32>
    %c0_102 = arith.constant 0 : index
    %c0_103 = arith.constant 0 : index
    %144 = vector.load %arg22[%c0_102, %c0_103] : memref<64x32xf32, #tpu.memory_space<vmem>>, vector<64x32xf32>
    %cst_104 = arith.constant dense<0.000000e+00> : vector<8x32xf32>
    %145 = tpu.matmul %141, %144, %cst_104 {dimension_numbers = #tpu.dot_dimension_numbers<[1], [0], [0], [1], [0, 0, 1, 1], [], []>} : vector<8x64xf32>, vector<64x32xf32>, vector<8x32xf32> -> vector<8x32xf32>
    %146 = arith.addf %143, %145 : vector<8x32xf32>
    %c0_105 = arith.constant 0 : index
    %c0_106 = arith.constant 0 : index
    %147 = vector.load %arg23[%c0_105, %c0_106] : memref<1x32xf32, #tpu.memory_space<vmem>>, vector<1x32xf32>
    %148 = vector.broadcast %147 : vector<1x32xf32> to vector<8x32xf32>
    %149 = arith.addf %146, %148 : vector<8x32xf32>
    %cst_107 = arith.constant 0.000000e+00 : f32
    %150 = vector.broadcast %cst_107 : f32 to vector<8x32xf32>
    %151 = arith.maximumf %149, %150 : vector<8x32xf32>
    %c0_108 = arith.constant 0 : index
    %c0_109 = arith.constant 0 : index
    %152 = vector.load %arg48[%c0_108, %c0_109] : memref<8x8xf32, #tpu.memory_space<vmem>>, vector<8x8xf32>
    %cst_110 = arith.constant dense<0.000000e+00> : vector<8x32xf32>
    %153 = tpu.matmul %152, %151, %cst_110 {dimension_numbers = #tpu.dot_dimension_numbers<[1], [0], [0], [1], [0, 0, 1, 1], [], []>} : vector<8x8xf32>, vector<8x32xf32>, vector<8x32xf32> -> vector<8x32xf32>
    %c0_111 = arith.constant 0 : index
    %c0_112 = arith.constant 0 : index
    %154 = vector.load %arg49[%c0_111, %c0_112] : memref<8x1xf32, #tpu.memory_space<vmem>>, vector<8x1xf32>
    %155 = vector.broadcast %154 : vector<8x1xf32> to vector<8x32xf32>
    %156 = arith.addf %153, %155 : vector<8x32xf32>
    %cst_113 = arith.constant dense<0.000000e+00> : vector<8x32xf32>
    %157 = tpu.matmul %43, %102, %cst_113 {dimension_numbers = #tpu.dot_dimension_numbers<[1], [0], [0], [1], [0, 0, 1, 1], [], []>} : vector<8x8xf32>, vector<8x32xf32>, vector<8x32xf32> -> vector<8x32xf32>
    %cst_114 = arith.constant dense<0.000000e+00> : vector<8x32xf32>
    %158 = tpu.matmul %43, %156, %cst_114 {dimension_numbers = #tpu.dot_dimension_numbers<[1], [0], [0], [1], [0, 0, 1, 1], [], []>} : vector<8x8xf32>, vector<8x32xf32>, vector<8x32xf32> -> vector<8x32xf32>
    %c0_115 = arith.constant 0 : index
    %c0_116 = arith.constant 0 : index
    %159 = vector.load %arg24[%c0_115, %c0_116] : memref<32x16xf32, #tpu.memory_space<vmem>>, vector<32x16xf32>
    %cst_117 = arith.constant dense<0.000000e+00> : vector<8x16xf32>
    %160 = tpu.matmul %157, %159, %cst_117 {dimension_numbers = #tpu.dot_dimension_numbers<[1], [0], [0], [1], [0, 0, 1, 1], [], []>} : vector<8x32xf32>, vector<32x16xf32>, vector<8x16xf32> -> vector<8x16xf32>
    %c0_118 = arith.constant 0 : index
    %c0_119 = arith.constant 0 : index
    %161 = vector.load %arg25[%c0_118, %c0_119] : memref<32x16xf32, #tpu.memory_space<vmem>>, vector<32x16xf32>
    %cst_120 = arith.constant dense<0.000000e+00> : vector<8x16xf32>
    %162 = tpu.matmul %158, %161, %cst_120 {dimension_numbers = #tpu.dot_dimension_numbers<[1], [0], [0], [1], [0, 0, 1, 1], [], []>} : vector<8x32xf32>, vector<32x16xf32>, vector<8x16xf32> -> vector<8x16xf32>
    %163 = arith.addf %160, %162 : vector<8x16xf32>
    %c0_121 = arith.constant 0 : index
    %c0_122 = arith.constant 0 : index
    %164 = vector.load %arg26[%c0_121, %c0_122] : memref<1x16xf32, #tpu.memory_space<vmem>>, vector<1x16xf32>
    %165 = vector.broadcast %164 : vector<1x16xf32> to vector<8x16xf32>
    %166 = arith.addf %163, %165 : vector<8x16xf32>
    %cst_123 = arith.constant 0.000000e+00 : f32
    %167 = vector.broadcast %cst_123 : f32 to vector<8x16xf32>
    %168 = arith.maximumf %166, %167 : vector<8x16xf32>
    %c0_124 = arith.constant 0 : index
    %c0_125 = arith.constant 0 : index
    %169 = vector.load %arg50[%c0_124, %c0_125] : memref<16x8xf32, #tpu.memory_space<vmem>>, vector<16x8xf32>
    %cst_126 = arith.constant dense<0.000000e+00> : vector<16x16xf32>
    %170 = tpu.matmul %169, %168, %cst_126 {dimension_numbers = #tpu.dot_dimension_numbers<[1], [0], [0], [1], [0, 0, 1, 1], [], []>} : vector<16x8xf32>, vector<8x16xf32>, vector<16x16xf32> -> vector<16x16xf32>
    %c0_127 = arith.constant 0 : index
    %c0_128 = arith.constant 0 : index
    %171 = vector.load %arg51[%c0_127, %c0_128] : memref<16x1xf32, #tpu.memory_space<vmem>>, vector<16x1xf32>
    %172 = vector.broadcast %171 : vector<16x1xf32> to vector<16x16xf32>
    %173 = arith.addf %170, %172 : vector<16x16xf32>
    %cst_129 = arith.constant dense<0.000000e+00> : vector<16x16xf32>
    %174 = tpu.matmul %32, %89, %cst_129 {dimension_numbers = #tpu.dot_dimension_numbers<[1], [0], [0], [1], [0, 0, 1, 1], [], []>} : vector<16x16xf32>, vector<16x16xf32>, vector<16x16xf32> -> vector<16x16xf32>
    %cst_130 = arith.constant dense<0.000000e+00> : vector<16x16xf32>
    %175 = tpu.matmul %32, %173, %cst_130 {dimension_numbers = #tpu.dot_dimension_numbers<[1], [0], [0], [1], [0, 0, 1, 1], [], []>} : vector<16x16xf32>, vector<16x16xf32>, vector<16x16xf32> -> vector<16x16xf32>
    %c0_131 = arith.constant 0 : index
    %c0_132 = arith.constant 0 : index
    %176 = vector.load %arg27[%c0_131, %c0_132] : memref<16x8xf32, #tpu.memory_space<vmem>>, vector<16x8xf32>
    %cst_133 = arith.constant dense<0.000000e+00> : vector<16x8xf32>
    %177 = tpu.matmul %174, %176, %cst_133 {dimension_numbers = #tpu.dot_dimension_numbers<[1], [0], [0], [1], [0, 0, 1, 1], [], []>} : vector<16x16xf32>, vector<16x8xf32>, vector<16x8xf32> -> vector<16x8xf32>
    %c0_134 = arith.constant 0 : index
    %c0_135 = arith.constant 0 : index
    %178 = vector.load %arg28[%c0_134, %c0_135] : memref<16x8xf32, #tpu.memory_space<vmem>>, vector<16x8xf32>
    %cst_136 = arith.constant dense<0.000000e+00> : vector<16x8xf32>
    %179 = tpu.matmul %175, %178, %cst_136 {dimension_numbers = #tpu.dot_dimension_numbers<[1], [0], [0], [1], [0, 0, 1, 1], [], []>} : vector<16x16xf32>, vector<16x8xf32>, vector<16x8xf32> -> vector<16x8xf32>
    %180 = arith.addf %177, %179 : vector<16x8xf32>
    %c0_137 = arith.constant 0 : index
    %c0_138 = arith.constant 0 : index
    %181 = vector.load %arg29[%c0_137, %c0_138] : memref<1x8xf32, #tpu.memory_space<vmem>>, vector<1x8xf32>
    %182 = vector.broadcast %181 : vector<1x8xf32> to vector<16x8xf32>
    %183 = arith.addf %180, %182 : vector<16x8xf32>
    %cst_139 = arith.constant 0.000000e+00 : f32
    %184 = vector.broadcast %cst_139 : f32 to vector<16x8xf32>
    %185 = arith.maximumf %183, %184 : vector<16x8xf32>
    %c0_140 = arith.constant 0 : index
    %c0_141 = arith.constant 0 : index
    %186 = vector.load %arg52[%c0_140, %c0_141] : memref<32x16xf32, #tpu.memory_space<vmem>>, vector<32x16xf32>
    %cst_142 = arith.constant dense<0.000000e+00> : vector<32x8xf32>
    %187 = tpu.matmul %186, %185, %cst_142 {dimension_numbers = #tpu.dot_dimension_numbers<[1], [0], [0], [1], [0, 0, 1, 1], [], []>} : vector<32x16xf32>, vector<16x8xf32>, vector<32x8xf32> -> vector<32x8xf32>
    %c0_143 = arith.constant 0 : index
    %c0_144 = arith.constant 0 : index
    %188 = vector.load %arg53[%c0_143, %c0_144] : memref<32x1xf32, #tpu.memory_space<vmem>>, vector<32x1xf32>
    %189 = vector.broadcast %188 : vector<32x1xf32> to vector<32x8xf32>
    %190 = arith.addf %187, %189 : vector<32x8xf32>
    %cst_145 = arith.constant dense<0.000000e+00> : vector<32x8xf32>
    %191 = tpu.matmul %21, %76, %cst_145 {dimension_numbers = #tpu.dot_dimension_numbers<[1], [0], [0], [1], [0, 0, 1, 1], [], []>} : vector<32x32xf32>, vector<32x8xf32>, vector<32x8xf32> -> vector<32x8xf32>
    %cst_146 = arith.constant dense<0.000000e+00> : vector<32x8xf32>
    %192 = tpu.matmul %21, %190, %cst_146 {dimension_numbers = #tpu.dot_dimension_numbers<[1], [0], [0], [1], [0, 0, 1, 1], [], []>} : vector<32x32xf32>, vector<32x8xf32>, vector<32x8xf32> -> vector<32x8xf32>
    %c0_147 = arith.constant 0 : index
    %c0_148 = arith.constant 0 : index
    %193 = vector.load %arg30[%c0_147, %c0_148] : memref<8x4xf32, #tpu.memory_space<vmem>>, vector<8x4xf32>
    %cst_149 = arith.constant dense<0.000000e+00> : vector<32x4xf32>
    %194 = tpu.matmul %191, %193, %cst_149 {dimension_numbers = #tpu.dot_dimension_numbers<[1], [0], [0], [1], [0, 0, 1, 1], [], []>} : vector<32x8xf32>, vector<8x4xf32>, vector<32x4xf32> -> vector<32x4xf32>
    %c0_150 = arith.constant 0 : index
    %c0_151 = arith.constant 0 : index
    %195 = vector.load %arg31[%c0_150, %c0_151] : memref<8x4xf32, #tpu.memory_space<vmem>>, vector<8x4xf32>
    %cst_152 = arith.constant dense<0.000000e+00> : vector<32x4xf32>
    %196 = tpu.matmul %192, %195, %cst_152 {dimension_numbers = #tpu.dot_dimension_numbers<[1], [0], [0], [1], [0, 0, 1, 1], [], []>} : vector<32x8xf32>, vector<8x4xf32>, vector<32x4xf32> -> vector<32x4xf32>
    %197 = arith.addf %194, %196 : vector<32x4xf32>
    %c0_153 = arith.constant 0 : index
    %c0_154 = arith.constant 0 : index
    %198 = vector.load %arg32[%c0_153, %c0_154] : memref<1x4xf32, #tpu.memory_space<vmem>>, vector<1x4xf32>
    %199 = vector.broadcast %198 : vector<1x4xf32> to vector<32x4xf32>
    %200 = arith.addf %197, %199 : vector<32x4xf32>
    %cst_155 = arith.constant 0.000000e+00 : f32
    %201 = vector.broadcast %cst_155 : f32 to vector<32x4xf32>
    %202 = arith.maximumf %200, %201 : vector<32x4xf32>
    %c0_156 = arith.constant 0 : index
    %c0_157 = arith.constant 0 : index
    %203 = vector.load %arg54[%c0_156, %c0_157] : memref<56x32xf32, #tpu.memory_space<vmem>>, vector<56x32xf32>
    %cst_158 = arith.constant dense<0.000000e+00> : vector<56x4xf32>
    %204 = tpu.matmul %203, %202, %cst_158 {dimension_numbers = #tpu.dot_dimension_numbers<[1], [0], [0], [1], [0, 0, 1, 1], [], []>} : vector<56x32xf32>, vector<32x4xf32>, vector<56x4xf32> -> vector<56x4xf32>
    %c0_159 = arith.constant 0 : index
    %c0_160 = arith.constant 0 : index
    %205 = vector.load %arg55[%c0_159, %c0_160] : memref<56x1xf32, #tpu.memory_space<vmem>>, vector<56x1xf32>
    %206 = vector.broadcast %205 : vector<56x1xf32> to vector<56x4xf32>
    %207 = arith.addf %204, %206 : vector<56x4xf32>
    %cst_161 = arith.constant dense<0.000000e+00> : vector<56x4xf32>
    %208 = tpu.matmul %10, %63, %cst_161 {dimension_numbers = #tpu.dot_dimension_numbers<[1], [0], [0], [1], [0, 0, 1, 1], [], []>} : vector<56x56xf32>, vector<56x4xf32>, vector<56x4xf32> -> vector<56x4xf32>
    %cst_162 = arith.constant dense<0.000000e+00> : vector<56x4xf32>
    %209 = tpu.matmul %10, %207, %cst_162 {dimension_numbers = #tpu.dot_dimension_numbers<[1], [0], [0], [1], [0, 0, 1, 1], [], []>} : vector<56x56xf32>, vector<56x4xf32>, vector<56x4xf32> -> vector<56x4xf32>
    %c0_163 = arith.constant 0 : index
    %c0_164 = arith.constant 0 : index
    %210 = vector.load %arg33[%c0_163, %c0_164] : memref<4x3xf32, #tpu.memory_space<vmem>>, vector<4x3xf32>
    %cst_165 = arith.constant dense<0.000000e+00> : vector<56x3xf32>
    %211 = tpu.matmul %208, %210, %cst_165 {dimension_numbers = #tpu.dot_dimension_numbers<[1], [0], [0], [1], [0, 0, 1, 1], [], []>} : vector<56x4xf32>, vector<4x3xf32>, vector<56x3xf32> -> vector<56x3xf32>
    %c0_166 = arith.constant 0 : index
    %c0_167 = arith.constant 0 : index
    %212 = vector.load %arg34[%c0_166, %c0_167] : memref<4x3xf32, #tpu.memory_space<vmem>>, vector<4x3xf32>
    %cst_168 = arith.constant dense<0.000000e+00> : vector<56x3xf32>
    %213 = tpu.matmul %209, %212, %cst_168 {dimension_numbers = #tpu.dot_dimension_numbers<[1], [0], [0], [1], [0, 0, 1, 1], [], []>} : vector<56x4xf32>, vector<4x3xf32>, vector<56x3xf32> -> vector<56x3xf32>
    %214 = arith.addf %211, %213 : vector<56x3xf32>
    %c0_169 = arith.constant 0 : index
    %c0_170 = arith.constant 0 : index
    %215 = vector.load %arg35[%c0_169, %c0_170] : memref<1x3xf32, #tpu.memory_space<vmem>>, vector<1x3xf32>
    %216 = vector.broadcast %215 : vector<1x3xf32> to vector<56x3xf32>
    %217 = arith.addf %214, %216 : vector<56x3xf32>
    %c0_171 = arith.constant 0 : index
    %c0_172 = arith.constant 0 : index
    %218 = vector.load %arg56[%c0_171, %c0_172] : memref<56x3xf32, #tpu.memory_space<vmem>>, vector<56x3xf32>
    tpu.vector_store %arg56[%c0_171, %c0_172], %217 {strides = array<i32>} : memref<56x3xf32, #tpu.memory_space<vmem>>, vector<56x3xf32>,
    return
  }
  func.func @transform_0(%arg0: i32) -> (i32, i32) {
    %c0_i32 = arith.constant 0 : i32
    %c0_i32_0 = arith.constant 0 : i32
    return %arg0, %c0_i32 : i32, i32
  }
  func.func @transform_1(%arg0: i32) -> (i32, i32) {
    %c0_i32 = arith.constant 0 : i32
    %c0_i32_0 = arith.constant 0 : i32
    %c0_i32_1 = arith.constant 0 : i32
    return %c0_i32, %c0_i32_0 : i32, i32
  }
  func.func @transform_2(%arg0: i32) -> (i32, i32) {
    %c0_i32 = arith.constant 0 : i32
    %c0_i32_0 = arith.constant 0 : i32
    %c0_i32_1 = arith.constant 0 : i32
    return %c0_i32, %c0_i32_0 : i32, i32
  }
  func.func @transform_3(%arg0: i32) -> (i32, i32) {
    %c0_i32 = arith.constant 0 : i32
    %c0_i32_0 = arith.constant 0 : i32
    %c0_i32_1 = arith.constant 0 : i32
    return %c0_i32, %c0_i32_0 : i32, i32
  }
  func.func @transform_4(%arg0: i32) -> (i32, i32) {
    %c0_i32 = arith.constant 0 : i32
    %c0_i32_0 = arith.constant 0 : i32
    %c0_i32_1 = arith.constant 0 : i32
    return %c0_i32, %c0_i32_0 : i32, i32
  }
  func.func @transform_5(%arg0: i32) -> (i32, i32) {
    %c0_i32 = arith.constant 0 : i32
    %c0_i32_0 = arith.constant 0 : i32
    %c0_i32_1 = arith.constant 0 : i32
    return %c0_i32, %c0_i32_0 : i32, i32
  }
  func.func @transform_6(%arg0: i32) -> (i32, i32) {
    %c0_i32 = arith.constant 0 : i32
    %c0_i32_0 = arith.constant 0 : i32
    %c0_i32_1 = arith.constant 0 : i32
    return %c0_i32, %c0_i32_0 : i32, i32
  }
  func.func @transform_7(%arg0: i32) -> (i32, i32) {
    %c0_i32 = arith.constant 0 : i32
    %c0_i32_0 = arith.constant 0 : i32
    %c0_i32_1 = arith.constant 0 : i32
    return %c0_i32, %c0_i32_0 : i32, i32
  }
  func.func @transform_8(%arg0: i32) -> (i32, i32) {
    %c0_i32 = arith.constant 0 : i32
    %c0_i32_0 = arith.constant 0 : i32
    %c0_i32_1 = arith.constant 0 : i32
    return %c0_i32, %c0_i32_0 : i32, i32
  }
  func.func @transform_9(%arg0: i32) -> (i32, i32) {
    %c0_i32 = arith.constant 0 : i32
    %c0_i32_0 = arith.constant 0 : i32
    %c0_i32_1 = arith.constant 0 : i32
    return %c0_i32, %c0_i32_0 : i32, i32
  }
  func.func @transform_10(%arg0: i32) -> (i32, i32) {
    %c0_i32 = arith.constant 0 : i32
    %c0_i32_0 = arith.constant 0 : i32
    %c0_i32_1 = arith.constant 0 : i32
    return %c0_i32, %c0_i32_0 : i32, i32
  }
  func.func @transform_11(%arg0: i32) -> (i32, i32) {
    %c0_i32 = arith.constant 0 : i32
    %c0_i32_0 = arith.constant 0 : i32
    %c0_i32_1 = arith.constant 0 : i32
    return %c0_i32, %c0_i32_0 : i32, i32
  }
  func.func @transform_12(%arg0: i32) -> (i32, i32) {
    %c0_i32 = arith.constant 0 : i32
    %c0_i32_0 = arith.constant 0 : i32
    %c0_i32_1 = arith.constant 0 : i32
    return %c0_i32, %c0_i32_0 : i32, i32
  }
  func.func @transform_13(%arg0: i32) -> (i32, i32) {
    %c0_i32 = arith.constant 0 : i32
    %c0_i32_0 = arith.constant 0 : i32
    %c0_i32_1 = arith.constant 0 : i32
    return %c0_i32, %c0_i32_0 : i32, i32
  }
  func.func @transform_14(%arg0: i32) -> (i32, i32) {
    %c0_i32 = arith.constant 0 : i32
    %c0_i32_0 = arith.constant 0 : i32
    %c0_i32_1 = arith.constant 0 : i32
    return %c0_i32, %c0_i32_0 : i32, i32
  }
  func.func @transform_15(%arg0: i32) -> (i32, i32) {
    %c0_i32 = arith.constant 0 : i32
    %c0_i32_0 = arith.constant 0 : i32
    %c0_i32_1 = arith.constant 0 : i32
    return %c0_i32, %c0_i32_0 : i32, i32
  }
  func.func @transform_16(%arg0: i32) -> (i32, i32) {
    %c0_i32 = arith.constant 0 : i32
    %c0_i32_0 = arith.constant 0 : i32
    %c0_i32_1 = arith.constant 0 : i32
    return %c0_i32, %c0_i32_0 : i32, i32
  }
  func.func @transform_17(%arg0: i32) -> (i32, i32) {
    %c0_i32 = arith.constant 0 : i32
    %c0_i32_0 = arith.constant 0 : i32
    %c0_i32_1 = arith.constant 0 : i32
    return %c0_i32, %c0_i32_0 : i32, i32
  }
  func.func @transform_18(%arg0: i32) -> (i32, i32) {
    %c0_i32 = arith.constant 0 : i32
    %c0_i32_0 = arith.constant 0 : i32
    %c0_i32_1 = arith.constant 0 : i32
    return %c0_i32, %c0_i32_0 : i32, i32
  }
  func.func @transform_19(%arg0: i32) -> (i32, i32) {
    %c0_i32 = arith.constant 0 : i32
    %c0_i32_0 = arith.constant 0 : i32
    %c0_i32_1 = arith.constant 0 : i32
    return %c0_i32, %c0_i32_0 : i32, i32
  }
  func.func @transform_20(%arg0: i32) -> (i32, i32) {
    %c0_i32 = arith.constant 0 : i32
    %c0_i32_0 = arith.constant 0 : i32
    %c0_i32_1 = arith.constant 0 : i32
    return %c0_i32, %c0_i32_0 : i32, i32
  }
  func.func @transform_21(%arg0: i32) -> (i32, i32) {
    %c0_i32 = arith.constant 0 : i32
    %c0_i32_0 = arith.constant 0 : i32
    %c0_i32_1 = arith.constant 0 : i32
    return %c0_i32, %c0_i32_0 : i32, i32
  }
  func.func @transform_22(%arg0: i32) -> (i32, i32) {
    %c0_i32 = arith.constant 0 : i32
    %c0_i32_0 = arith.constant 0 : i32
    %c0_i32_1 = arith.constant 0 : i32
    return %c0_i32, %c0_i32_0 : i32, i32
  }
  func.func @transform_23(%arg0: i32) -> (i32, i32) {
    %c0_i32 = arith.constant 0 : i32
    %c0_i32_0 = arith.constant 0 : i32
    %c0_i32_1 = arith.constant 0 : i32
    return %c0_i32, %c0_i32_0 : i32, i32
  }
  func.func @transform_24(%arg0: i32) -> (i32, i32) {
    %c0_i32 = arith.constant 0 : i32
    %c0_i32_0 = arith.constant 0 : i32
    %c0_i32_1 = arith.constant 0 : i32
    return %c0_i32, %c0_i32_0 : i32, i32
  }
  func.func @transform_25(%arg0: i32) -> (i32, i32) {
    %c0_i32 = arith.constant 0 : i32
    %c0_i32_0 = arith.constant 0 : i32
    %c0_i32_1 = arith.constant 0 : i32
    return %c0_i32, %c0_i32_0 : i32, i32
  }
  func.func @transform_26(%arg0: i32) -> (i32, i32) {
    %c0_i32 = arith.constant 0 : i32
    %c0_i32_0 = arith.constant 0 : i32
    %c0_i32_1 = arith.constant 0 : i32
    return %c0_i32, %c0_i32_0 : i32, i32
  }
  func.func @transform_27(%arg0: i32) -> (i32, i32) {
    %c0_i32 = arith.constant 0 : i32
    %c0_i32_0 = arith.constant 0 : i32
    %c0_i32_1 = arith.constant 0 : i32
    return %c0_i32, %c0_i32_0 : i32, i32
  }
  func.func @transform_28(%arg0: i32) -> (i32, i32) {
    %c0_i32 = arith.constant 0 : i32
    %c0_i32_0 = arith.constant 0 : i32
    %c0_i32_1 = arith.constant 0 : i32
    return %c0_i32, %c0_i32_0 : i32, i32
  }
  func.func @transform_29(%arg0: i32) -> (i32, i32) {
    %c0_i32 = arith.constant 0 : i32
    %c0_i32_0 = arith.constant 0 : i32
    %c0_i32_1 = arith.constant 0 : i32
    return %c0_i32, %c0_i32_0 : i32, i32
  }
  func.func @transform_30(%arg0: i32) -> (i32, i32) {
    %c0_i32 = arith.constant 0 : i32
    %c0_i32_0 = arith.constant 0 : i32
    %c0_i32_1 = arith.constant 0 : i32
    return %c0_i32, %c0_i32_0 : i32, i32
  }
  func.func @transform_31(%arg0: i32) -> (i32, i32) {
    %c0_i32 = arith.constant 0 : i32
    %c0_i32_0 = arith.constant 0 : i32
    %c0_i32_1 = arith.constant 0 : i32
    return %c0_i32, %c0_i32_0 : i32, i32
  }
  func.func @transform_32(%arg0: i32) -> (i32, i32) {
    %c0_i32 = arith.constant 0 : i32
    %c0_i32_0 = arith.constant 0 : i32
    %c0_i32_1 = arith.constant 0 : i32
    return %c0_i32, %c0_i32_0 : i32, i32
  }
  func.func @transform_33(%arg0: i32) -> (i32, i32) {
    %c0_i32 = arith.constant 0 : i32
    %c0_i32_0 = arith.constant 0 : i32
    %c0_i32_1 = arith.constant 0 : i32
    return %c0_i32, %c0_i32_0 : i32, i32
  }
  func.func @transform_34(%arg0: i32) -> (i32, i32) {
    %c0_i32 = arith.constant 0 : i32
    %c0_i32_0 = arith.constant 0 : i32
    %c0_i32_1 = arith.constant 0 : i32
    return %c0_i32, %c0_i32_0 : i32, i32
  }
  func.func @transform_35(%arg0: i32) -> (i32, i32) {
    %c0_i32 = arith.constant 0 : i32
    %c0_i32_0 = arith.constant 0 : i32
    %c0_i32_1 = arith.constant 0 : i32
    return %c0_i32, %c0_i32_0 : i32, i32
  }
  func.func @transform_36(%arg0: i32) -> (i32, i32) {
    %c0_i32 = arith.constant 0 : i32
    %c0_i32_0 = arith.constant 0 : i32
    %c0_i32_1 = arith.constant 0 : i32
    return %c0_i32, %c0_i32_0 : i32, i32
  }
  func.func @transform_37(%arg0: i32) -> (i32, i32) {
    %c0_i32 = arith.constant 0 : i32
    %c0_i32_0 = arith.constant 0 : i32
    %c0_i32_1 = arith.constant 0 : i32
    return %c0_i32, %c0_i32_0 : i32, i32
  }
  func.func @transform_38(%arg0: i32) -> (i32, i32) {
    %c0_i32 = arith.constant 0 : i32
    %c0_i32_0 = arith.constant 0 : i32
    %c0_i32_1 = arith.constant 0 : i32
    return %c0_i32, %c0_i32_0 : i32, i32
  }
  func.func @transform_39(%arg0: i32) -> (i32, i32) {
    %c0_i32 = arith.constant 0 : i32
    %c0_i32_0 = arith.constant 0 : i32
    %c0_i32_1 = arith.constant 0 : i32
    return %c0_i32, %c0_i32_0 : i32, i32
  }
  func.func @transform_40(%arg0: i32) -> (i32, i32) {
    %c0_i32 = arith.constant 0 : i32
    %c0_i32_0 = arith.constant 0 : i32
    %c0_i32_1 = arith.constant 0 : i32
    return %c0_i32, %c0_i32_0 : i32, i32
  }
  func.func @transform_41(%arg0: i32) -> (i32, i32) {
    %c0_i32 = arith.constant 0 : i32
    %c0_i32_0 = arith.constant 0 : i32
    %c0_i32_1 = arith.constant 0 : i32
    return %c0_i32, %c0_i32_0 : i32, i32
  }
  func.func @transform_42(%arg0: i32) -> (i32, i32) {
    %c0_i32 = arith.constant 0 : i32
    %c0_i32_0 = arith.constant 0 : i32
    %c0_i32_1 = arith.constant 0 : i32
    return %c0_i32, %c0_i32_0 : i32, i32
  }
  func.func @transform_43(%arg0: i32) -> (i32, i32) {
    %c0_i32 = arith.constant 0 : i32
    %c0_i32_0 = arith.constant 0 : i32
    %c0_i32_1 = arith.constant 0 : i32
    return %c0_i32, %c0_i32_0 : i32, i32
  }
  func.func @transform_44(%arg0: i32) -> (i32, i32) {
    %c0_i32 = arith.constant 0 : i32
    %c0_i32_0 = arith.constant 0 : i32
    %c0_i32_1 = arith.constant 0 : i32
    return %c0_i32, %c0_i32_0 : i32, i32
  }
  func.func @transform_45(%arg0: i32) -> (i32, i32) {
    %c0_i32 = arith.constant 0 : i32
    %c0_i32_0 = arith.constant 0 : i32
    %c0_i32_1 = arith.constant 0 : i32
    return %c0_i32, %c0_i32_0 : i32, i32
  }
  func.func @transform_46(%arg0: i32) -> (i32, i32) {
    %c0_i32 = arith.constant 0 : i32
    %c0_i32_0 = arith.constant 0 : i32
    %c0_i32_1 = arith.constant 0 : i32
    return %c0_i32, %c0_i32_0 : i32, i32
  }
  func.func @transform_47(%arg0: i32) -> (i32, i32) {
    %c0_i32 = arith.constant 0 : i32
    %c0_i32_0 = arith.constant 0 : i32
    %c0_i32_1 = arith.constant 0 : i32
    return %c0_i32, %c0_i32_0 : i32, i32
  }
  func.func @transform_48(%arg0: i32) -> (i32, i32) {
    %c0_i32 = arith.constant 0 : i32
    %c0_i32_0 = arith.constant 0 : i32
    %c0_i32_1 = arith.constant 0 : i32
    return %c0_i32, %c0_i32_0 : i32, i32
  }
  func.func @transform_49(%arg0: i32) -> (i32, i32) {
    %c0_i32 = arith.constant 0 : i32
    %c0_i32_0 = arith.constant 0 : i32
    %c0_i32_1 = arith.constant 0 : i32
    return %c0_i32, %c0_i32_0 : i32, i32
  }
  func.func @transform_50(%arg0: i32) -> (i32, i32) {
    %c0_i32 = arith.constant 0 : i32
    %c0_i32_0 = arith.constant 0 : i32
    %c0_i32_1 = arith.constant 0 : i32
    return %c0_i32, %c0_i32_0 : i32, i32
  }
  func.func @transform_51(%arg0: i32) -> (i32, i32) {
    %c0_i32 = arith.constant 0 : i32
    %c0_i32_0 = arith.constant 0 : i32
    %c0_i32_1 = arith.constant 0 : i32
    return %c0_i32, %c0_i32_0 : i32, i32
  }
  func.func @transform_52(%arg0: i32) -> (i32, i32) {
    %c0_i32 = arith.constant 0 : i32
    %c0_i32_0 = arith.constant 0 : i32
    %c0_i32_1 = arith.constant 0 : i32
    return %c0_i32, %c0_i32_0 : i32, i32
  }
  func.func @transform_53(%arg0: i32) -> (i32, i32) {
    %c0_i32 = arith.constant 0 : i32
    %c0_i32_0 = arith.constant 0 : i32
    %c0_i32_1 = arith.constant 0 : i32
    return %c0_i32, %c0_i32_0 : i32, i32
  }
  func.func @transform_54(%arg0: i32) -> (i32, i32) {
    %c0_i32 = arith.constant 0 : i32
    %c0_i32_0 = arith.constant 0 : i32
    %c0_i32_1 = arith.constant 0 : i32
    return %c0_i32, %c0_i32_0 : i32, i32
  }
  func.func @transform_55(%arg0: i32) -> (i32, i32) {
    %c0_i32 = arith.constant 0 : i32
    %c0_i32_0 = arith.constant 0 : i32
    return %arg0, %c0_i32 : i32, i32
  }
}

</mosaic_0001>

<bundles_post_ra>
// kernel: graph_unet_forward.1
= control target key start
LH: loop header
LB: loop body
LE: loop exit
PB: predicated region body
PF: predicated region fallthrough
CT: control target
= control target key end

     0   :  { %s7196_s6 = smov 1   ;;  %s7197_s10 = smov 2   ;;  %s8294_s0 = inlined_call_operand.smem [shape: u32[56], index: -1, kind: input, shape index: {}] }
   0x1   :  { %s7263_s5 = sld [smem:[%s8294_s0]]   ;;  %s7198_s14 = smov 3  }
   0x2   :  { %s7268_s9 = sld [smem:[%s8294_s0 + %s7196_s6]]   ;;  %s7199_s18 = smov 4  }
   0x3   :  { %s7273_s13 = sld [smem:[%s8294_s0 + %s7197_s10]]   ;;  %s7200_s22 = smov 5  }
   0x4   :  { %s7278_s17 = sld [smem:[%s8294_s0 + %s7198_s14]]   ;;  %s7201_s26 = smov 6  }
   0x5   :  { %s7283_s21 = sld [smem:[%s8294_s0 + %s7199_s18]]   ;;  %s7202_s30 = smov 7  }
   0x6   :  { %s7288_s25 = sld [smem:[%s8294_s0 + %s7200_s22]]   ;;  %s7203_s4 = smov 8  }
   0x7   :  { %s7293_s29 = sld [smem:[%s8294_s0 + %s7201_s26]]   ;;  %s7204_s10 = smov 9  }
   0x8   :  { %s7298_s3 = sld [smem:[%s8294_s0 + %s7202_s30]]   ;;  %s7205_s15 = smov 10  }
   0x9   :  { %s7303_s8 = sld [smem:[%s8294_s0 + %s7203_s4]]   ;;  %s7206_s20 = smov 11  }
   0xa   :  { %s7308_s14 = sld [smem:[%s8294_s0 + %s7204_s10]]   ;;  %s7207_s26 = smov 12  }
   0xb   :  { %s7313_s19 = sld [smem:[%s8294_s0 + %s7205_s15]]   ;;  %s7208_s1 = smov 13  }
   0xc   :  { %s7318_s24 = sld [smem:[%s8294_s0 + %s7206_s20]]   ;;  %s7209_s7 = smov 14  }
   0xd   :  { %s7323_s30 = sld [smem:[%s8294_s0 + %s7207_s26]]   ;;  %s7210_s15 = smov 15  }
   0xe   :  { %8315 = sst [smem:[#allocation2_spill]] %s7298_s3  ;;  %s7211_s22 = smov 16  }
   0xf   :  { %8316 = sst [smem:[#allocation3_spill]] %s7303_s8  ;;  %s7212_s28 = smov 17  }
  0x10   :  { %8317 = sst [smem:[#allocation4_spill]] %s7308_s14 }
  0x11   :  { %8318 = sst [smem:[#allocation5_spill]] %s7313_s19 }
  0x12   :  { %8319 = sst [smem:[#allocation6_spill]] %s7318_s24 }
  0x13   :  { %8320 = sst [smem:[#allocation7_spill]] %s7323_s30 }
  0x14   :  { %s7328_s6 = sld [smem:[%s8294_s0 + %s7208_s1]]  }
  0x15   :  { %s7333_s12 = sld [smem:[%s8294_s0 + %s7209_s7]]   ;;  %s7213_s7 = smov 18  }
  0x16   :  { %s7338_s20 = sld [smem:[%s8294_s0 + %s7210_s15]]   ;;  %s7214_s15 = smov 19  }
  0x17   :  { %s7343_s27 = sld [smem:[%s8294_s0 + %s7211_s22]]   ;;  %s7215_s22 = smov 20  }
  0x18   :  { %s7348_s4 = sld [smem:[%s8294_s0 + %s7212_s28]]   ;;  %s7216_s28 = smov 21  }
  0x1a   :  { %8321 = sst [smem:[#allocation8_spill]] %s7328_s6 }
  0x1b   :  { %8322 = sst [smem:[#allocation9_spill]] %s7333_s12 }
  0x1c   :  { %8323 = sst [smem:[#allocation10_spill]] %s7338_s20 }
  0x1d   :  { %8324 = sst [smem:[#allocation11_spill]] %s7343_s27 }
  0x1e   :  { %8325 = sst [smem:[#allocation12_spill]] %s7348_s4 }
  0x1f   :  { %s7353_s12 = sld [smem:[%s8294_s0 + %s7213_s7]]   ;;  %s7217_s7 = smov 22  }
  0x20   :  { %s7358_s20 = sld [smem:[%s8294_s0 + %s7214_s15]]   ;;  %s7218_s15 = smov 23  }
  0x21   :  { %s7363_s27 = sld [smem:[%s8294_s0 + %s7215_s22]]   ;;  %s7219_s22 = smov 24  }
  0x22   :  { %s7368_s4 = sld [smem:[%s8294_s0 + %s7216_s28]]   ;;  %s7220_s28 = smov 25  }
  0x25   :  { %8326 = sst [smem:[#allocation13_spill]] %s7353_s12 }
  0x26   :  { %8327 = sst [smem:[#allocation14_spill]] %s7358_s20 }
  0x27   :  { %8328 = sst [smem:[#allocation15_spill]] %s7363_s27 }
  0x28   :  { %8329 = sst [smem:[#allocation16_spill]] %s7368_s4 }
  0x29   :  { %s7373_s12 = sld [smem:[%s8294_s0 + %s7217_s7]]   ;;  %s7221_s7 = smov 26  }
  0x2a   :  { %s7378_s20 = sld [smem:[%s8294_s0 + %s7218_s15]]   ;;  %s7222_s15 = smov 27  }
  0x2b   :  { %s7383_s27 = sld [smem:[%s8294_s0 + %s7219_s22]]   ;;  %s7223_s22 = smov 28  }
  0x2c   :  { %s7388_s4 = sld [smem:[%s8294_s0 + %s7220_s28]]   ;;  %s7224_s28 = smov 29  }
  0x2f   :  { %8330 = sst [smem:[#allocation17_spill]] %s7373_s12 }
  0x30   :  { %8331 = sst [smem:[#allocation18_spill]] %s7378_s20 }
  0x31   :  { %8332 = sst [smem:[#allocation19_spill]] %s7383_s27 }
  0x32   :  { %8333 = sst [smem:[#allocation20_spill]] %s7388_s4 }
  0x33   :  { %s7393_s12 = sld [smem:[%s8294_s0 + %s7221_s7]]   ;;  %s7225_s7 = smov 30  }
  0x34   :  { %s7398_s20 = sld [smem:[%s8294_s0 + %s7222_s15]]   ;;  %s7226_s15 = smov 31  }
  0x35   :  { %s7403_s27 = sld [smem:[%s8294_s0 + %s7223_s22]]   ;;  %s7227_s22 = smov 32  }
  0x36   :  { %s7408_s4 = sld [smem:[%s8294_s0 + %s7224_s28]]   ;;  %s7228_s28 = smov 33  }
  0x39   :  { %8334 = sst [smem:[#allocation21_spill]] %s7393_s12 }
  0x3a   :  { %8335 = sst [smem:[#allocation22_spill]] %s7398_s20 }
  0x3b   :  { %8336 = sst [smem:[#allocation23_spill]] %s7403_s27 }
  0x3c   :  { %8337 = sst [smem:[#allocation24_spill]] %s7408_s4 }
  0x3d   :  { %s7413_s12 = sld [smem:[%s8294_s0 + %s7225_s7]]   ;;  %s7229_s7 = smov 34  }
  0x3e   :  { %s7418_s20 = sld [smem:[%s8294_s0 + %s7226_s15]]   ;;  %s7230_s15 = smov 35  }
  0x3f   :  { %s7423_s27 = sld [smem:[%s8294_s0 + %s7227_s22]]   ;;  %s7231_s22 = smov 36  }
  0x40   :  { %s7428_s4 = sld [smem:[%s8294_s0 + %s7228_s28]]   ;;  %s7232_s28 = smov 37  }
  0x43   :  { %8338 = sst [smem:[#allocation25_spill]] %s7413_s12 }
  0x44   :  { %8339 = sst [smem:[#allocation26_spill]] %s7418_s20 }
  0x45   :  { %8340 = sst [smem:[#allocation27_spill]] %s7423_s27 }
  0x46   :  { %8341 = sst [smem:[#allocation28_spill]] %s7428_s4 }
  0x47   :  { %s7433_s12 = sld [smem:[%s8294_s0 + %s7229_s7]]   ;;  %s7233_s7 = smov 38  }
  0x48   :  { %s7438_s20 = sld [smem:[%s8294_s0 + %s7230_s15]]   ;;  %s7234_s15 = smov 39  }
  0x49   :  { %s7443_s27 = sld [smem:[%s8294_s0 + %s7231_s22]]   ;;  %s7235_s22 = smov 40  }
  0x4a   :  { %s7448_s4 = sld [smem:[%s8294_s0 + %s7232_s28]]   ;;  %s7236_s28 = smov 41  }
  0x4b   :  { %s7458_s6 = sld [smem:[%s8294_s0 + %s7234_s15]]   ;;  %s7238_s15 = smov 43  }
  0x4c   :  { %s7463_s30 = sld [smem:[%s8294_s0 + %s7235_s22]]   ;;  %s7239_s22 = smov 44  }
  0x4d   :  { %8342 = sst [smem:[#allocation29_spill]] %s7433_s12 }
  0x4e   :  { %s7453_s12 = sld [smem:[%s8294_s0 + %s7233_s7]]   ;;  %s7237_s7 = smov 42  }
  0x4f   :  { %s7468_s24 = sld [smem:[%s8294_s0 + %s7236_s28]]   ;;  %s7240_s28 = smov 45  }
  0x50   :  { %8343 = sst [smem:[#allocation30_spill]] %s7448_s4 }
  0x51   :  { %8344 = sst [smem:[#allocation31_spill]] %s7458_s6 }
  0x52   :  { %s7473_s19 = sld [smem:[%s8294_s0 + %s7237_s7]]   ;;  %s7241_s7 = smov 46  }
  0x53   :  { %s7478_s6 = sld [smem:[%s8294_s0 + %s7238_s15]]   ;;  %s7242_s15 = smov 47  }
  0x54   :  { %s7483_s14 = sld [smem:[%s8294_s0 + %s7239_s22]]   ;;  %s7243_s22 = smov 48  }
  0x55   :  { %8345 = sst [smem:[#allocation32_spill]] %s7468_s24 }
  0x56   :  { %s7488_s24 = sld [smem:[%s8294_s0 + %s7240_s28]]   ;;  %s7244_s28 = smov 49  }
  0x57   :  { %s7493_s4 = sld [smem:[%s8294_s0 + %s7241_s7]]   ;;  %s7245_s7 = smov 50  }
  0x58   :  { %s7503_s8 = sld [smem:[%s8294_s0 + %s7243_s22]]   ;;  %s7247_s22 = smov 52  }
  0x59   :  { %8346 = sst [smem:[#allocation33_spill]] %s7478_s6 }
  0x5a   :  { %s7498_s6 = sld [smem:[%s8294_s0 + %s7242_s15]]   ;;  %s7246_s15 = smov 51  }
  0x5c   :  { %8347 = sst [smem:[#allocation34_spill]] %s7488_s24 }
  0x5d   :  { %8348 = sst [smem:[#allocation35_spill]] %s7493_s4 }
  0x5e   :  { %8350 = sst [smem:[#allocation37_spill]] %s7503_s8 }
  0x5f   :  { %s7508_s24 = sld [smem:[%s8294_s0 + %s7244_s28]]   ;;  %s7248_s28 = smov 53  }
  0x60   :  { %8349 = sst [smem:[#allocation36_spill]] %s7498_s6 }
  0x61   :  { %s7513_s4 = sld [smem:[%s8294_s0 + %s7245_s7]]   ;;  %s7249_s7 = smov 54  }
  0x62   :  { %s7518_s6 = sld [smem:[%s8294_s0 + %s7246_s15]]   ;;  %s7250_s15 = smov 55  }
  0x63   :  { %s7523_s8 = sld [smem:[%s8294_s0 + %s7247_s22]]   ;;  %s7540_s22 = smov 0  }
  0x65   :  { %8351 = sst [smem:[#allocation38_spill]] %s7508_s24 }
  0x66   :  { %s7528_s24 = sld [smem:[%s8294_s0 + %s7248_s28]]  }
  0x67   :  { %8352 = sst [smem:[#allocation39_spill]] %s7513_s4 }
  0x68   :  { %8353 = sst [smem:[#allocation40_spill]] %s7518_s6 }
  0x69   :  { %s7533_s4 = sld [smem:[%s8294_s0 + %s7249_s7]]  }
  0x6a   :  { %s7538_s6 = sld [smem:[%s8294_s0 + %s7250_s15]]  }
  0x6b LB: > { %s6042_s23 = sadd.s32 4294967295, %s7194_s22   ;;  %p6046_p0 = scmp.ge.s32.totalorder %s7194_s22, 1  ;;  %s7194_s22 = sphi %s7540_s22, %s121_s22  }
  0x6c   : > { %p1494_p1 = scmp.lt.s32.totalorder %s7194_s22, 3 }
  0x6e   : > { %p1495_p2 = pnand %p6046_p0, %p1494_p1 }
  0x6f   : > { %v7549_v0 = vld [vmem:[%s7268_s9] sm:$0xff] (!%p1495_p2)  ;;  %v7552_v1 = vld [vmem:[%s7268_s9 + $0x8] sm:$0xff] (!%p1495_p2)  ;;  %v7555_v2 = vld [vmem:[%s7268_s9 + $0x10] sm:$0xff] (!%p1495_p2)  ;;  %vm1641_vm0 = vcmask (!%p1495_p2), 457728   ;;  %v7251_v7 = vmov (!%p1495_p2), 0   ;;  %s1622_s0 = smul.u32 (!%p1495_p2), 7, %s6042_s23 }
  0x70   : > { %1498 = sbr.rel (%p1495_p2) target bundleno = 7451 (0x1d1b), region = 240  ;;  %v7558_v3 = vld [vmem:[%s7268_s9 + $0x18] sm:$0xff] (!%p1495_p2)  ;;  %v1642_v4 = vsel (!%p1495_p2), %vm1641_vm0, %v7549_v0, 0.0  ;;  %v1643_v5 = vsel (!%p1495_p2), %vm1641_vm0, %v7552_v1, 0.0  ;;  %v1645_v6 = vsel (!%p1495_p2), %vm1641_vm0, %v7555_v2, 0.0  ;;  %7177 = vset.pattern.permute.xlu1 (!%p1495_p2), %v7251_v7  ;;  %v7567_v8 = vld [vmem:[%s7268_s9 + $0x20] sm:$0xff] (!%p1495_p2) }
  0x71   : > { %v1644_v9 = vadd.f32 (!%p1495_p2), %v1643_v5, %v1642_v4  ;;  %v1647_v10 = vsel (!%p1495_p2), %vm1641_vm0, %v7558_v3, 0.0  ;;  %v7572_v11 = vld [vmem:[%s7268_s9 + $0x28] sm:$0xff] (!%p1495_p2)  ;;  %v1649_v13 = vsel (!%p1495_p2), %vm1641_vm0, %v7567_v8, 0.0  ;;  %v7577_v14 = vld [vmem:[%s7268_s9 + $0x30] sm:$0xff] (!%p1495_p2)  ;;  %p1623_p3 = scmp.lt.s32.totalorder (!%p1495_p2), %s1622_s0, 13  ;;  %v7252_v29 = vmov (!%p1495_p2), 0.0|0.0  }
  0x72   : > { %v1651_v16 = vsel (!%p1495_p2), %vm1641_vm0, %v7572_v11, 0.0  ;;  %v1653_v18 = vsel (!%p1495_p2), %vm1641_vm0, %v7577_v14, 0.0  ;;  %6939 = vmatprep.subr.bf16.mxu0 (!%p1495_p2), %v7252_v29  ;;  %v2257_v40 = vld [vmem:[%s7443_s27 + $0x8] sm:$0xff] (!%p1495_p2)  ;;  %v7253_v41 = vmov (!%p1495_p2), 0.0   ;;  %vm7254_vm1 = vmmov (!%p1495_p2), 0   ;;  %v2258_v44 = vld [vmem:[%s7443_s27 + $0x10] sm:$0xff] (!%p1495_p2) }
  0x73   : > { %v1646_v12 = vadd.f32 (!%p1495_p2), %v1645_v6, %v1644_v9  ;;  %6456 = vmatprep.subr.mxu1 (!%p1495_p2), %v7253_v41  ;;  %6435 = vmatprep.mubr.msk.f32.mxu0 (!%p1495_p2), %vm7254_vm1, %v7253_v41  ;;  %v7606_v45 = vld [vmem:[%s7273_s13] sm:$0xff] (!%p1495_p2)  ;;  %v7609_v46 = vld [vmem:[%s7273_s13 + $0x8] sm:$0xff] (!%p1495_p2)  ;;  %vm1748_vm2 = vcmask (!%p1495_p2), 261120   ;;  %v2259_v48 = vld [vmem:[%s7443_s27 + $0x18] sm:$0xff] (!%p1495_p2)  ;;  %vm1826_vm3 = vcmask (!%p1495_p2), 130048   ;;  %vm2141_vm4 = vcmask (!%p1495_p2), 1041408  }
  0x74   : > { %6458 = vmatprep.mubr.msk.f32.mxu1 (!%p1495_p2), %vm7254_vm1, %v7253_v41  ;;  %v1749_v49 = vsel (!%p1495_p2), %vm1748_vm2, %v7606_v45, 0.0  ;;  %v1750_v50 = vsel (!%p1495_p2), %vm1748_vm2, %v7609_v46, 0.0  ;;  %v7617_v51 = vld [vmem:[%s7273_s13 + $0x10] sm:$0xff] (!%p1495_p2)  ;;  %v7622_v55 = vld [vmem:[%s7273_s13 + $0x18] sm:$0xff] (!%p1495_p2)  ;;  %vm2119_vm5 = vcmask (!%p1495_p2), 15360   ;;  %vm1885_vm6 = vcmask (!%p1495_p2), 64512  }
  0x75   : > { %v1648_v15 = vadd.f32 (!%p1495_p2), %v1647_v10, %v1646_v12  ;;  %v1751_v53 = vadd.f32 (!%p1495_p2), %v1750_v50, %v1749_v49  ;;  %v1752_v54 = vsel (!%p1495_p2), %vm1748_vm2, %v7617_v51, 0.0  ;;  %v1754_v58 = vsel (!%p1495_p2), %vm1748_vm2, %v7622_v55, 0.0  ;;  %v2256_v12 = vld [vmem:[%s7443_s27] sm:$0xff] (!%p1495_p2)  ;;  %s8354_s3 = sld [smem:[#allocation2_spill]] (!%p1495_p2)  ;;  %s8355_s1 = sld [smem:[#allocation35_spill]] (!%p1495_p2) }
  0x76   : > { %s8356_s2 = sld [smem:[#allocation37_spill]] (!%p1495_p2)  ;;  %s8357_s7 = sld [smem:[#allocation39_spill]] (!%p1495_p2)  ;;  %vm2495_vm7 = vcmask (!%p1495_p2), 1043456   ;;  %vm2482_vm8 = vcmask (!%p1495_p2), 31744   ;;  %vm3424_vm9 = vcmask (!%p1495_p2), 523264   ;;  %vm3509_vm10 = vcmask (!%p1495_p2), 162816  }
  0x77   : > { %v1650_v17 = vadd.f32 %v1649_v13, %v1648_v15  ;;  %s8395_s0 = smov (!%p1623_p3, %s1622_s0), 13  ;;  %v1753_v57 = vadd.f32 %v1752_v54, %v1751_v53  ;;  %v2590_v13 = vld [vmem:[%s7453_s12] sm:$0xff]  ;;  %v2591_v15 = vld [vmem:[%s7453_s12 + $0x8] sm:$0xff]  ;;  %s8358_s10 = sld [smem:[#allocation3_spill]]  ;;  %vm5923_vm11 = vcmask 23552  }
  0x78   : > { %s8309_s26 = sshll.u32 %s8395_s0, 3  ;;  %s8359_s11 = sld [smem:[#allocation30_spill]] }
  0x79   : > { %v1652_v19 = vadd.f32 %v1651_v16, %v1650_v17  ;;  %s1626_s28 = scalar_lea.vmem %s7263_s5, %s8309_s26  ;;  %v1755_v60 = vadd.f32 %v1754_v58, %v1753_v57  ;;  %s8360_s15 = sld [smem:[#allocation4_spill]] }
  0x7a   : > { %v1983_v30 = vld [vmem:[%s1626_s28] sm:$0xff]  ;;  %v1984_v31 = vld [vmem:[%s1626_s28 + $0x8] sm:$0xff]  ;;  %v1985_v32 = vld [vmem:[%s1626_s28 + $0x10] sm:$0xff]  ;;  %s8361_s16 = sld [smem:[#allocation5_spill]]  ;;  %s8362_s18 = sld [smem:[#allocation6_spill]] }
  0x7b   : > { %v1654_v20 = vadd.f32 %v1653_v18, %v1652_v19  ;;  %v6940_v33 = vpack.c.bf16 %v1984_v31, %v1983_v30  ;;  %v1986_v34 = vld [vmem:[%s1626_s28 + $0x18] sm:$0xff]  ;;  %v1987_v36 = vld [vmem:[%s1626_s28 + $0x20] sm:$0xff]  ;;  %v1988_v37 = vld [vmem:[%s1626_s28 + $0x28] sm:$0xff]  ;;  %v1756_v62 = vrot.slane %v1755_v60, 4  ;;  %s8363_s23 = sld [smem:[#allocation31_spill]]  ;;  %s8379_s26 = sld [smem:[#allocation19_spill]] }
  0x7c   : > { %v6943_v35 = vpack.c.bf16 %v1986_v34, %v1985_v32  ;;  %v6946_v38 = vpack.c.bf16 %v1988_v37, %v1987_v36  ;;  %v1989_v42 = vld [vmem:[%s1626_s28 + $0x30] sm:$0xff]  ;;  %v7690_v34 = vld [vmem:[%s7278_s17 + $0x8] sm:$0xff]  ;;  %s8364_s28 = sld [smem:[#allocation7_spill]] }
  0x7d   : > { %v1655_v21 = vrot.slane %v1654_v20, 4  ;;  %6941 = vmatpush3.bf16.msra.mxu0 %v6940_v33  ;;  %v1757_v63 = vadd.f32 %v1756_v62, %v1755_v60  ;;  %v7687_v33 = vld [vmem:[%s7278_s17] sm:$0xff] }
  0x7e   : > { %6942 = vmatprep.subr.bf16.mxu0 %v7252_v29 }
  0x7f   : > { %v1656_v22 = vadd.f32 %v1655_v21, %v1654_v20  ;;  %v1758_v4 = vrot.slane %v1757_v63, 2 }
  0x81   : > { %v1657_v23 = vrot.slane %v1656_v22, 2  ;;  %6944 = vmatpush3.bf16.msra.mxu0 %v6943_v35  ;;  %v1759_v5 = vadd.f32 %v1758_v4, %v1757_v63  ;;  %v1828_v35 = vsel %vm1826_vm3, %v7690_v34, 0.0 }
  0x82   : > { %6945 = vmatprep.subr.bf16.mxu0 %v7252_v29 }
  0x83   : > { %v1658_v24 = vadd.f32 %v1657_v23, %v1656_v22  ;;  %v1760_v6 = vrot.slane %v1759_v5, 1 }
  0x85   : > { %v1659_v25 = vrot.slane %v1658_v24, 1  ;;  %6947 = vmatpush3.bf16.msra.mxu0 %v6946_v38 }
  0x86   : > { %6433 = vmatprep.subr.mxu0 %v7253_v41 }
  0x87   : > { %v1660_v26 = vadd.f32 %v1659_v25, %v1658_v24 }
  0x89   : > { %v1661_v27 = vadd.f32 1e-05, %v1660_v26  ;;  %6434 = vmatpush3.msra.mxu0 %v1989_v42 }
  0x8b   : > { %7178 = vrsqrt.f32 %v1661_v27 }
  0x95   : > { %v7583_v28 = vpop.eup %7178 }
  0x96   : > { %1663 = vxpose.xlu0.b32.start.end [1/1] (short) (narrow) %v7583_v28, 56 }
  0xbf   : > { %7176 = vset.pattern.permute.xlu0 %v7251_v7  ;;  %v1761_v7 = vadd.f32 %v1760_v6, %v1759_v5 }
  0xc1   : > { %v1762_v9 = vadd.f32 1e-05, %v1761_v7 }
  0xc3   : > { %7180 = vrsqrt.f32 %v1762_v9 }
  0xcd   : > { %v7626_v10 = vpop.eup %7180 }
 0x116   : > { %v1679_v39 = vpop.trf.xlu0 }
 0x117   : > { %1697 = vperm.xlu0 %7176, %v1679_v39  }
 0x11a   : > { %v1680_v43 = vpop.trf.xlu0 }
 0x11b   : > { %2267 = vperm.xlu0 %7176, %v2257_v40   ;;  %1702 = vperm.xlu1 %7177, %v1680_v43  }
 0x11e   : > { %v1681_v47 = vpop.trf.xlu0 }
 0x11f   : > { %2272 = vperm.xlu0 %7176, %v2258_v44   ;;  %1707 = vperm.xlu1 %7177, %v1681_v47  }
 0x122   : > { %v1682_v52 = vpop.trf.xlu0 }
 0x123   : > { %2277 = vperm.xlu0 %7176, %v2259_v48   ;;  %1712 = vperm.xlu1 %7177, %v1682_v52   ;;  %v2111_v48 = vld [vmem:[%s7293_s29] sm:$0x3] }
 0x124   : > { %6457 = vmatpush3.msk.msra.mxu1 %vm2141_vm4, %v2111_v48 }
 0x126   : > { %v1683_v56 = vpop.trf.xlu0 }
 0x127   : > { %1717 = vperm.xlu1 %7177, %v1683_v56  }
 0x12a   : > { %v1684_v59 = vpop.trf.xlu0 }
 0x12b   : > { %1722 = vperm.xlu1 %7177, %v1684_v59  }
 0x12e   : > { %v1685_v61 = vpop.trf.xlu0 }
 0x12f   : > { %1727 = vperm.xlu1 %7177, %v1685_v61  }
 0x158   : > { %1764 = vxpose.xlu1.b32.start.end [1/1] (short) (narrow) %v7626_v10, 32 }
 0x182   : > { %2262 = vperm.xlu1 %7177, %v2256_v12  }
 0x186   : > { %2594 = vperm.xlu1 %7177, %v2590_v13  }
 0x18a   : > { %2599 = vperm.xlu1 %7177, %v2591_v15  }
 0x196   : > { %v1698_v16 = vpop.permute.xlu0 %1697 }
 0x197   : > { %v1730_v17 = vmul.f32 %v1698_v16, %v7549_v0  ;;  %v7730_v16 = vld [vmem:[%s7283_s21] sm:$0xff] }
 0x199   : > { %v7634_v18 = vmul.f32 %v7583_v28, %v1730_v17 }
 0x19a   : > { %v1703_v19 = vpop.permute.xlu1 %1702  ;;  %v7700_v53 = vpop.permute.xlu0 %2267 }
 0x19b   : > { %v1731_v20 = vmul.f32 %v1703_v19, %v7552_v1  ;;  %6436 = vmatmul.mubr.msk.f32.vlgmr.msra.gmra.mrb[0].mxu0 %vm1641_vm0, %v7634_v18 }
 0x19c   : > { %6438 = vmatprep.mubr.msk.f32.mxu0 %vm7254_vm1, %v7253_v41 }
 0x19d   : > { %v7642_v21 = vmul.f32 %v7583_v28, %v1731_v20  ;;  %v1886_v20 = vsel %vm1885_vm6, %v7730_v16, 0.0 }
 0x19e   : > { %v1708_v22 = vpop.permute.xlu1 %1707  ;;  %v7702_v54 = vpop.permute.xlu0 %2272 }
 0x19f   : > { %v1732_v23 = vmul.f32 %v1708_v22, %v7555_v2  ;;  %6439 = vmatmul.mubr.msk.f32.gmra.mrb[2].mxu0 %vm1641_vm0, %v7642_v21 }
 0x1a0   : > { %6441 = vmatprep.mubr.msk.f32.mxu0 %vm7254_vm1, %v7253_v41 }
 0x1a1   : > { %v7650_v0 = vmul.f32 %v7583_v28, %v1732_v23 }
 0x1a2   : > { %v1713_v1 = vpop.permute.xlu1 %1712  ;;  %v7704_v56 = vpop.permute.xlu0 %2277 }
 0x1a3   : > { %v1733_v24 = vmul.f32 %v1713_v1, %v7558_v3  ;;  %6442 = vmatmul.mubr.msk.f32.gmra.mrb[4].mxu0 %vm1641_vm0, %v7650_v0 }
 0x1a4   : > { %6444 = vmatprep.mubr.msk.f32.mxu0 %vm7254_vm1, %v7253_v41 }
 0x1a5   : > { %v7658_v2 = vmul.f32 %v7583_v28, %v1733_v24  ;;  %v1887_v24 = vrot.slane %v1886_v20, 4 }
 0x1a6   : > { %v1718_v25 = vpop.permute.xlu1 %1717 }
 0x1a7   : > { %v1734_v26 = vmul.f32 %v1718_v25, %v7567_v8  ;;  %6445 = vmatmul.mubr.msk.f32.gmra.mrb[6].mxu0 %vm1641_vm0, %v7658_v2  ;;  %v1888_v25 = vadd.f32 %v1887_v24, %v1886_v20 }
 0x1a8   : > { %6447 = vmatprep.mubr.msk.f32.mxu0 %vm7254_vm1, %v7253_v41 }
 0x1a9   : > { %v7666_v3 = vmul.f32 %v7583_v28, %v1734_v26  ;;  %v1889_v26 = vrot.slane %v1888_v25, 2 }
 0x1aa   : > { %v1723_v27 = vpop.permute.xlu1 %1722 }
 0x1ab   : > { %v1735_v30 = vmul.f32 %v1723_v27, %v7572_v11  ;;  %6448 = vmatmul.mubr.msk.f32.gmra.mrb[8].mxu0 %vm1641_vm0, %v7666_v3  ;;  %v1890_v27 = vadd.f32 %v1889_v26, %v1888_v25 }
 0x1ac   : > { %6450 = vmatprep.mubr.msk.f32.mxu0 %vm7254_vm1, %v7253_v41 }
 0x1ad   : > { %v7674_v8 = vmul.f32 %v7583_v28, %v1735_v30  ;;  %v1891_v30 = vrot.slane %v1890_v27, 1 }
 0x1ae   : > { %v1728_v31 = vpop.permute.xlu1 %1727 }
 0x1af   : > { %v1736_v32 = vmul.f32 %v1728_v31, %v7577_v14  ;;  %6451 = vmatmul.mubr.msk.f32.gmra.mrb[10].mxu0 %vm1641_vm0, %v7674_v8  ;;  %v1827_v14 = vsel %vm1826_vm3, %v7687_v33, 0.0  ;;  %v1892_v31 = vadd.f32 %v1891_v30, %v1890_v27 }
 0x1b0   : > { %6453 = vmatprep.mubr.msk.f32.mxu0 %vm7254_vm1, %v7253_v41  ;;  %v1829_v36 = vadd.f32 %v1828_v35, %v1827_v14  ;;  %v2856_v35 = vld [vmem:[%s7463_s30] sm:$0xff] }
 0x1b1   : > { %v7682_v11 = vmul.f32 %v7583_v28, %v1736_v32  ;;  %v1893_v32 = vadd.f32 1e-05, %v1892_v31 }
 0x1b2   : > { %v1830_v28 = vrot.slane %v1829_v36, 4 }
 0x1b3   : > { %6454 = vmatmul.mubr.msk.f32.gmra.mrb[12].mxu0 %vm1641_vm0, %v7682_v11 }
 0x1b4   : > { %v1831_v39 = vadd.f32 %v1830_v28, %v1829_v36  ;;  %v2252_v36 = vld [vmem:[%s7438_s20] sm:$0xff] }
 0x1b6   : > { %v1832_v42 = vrot.slane %v1831_v39, 2 }
 0x1b8   : > { %v1833_v44 = vadd.f32 %v1832_v42, %v1831_v39 }
 0x1ba   : > { %v1834_v47 = vrot.slane %v1833_v44, 1 }
 0x1bc   : > { %v1835_v49 = vadd.f32 %v1834_v47, %v1833_v44 }
 0x1be   : > { %v1836_v50 = vadd.f32 1e-05, %v1835_v49 }
 0x1c0   : > { %7182 = vrsqrt.f32 %v1836_v50 }
 0x1c1   : > { %7184 = vrsqrt.f32 %v1893_v32 }
 0x1ca   : > { %v7697_v52 = vpop.eup %7182 }
 0x1cb   : > { %v7738_v14 = vpop.eup %7184 }
 0x1d8   : > { %v1780_v37 = vpop.trf.xlu1 }
 0x1d9   : > { %1798 = vperm.xlu0 %7176, %v1780_v37  }
 0x1dc   : > { %v1781_v38 = vpop.trf.xlu1 }
 0x1dd   : > { %1803 = vperm.xlu0 %7176, %v1781_v38   ;;  %v7749_v38 = vld [vmem:[%s7288_s25] sm:$0xff] }
 0x1e0   : > { %v1782_v40 = vpop.trf.xlu1 }
 0x1e1   : > { %1808 = vperm.xlu0 %7176, %v1782_v40   ;;  %v1935_v40 = vsel %vm1885_vm6, %v7749_v38, 0.0 }
 0x1e4   : > { %v1783_v43 = vpop.trf.xlu1 }
 0x1e5   : > { %1813 = vperm.xlu0 %7176, %v1783_v43   ;;  %v1936_v43 = vrot.slane %v1935_v40, 4 }
 0x1e7   : > { %v1937_v44 = vadd.f32 %v1936_v43, %v1935_v40 }
 0x1e9   : > { %v1938_v48 = vrot.slane %v1937_v44, 2 }
 0x1eb   : > { %v1939_v50 = vadd.f32 %v1938_v48, %v1937_v44 }
 0x201   : > { %v7744_v37 = vpop.permute.xlu1 %2262 }
 0x203   : > { %1838 = vxpose.xlu0.b32.start.end [1/1] (short) (narrow) %v7697_v52, 16 }
 0x205   : > { %v7746_v28 = vpop.permute.xlu1 %2594 }
 0x209   : > { %v7751_v39 = vpop.permute.xlu1 %2599 }
 0x258   : > { %v7706_v57 = vpop.permute.xlu0 %1798 }
 0x25c   : > { %v7711_v61 = vpop.permute.xlu0 %1803 }
 0x260   : > { %v7719_v5 = vpop.permute.xlu0 %1808 }
 0x264   : > { %v7724_v12 = vpop.permute.xlu0 %1813 }
 0x26e   : > { %v2077_v58 = vpop.f32.mrb[0].mxu0 }
 0x26f   : > { %v6437_v59 = vpop.f32.mrb[1].mxu0  ;;  %6459 = vmatmul.mubr.msk.f32.vlgmr.msra.gmra.mrb[0].mxu1 %vm2119_vm5, %v2077_v58  ;;  %v1940_v58 = vrot.slane %v1939_v50, 1 }
 0x270   : > { %6461 = vmatprep.mubr.msk.f32.mxu1 %vm7254_vm1, %v7253_v41 }
 0x271   : > { %v1941_v59 = vadd.f32 %v1940_v58, %v1939_v50 }
 0x272   : > { %v2082_v60 = vpop.f32.mrb[2].mxu0 }
 0x273   : > { %v6440_v62 = vpop.f32.mrb[3].mxu0  ;;  %6462 = vmatmul.mubr.msk.f32.gmra.mrb[2].mxu1 %vm2119_vm5, %v2082_v60  ;;  %v1942_v60 = vadd.f32 1e-05, %v1941_v59 }
 0x274   : > { %6464 = vmatprep.mubr.msk.f32.mxu1 %vm7254_vm1, %v7253_v41  ;;  %v6056_v62 = vld [vmem:[%s8354_s3] ss:$0 sm:$0xff]  ;;  %s8384_s3 = sld [smem:[#allocation21_spill]] }
 0x275   : > { %7186 = vrsqrt.f32 %v1942_v60 }
 0x276   : > { %v2087_v63 = vpop.f32.mrb[4].mxu0 }
 0x277   : > { %v6443_v4 = vpop.f32.mrb[5].mxu0  ;;  %6465 = vmatmul.mubr.msk.f32.gmra.mrb[4].mxu1 %vm2119_vm5, %v2087_v63 }
 0x278   : > { %6467 = vmatprep.mubr.msk.f32.mxu1 %vm7254_vm1, %v7253_v41 }
 0x27a   : > { %v2092_v6 = vpop.f32.mrb[6].mxu0 }
 0x27b   : > { %v6446_v7 = vpop.f32.mrb[7].mxu0  ;;  %6468 = vmatmul.mubr.msk.f32.gmra.mrb[6].mxu1 %vm2119_vm5, %v2092_v6 }
 0x27c   : > { %6470 = vmatprep.mubr.msk.f32.mxu1 %vm7254_vm1, %v7253_v41 }
 0x27e   : > { %v2097_v9 = vpop.f32.mrb[8].mxu0 }
 0x27f   : > { %v6449_v13 = vpop.f32.mrb[9].mxu0  ;;  %6471 = vmatmul.mubr.msk.f32.gmra.mrb[8].mxu1 %vm2119_vm5, %v2097_v9 }
 0x280   : > { %6473 = vmatprep.mubr.msk.f32.mxu1 %vm7254_vm1, %v7253_v41 }
 0x282   : > { %v2102_v15 = vpop.f32.mrb[10].mxu0 }
 0x283   : > { %v1854_v17 = vpop.trf.xlu0  ;;  %v6452_v19 = vpop.f32.mrb[11].mxu0  ;;  %6474 = vmatmul.mubr.msk.f32.gmra.mrb[10].mxu1 %vm2119_vm5, %v2102_v15 }
 0x284   : > { %1872 = vperm.xlu1 %7177, %v1854_v17   ;;  %6476 = vmatprep.mubr.msk.f32.mxu1 %vm7254_vm1, %v7253_v41 }
 0x286   : > { %v2107_v22 = vpop.f32.mrb[12].mxu0 }
 0x287   : > { %v1855_v23 = vpop.trf.xlu0  ;;  %v6455_v1 = vpop.f32.mrb[13].mxu0  ;;  %6477 = vmatmul.mubr.msk.f32.gmra.mrb[12].mxu1 %vm2119_vm5, %v2107_v22 }
 0x288   : > { %1877 = vperm.xlu1 %7177, %v1855_v23   ;;  %6493 = vmatprep.mubr.msk.f32.mxu1 %vm1641_vm0, %v2252_v36  ;;  %v7762_v23 = vpop.eup %7186 }
 0x2b1   : > { %1895 = vxpose.xlu1.b32.start.end [1/1] (short) (narrow) %v7738_v14, 8 }
 0x2cf   : > { %2859 = vperm.xlu1 %7177, %v2856_v35  }
 0x303   : > { %v7755_v42 = vpop.permute.xlu1 %1872 }
 0x307   : > { %v7757_v47 = vpop.permute.xlu1 %1877 }
 0x331   : > { %v1911_v49 = vpop.trf.xlu1 }
 0x332   : > { %1929 = vperm.xlu0 %7176, %v1911_v49  }
 0x342   : > { %v2211_v63 = vpop.f32.mrb[0].mxu1 }
 0x343   : > { %v6460_v4 = vpop.f32.mrb[1].mxu1  ;;  %v2212_v6 = vadd.f32 %v6056_v62, %v2211_v63 }
 0x344   : > { %v2253_v4 = vld [vmem:[%s7438_s20 + $0x8] sm:$0xff] }
 0x345   : > { %v2245_v15 = vmax.f32 %v2212_v6, 0.0  ;;  %v2254_v6 = vld [vmem:[%s7438_s20 + $0x10] sm:$0xff] }
 0x346   : > { %v2216_v7 = vpop.f32.mrb[2].mxu1 }
 0x347   : > { %v2217_v9 = vadd.f32 %v6056_v62, %v2216_v7  ;;  %v6463_v13 = vpop.f32.mrb[3].mxu1  ;;  %v1816_v7 = vmul.f32 %v7706_v57, %v7606_v45  ;;  %v3330_v45 = vld [vmem:[%s7483_s14] sm:$0xff]  ;;  %v5299_v57 = vld [vmem:[%s7533_s4 + $0x18] sm:$0xff] }
 0x348   : > { %v5301_v13 = vld [vmem:[%s7533_s4 + $0x28] sm:$0xff] }
 0x349   : > { %v2246_v17 = vmax.f32 %v2217_v9, 0.0  ;;  %v7787_v9 = vmul.f32 %v7626_v10, %v1816_v7 }
 0x34a   : > { %v2221_v19 = vpop.f32.mrb[4].mxu1 }
 0x34b   : > { %v7760_v20 = vpack.c.bf16 %v2246_v17, %v2245_v15  ;;  %v6466_v22 = vpop.f32.mrb[5].mxu1  ;;  %v2222_v1 = vadd.f32 %v6056_v62, %v2221_v19  ;;  %v3092_v19 = vld [vmem:[%s7473_s19] sm:$0xff] }
 0x34c   : > { %v3588_v22 = vld [vmem:[%s8355_s1] sm:$0xff]  ;;  %s8365_s1 = sld [smem:[#allocation8_spill]] }
 0x34d   : > { %6949 = vmatprep.subr.bf16.mxu1 %v7760_v20  ;;  %v2247_v27 = vmax.f32 %v2222_v1, 0.0  ;;  %v3979_v1 = vld [vmem:[%s8356_s2] sm:$0xff]  ;;  %s8366_s2 = sld [smem:[#allocation32_spill]] }
 0x34e   : > { %v2226_v24 = vpop.f32.mrb[6].mxu1  ;;  %6951 = vmatpush3.bf16.msra.mxu1 %v7760_v20 }
 0x34f   : > { %v2227_v25 = vadd.f32 %v6056_v62, %v2226_v24  ;;  %v6469_v26 = vpop.f32.mrb[7].mxu1  ;;  %v4363_v24 = vld [vmem:[%s8357_s7] sm:$0xff] }
 0x350   : > { %1944 = vxpose.xlu0.b32.start.end [1/1] (short) (narrow) %v7762_v23, 8  ;;  %v4787_v26 = vld [vmem:[%s7523_s8] sm:$0xff] }
 0x351   : > { %v2248_v30 = vmax.f32 %v2227_v25, 0.0  ;;  %v4364_v25 = vld [vmem:[%s8357_s7 + $0x8] sm:$0xff] }
 0x352   : > { %v2231_v31 = vpop.f32.mrb[8].mxu1 }
 0x353   : > { %v7767_v32 = vpack.c.bf16 %v2248_v30, %v2247_v27  ;;  %v6472_v35 = vpop.f32.mrb[9].mxu1  ;;  %v2232_v36 = vadd.f32 %v6056_v62, %v2231_v31  ;;  %v4788_v27 = vld [vmem:[%s7523_s8 + $0x8] sm:$0xff]  ;;  %v4789_v30 = vld [vmem:[%s7523_s8 + $0x10] sm:$0xff]  ;;  %v4790_v31 = vld [vmem:[%s7523_s8 + $0x18] sm:$0xff] }
 0x354   : > { %v5296_v35 = vld [vmem:[%s7533_s4] sm:$0xff] }
 0x355   : > { %6953 = vmatprep.subr.bf16.mxu1 %v7767_v32  ;;  %v2249_v48 = vmax.f32 %v2232_v36, 0.0  ;;  %v5297_v36 = vld [vmem:[%s7533_s4 + $0x8] sm:$0xff] }
 0x356   : > { %v2236_v40 = vpop.f32.mrb[10].mxu1  ;;  %6955 = vmatpush3.bf16.msra.mxu1 %v7767_v32 }
 0x357   : > { %v2237_v43 = vadd.f32 %v6056_v62, %v2236_v40  ;;  %v6475_v44 = vpop.f32.mrb[11].mxu1  ;;  %v5298_v40 = vld [vmem:[%s7533_s4 + $0x10] sm:$0xff] }
 0x358   : > { %v5302_v44 = vld [vmem:[%s7533_s4 + $0x30] sm:$0xff] }
 0x359   : > { %v2250_v49 = vmax.f32 %v2237_v43, 0.0  ;;  %v5300_v43 = vld [vmem:[%s7533_s4 + $0x20] sm:$0xff] }
 0x35a   : > { %v2241_v50 = vpop.f32.mrb[12].mxu1 }
 0x35b   : > { %v7771_v58 = vpack.c.bf16 %v2250_v49, %v2249_v48  ;;  %v2242_v59 = vadd.f32 %v6056_v62, %v2241_v50  ;;  %v6478_v60 = vpop.f32.mrb[13].mxu1  ;;  %v2255_v62 = vld [vmem:[%s7438_s20 + $0x18] sm:$0xff]  ;;  %v2474_v48 = vld [vmem:[%s8358_s10] sm:$0xf]  ;;  %s8367_s10 = sld [smem:[#allocation9_spill]] }
 0x35c   : > { %6513 = vmatprep.subr.msk.mxu0 %vm2495_vm7, %v2474_v48 }
 0x35d   : > { %v7773_v63 = vmax.f32 %v2242_v59, 0.0  ;;  %6957 = vmatprep.subr.bf16.mxu1 %v7771_v58  ;;  %6514 = vmatpush3.msk.msra.mxu0 %vm2495_vm7, %v2474_v48  ;;  %v2589_v48 = vld [vmem:[%s8359_s11 + $0x8] sm:$0xff] }
 0x35e   : > { %6959 = vmatpush3.bf16.msra.mxu1 %v7771_v58  ;;  %6980 = vmatprep.subr.bf16.mxu0 %v7252_v29 }
 0x35f   : > { %6491 = vmatprep.subr.mxu1 %v7773_v63 }
 0x362   : > { %6492 = vmatpush3.msra.mxu1 %v7773_v63 }
 0x363   : > { %6494 = vmatmul.mubr.msk.f32.vlgmr.msra.gmra.mrb[14].mxu1 %vm1641_vm0, %v2253_v4 }
 0x364   : > { %6496 = vmatprep.mubr.msk.f32.mxu1 %vm1641_vm0, %v2254_v6 }
 0x367   : > { %6497 = vmatmul.mubr.msk.f32.gmra.mrb[16].mxu1 %vm1641_vm0, %v2255_v62 }
 0x368   : > { %6507 = vmatprep.mubr.msk.f32.mxu1 %vm1748_vm2, %v7787_v9 }
 0x379   : > { %3333 = vperm.xlu0 %7176, %v3330_v45  }
 0x37d   : > { %5320 = vperm.xlu0 %7176, %v5299_v57   ;;  %v1817_v57 = vmul.f32 %v7711_v61, %v7609_v46 }
 0x381   : > { %5330 = vperm.xlu0 %7176, %v5301_v13  }
 0x3b1   : > { %v7795_v15 = vpop.permute.xlu0 %1929 }
 0x3d0   : > { %v1960_v17 = vpop.trf.xlu0 }
 0x3d1   : > { %1978 = vperm.xlu1 %7177, %v1960_v17   ;;  %v1818_v17 = vmul.f32 %v7719_v5, %v7617_v51 }
 0x3d5   : > { %3095 = vperm.xlu1 %7177, %v3092_v19  }
 0x3d9   : > { %3591 = vperm.xlu1 %7177, %v3588_v22  }
 0x3dd   : > { %3982 = vperm.xlu1 %7177, %v3979_v1  }
 0x3e1   : > { %4367 = vperm.xlu1 %7177, %v4363_v24  }
 0x3e5   : > { %4372 = vperm.xlu1 %7177, %v4364_v25  }
 0x3e9   : > { %4793 = vperm.xlu1 %7177, %v4787_v26  }
 0x3ed   : > { %4798 = vperm.xlu1 %7177, %v4788_v27  }
 0x3f1   : > { %4803 = vperm.xlu1 %7177, %v4789_v30  }
 0x3f5   : > { %4808 = vperm.xlu1 %7177, %v4790_v31  }
 0x3f9   : > { %5305 = vperm.xlu1 %7177, %v5296_v35  }
 0x3fd   : > { %5310 = vperm.xlu1 %7177, %v5297_v36  }
 0x401   : > { %5315 = vperm.xlu1 %7177, %v5298_v40  }
 0x405   : > { %5325 = vperm.xlu1 %7177, %v5300_v43  }
 0x409   : > { %5335 = vperm.xlu1 %7177, %v5302_v44   ;;  %v1880_v44 = vmul.f32 %v7755_v42, %v7687_v33  ;;  %v1881_v42 = vmul.f32 %v7757_v47, %v7690_v34  ;;  %v6083_v34 = vld [vmem:[%s8362_s18] ss:$0 sm:$0xff]  ;;  %s8370_s18 = sld [smem:[#allocation33_spill]] }
 0x436   : > { %v6495_v49 = vpop.f32.mrb[14].mxu1 }
 0x437   : > { %v2364_v50 = vadd.f32 %v6495_v49, %v7700_v53  ;;  %v2358_v59 = vpop.f32.mrb[15].mxu1  ;;  %v7824_v53 = vmul.f32 %v7626_v10, %v1817_v57  ;;  %v7861_v49 = vmul.f32 %v7697_v52, %v1880_v44  ;;  %v3247_v44 = vld [vmem:[%s8367_s10 + $0x18] sm:$0xff] }
 0x438   : > { %v2359_v60 = vadd.f32 %v2358_v59, %v7744_v37 }
 0x43a   : > { %v6960_v4 = vpack.c.bf16 %v2364_v50, %v2359_v60  ;;  %v6498_v6 = vpop.f32.mrb[16].mxu1 }
 0x43b   : > { %v2374_v7 = vadd.f32 %v6498_v6, %v7704_v56  ;;  %v2368_v62 = vpop.f32.mrb[17].mxu1  ;;  %v1819_v56 = vmul.f32 %v7724_v12, %v7622_v55  ;;  %v6073_v12 = vld [vmem:[%s8360_s15] ss:$0 sm:$0xff]  ;;  %v7871_v6 = vmul.f32 %v7697_v52, %v1881_v42  ;;  %s8368_s15 = sld [smem:[#allocation10_spill]] }
 0x43c   : > { %v2369_v45 = vadd.f32 %v2368_v62, %v7702_v54  ;;  %6961 = vmatprep.subr.bf16.mxu1 %v6960_v4  ;;  %v7829_v54 = vmul.f32 %v7626_v10, %v1818_v17 }
 0x43d   : > { %6963 = vmatpush3.bf16.msra.mxu1 %v6960_v4  ;;  %v7836_v46 = vmul.f32 %v7626_v10, %v1819_v56  ;;  %v2588_v10 = vld [vmem:[%s8359_s11] sm:$0xff] }
 0x43e   : > { %v6964_v13 = vpack.c.bf16 %v2374_v7, %v2369_v45  ;;  %v2764_v7 = vld [vmem:[%s8361_s16] sm:$0xff]  ;;  %s8369_s16 = sld [smem:[#allocation11_spill]] }
 0x43f   : > { %v2855_v56 = vld [vmem:[%s8363_s23] sm:$0xff]  ;;  %s8371_s23 = sld [smem:[#allocation13_spill]] }
 0x440   : > { %6965 = vmatprep.subr.bf16.mxu1 %v6964_v13 }
 0x441   : > { %6967 = vmatpush3.bf16.msra.mxu1 %v6964_v13 }
 0x444   : > { %6508 = vmatmul.mubr.msk.f32.vlgmr.msra.gmra.mrb[18].mxu1 %vm1748_vm2, %v7824_v53 }
 0x445   : > { %6510 = vmatprep.mubr.msk.f32.mxu1 %vm1748_vm2, %v7829_v54 }
 0x448   : > { %6511 = vmatmul.mubr.msk.f32.gmra.mrb[20].mxu1 %vm1748_vm2, %v7836_v46 }
 0x449   : > { %6529 = vmatprep.mubr.msk.f32.mxu1 %vm1748_vm2, %v2588_v10  ;;  %v2860_v10 = vpop.permute.xlu1 %2859 }
 0x517   : > { %v6509_v51 = vpop.f32.mrb[18].mxu1 }
 0x518   : > { %v2455_v55 = vpop.f32.mrb[19].mxu1 }
 0x519   : > { %6515 = vmatprep.mubr.msk.f32.mxu0 %vm2482_vm8, %v2455_v55  ;;  %v3009_v55 = vld [vmem:[%s8364_s28 + $0x8] sm:$0xff] }
 0x51a   : > { %6516 = vmatmul.mubr.msk.f32.vlgmr.msra.gmra.mrb[14].mxu0 %vm2482_vm8, %v6509_v51  ;;  %v3008_v51 = vld [vmem:[%s8364_s28] sm:$0xff] }
 0x51b   : > { %v6512_v61 = vpop.f32.mrb[20].mxu1 }
 0x51c   : > { %v2465_v5 = vpop.f32.mrb[21].mxu1 }
 0x51d   : > { %6518 = vmatprep.mubr.msk.f32.mxu0 %vm2482_vm8, %v2465_v5  ;;  %v1932_v5 = vmul.f32 %v7795_v15, %v7730_v16 }
 0x51e   : > { %6519 = vmatmul.mubr.msk.f32.gmra.mrb[16].mxu0 %vm2482_vm8, %v6512_v61  ;;  %v6984_v61 = vpack.c.bf16 %v3009_v55, %v3008_v51  ;;  %v3412_v51 = vld [vmem:[%s8369_s16 + $0x18] sm:$0xff] }
 0x51f   : > { %6548 = vmatprep.mubr.msk.f32.mxu0 %vm7254_vm1, %v7253_v41 }
 0x5ed   : > { %v6517_v37 = vpop.f32.mrb[14].mxu0 }
 0x5ee   : > { %v2571_v19 = vadd.f32 %v6517_v37, %v6073_v12  ;;  %v2565_v22 = vpop.f32.mrb[15].mxu0 }
 0x5ef   : > { %v2566_v1 = vadd.f32 %v6073_v12, %v2565_v22  ;;  %v7896_v22 = vmul.f32 %v7738_v14, %v1932_v5  ;;  %v6088_v14 = vld [vmem:[%s8365_s1] ss:$0 sm:$0xff]  ;;  %v3414_v5 = vld [vmem:[%s8369_s16 + $0x28] sm:$0xff]  ;;  %s8372_s1 = sld [smem:[#allocation12_spill]] }
 0x5f0   : > { %v2585_v24 = vmax.f32 %v2571_v19, 0.0 }
 0x5f1   : > { %v2584_v25 = vmax.f32 %v2566_v1, 0.0  ;;  %v6520_v26 = vpop.f32.mrb[16].mxu0 }
 0x5f2   : > { %v2581_v27 = vadd.f32 %v6520_v26, %v6073_v12  ;;  %v2575_v30 = vpop.f32.mrb[17].mxu0 }
 0x5f3   : > { %v7849_v31 = vpack.c.bf16 %v2585_v24, %v2584_v25  ;;  %v2576_v35 = vadd.f32 %v6073_v12, %v2575_v30  ;;  %v3244_v30 = vld [vmem:[%s8367_s10] sm:$0xff] }
 0x5f4   : > { %v2587_v36 = vmax.f32 %v2581_v27, 0.0  ;;  %v3091_v27 = vld [vmem:[%s8366_s2] sm:$0xff]  ;;  %s8373_s2 = sld [smem:[#allocation14_spill]] }
 0x5f5   : > { %v2586_v40 = vmax.f32 %v2576_v35, 0.0  ;;  %6969 = vmatprep.subr.bf16.mxu1 %v7849_v31  ;;  %v3245_v35 = vld [vmem:[%s8367_s10 + $0x8] sm:$0xff] }
 0x5f6   : > { %6971 = vmatpush3.bf16.msra.mxu1 %v7849_v31 }
 0x5f7   : > { %v7853_v43 = vpack.c.bf16 %v2587_v36, %v2586_v40  ;;  %v3246_v36 = vld [vmem:[%s8367_s10 + $0x10] sm:$0xff]  ;;  %v6987_v40 = vpack.c.bf16 %v3245_v35, %v3244_v30 }
 0x5f8   : > { %v3501_v35 = vld [vmem:[%s8371_s23 + $0x10] sm:$0xf] }
 0x5f9   : > { %6973 = vmatprep.subr.bf16.mxu1 %v7853_v43 }
 0x5fa   : > { %6975 = vmatpush3.bf16.msra.mxu1 %v7853_v43 }
 0x5fd   : > { %6530 = vmatmul.mubr.msk.f32.vlgmr.msra.gmra.mrb[22].mxu1 %vm1748_vm2, %v2589_v48  ;;  %v6990_v48 = vpack.c.bf16 %v3247_v44, %v3246_v36  ;;  %v6095_v36 = vld [vmem:[%s8372_s1] ss:$0 sm:$0xff]  ;;  %s8376_s1 = sld [smem:[#allocation15_spill]] }
 0x5fe   : > { %6536 = vmatprep.mubr.msk.f32.mxu1 %vm1826_vm3, %v7861_v49 }
 0x6d0   : > { %v6531_v50 = vpop.f32.mrb[22].mxu1 }
 0x6d1   : > { %v2680_v59 = vadd.f32 %v6531_v50, %v7751_v39  ;;  %v2674_v60 = vpop.f32.mrb[23].mxu1  ;;  %v1979_v50 = vpop.permute.xlu1 %1978 }
 0x6d2   : > { %v2675_v33 = vadd.f32 %v2674_v60, %v7746_v28 }
 0x6d4   : > { %v6976_v4 = vpack.c.bf16 %v2680_v59, %v2675_v33  ;;  %v1981_v59 = vmul.f32 %v1979_v50, %v7749_v38 }
 0x6d5   : > { %v3096_v60 = vpop.permute.xlu1 %3095 }
 0x6d6   : > { %6977 = vmatprep.subr.bf16.mxu1 %v6976_v4 }
 0x6d7   : > { %6979 = vmatpush3.bf16.msra.mxu1 %v6976_v4 }
 0x6d8   : > { %6539 = vmatprep.subr.mxu1 %v2764_v7 }
 0x6da   : > { %6537 = vmatmul.mubr.msk.f32.vlgmr.msra.gmra.mrb[24].mxu1 %vm1826_vm3, %v7871_v6 }
 0x6db   : > { %6540 = vmatpush3.msra.mxu1 %v2764_v7  ;;  %v7925_v7 = vmul.f32 %v7762_v23, %v1981_v59  ;;  %v6092_v23 = vld [vmem:[%s8368_s15] ss:$0 sm:$0xff]  ;;  %s8374_s15 = sld [smem:[#allocation34_spill]] }
 0x6dc   : > { %6551 = vmatprep.subr.mxu1 %v7253_v41  ;;  %v6097_v59 = vld [vmem:[%s8373_s2] ss:$0 sm:$0xff]  ;;  %s8377_s2 = sld [smem:[#allocation17_spill]] }
 0x7ad   : > { %v6538_v28 = vpop.f32.mrb[24].mxu1 }
 0x7ae   : > { %v2755_v39 = vpop.f32.mrb[25].mxu1 }
 0x7af   : > { %6541 = vmatprep.mubr.msk.f32.mxu1 %vm1885_vm6, %v2755_v39 }
 0x7b0   : > { %6542 = vmatmul.mubr.msk.f32.vlgmr.msra.gmra.mrb[26].mxu1 %vm1885_vm6, %v6538_v28 }
 0x7b1   : > { %6553 = vmatprep.mubr.msk.f32.mxu1 %vm7254_vm1, %v7253_v41 }
 0x883   : > { %v6543_v52 = vpop.f32.mrb[26].mxu1 }
 0x884   : > { %v2850_v47 = vadd.f32 %v6543_v52, %v6083_v34  ;;  %v2844_v62 = vpop.f32.mrb[27].mxu1  ;;  %v3410_v52 = vld [vmem:[%s8369_s16 + $0x8] sm:$0xff] }
 0x885   : > { %v2845_v45 = vadd.f32 %v6083_v34, %v2844_v62  ;;  %v3409_v34 = vld [vmem:[%s8369_s16] sm:$0xff] }
 0x886   : > { %v2854_v57 = vmax.f32 %v2850_v47, 0.0 }
 0x887   : > { %v2853_v13 = vmax.f32 %v2845_v45, 0.0 }
 0x889   : > { %v7882_v17 = vpack.c.bf16 %v2854_v57, %v2853_v13  ;;  %v3329_v57 = vld [vmem:[%s8370_s18] sm:$0xff]  ;;  %v6993_v13 = vpack.c.bf16 %v3410_v52, %v3409_v34  ;;  %s8375_s18 = sld [smem:[#allocation16_spill]] }
 0x88b   : > { %6982 = vmatpush3.bf16.msra.mxu0 %v7882_v17 }
 0x88c   : > { %6983 = vmatprep.subr.bf16.mxu0 %v7252_v29 }
 0x88e   : > { %6549 = vmatmul.mubr.msk.f32.vlgmr.msra.gmra.mrb[18].mxu0 %vm1826_vm3, %v2855_v56  ;;  %v3411_v56 = vld [vmem:[%s8369_s16 + $0x10] sm:$0xff] }
 0x88f   : > { %6560 = vmatprep.mubr.msk.f32.mxu0 %vm7254_vm1, %v7253_v41  ;;  %6985 = vmatpush3.bf16.msra.mxu0 %v6984_v61  ;;  %v6996_v55 = vpack.c.bf16 %v3412_v51, %v3411_v56  ;;  %v3413_v61 = vld [vmem:[%s8369_s16 + $0x20] sm:$0xff]  ;;  %v3818_v52 = vld [vmem:[%s8375_s18 + $0x18] sm:$0xff] }
 0x890   : > { %6568 = vmatprep.subr.mxu0 %v7253_v41  ;;  %v3822_v56 = vld [vmem:[%s8375_s18 + $0x38] sm:$0xff] }
 0x961   : > { %v2931_v12 = vpop.f32.mrb[18].mxu0 }
 0x962   : > { %v2932_v37 = vadd.f32 %v2931_v12, %v2860_v10  ;;  %v6550_v19 = vpop.f32.mrb[19].mxu0  ;;  %v6999_v10 = vpack.c.bf16 %v3414_v5, %v3413_v61  ;;  %v3415_v12 = vld [vmem:[%s8369_s16 + $0x30] sm:$0xff]  ;;  %v3808_v61 = vld [vmem:[%s8376_s1 + $0x8] sm:$0xff]  ;;  %v3592_v5 = vpop.permute.xlu1 %3591 }
 0x964   : > { %6552 = vmatpush3.msra.mxu1 %v2932_v37  ;;  %v3416_v37 = vld [vmem:[%s8369_s16 + $0x38] sm:$0xff] }
 0x965   : > { %6554 = vmatmul.mubr.msk.f32.vlgmr.msra.gmra.mrb[28].mxu1 %vm1885_vm6, %v7896_v22  ;;  %6563 = vmatprep.subr.mxu1 %v7253_v41  ;;  %v7002_v19 = vpack.c.bf16 %v3416_v37, %v3415_v12 }
 0x966   : > { %6565 = vmatprep.mubr.msk.f32.mxu1 %vm7254_vm1, %v7253_v41 }
 0xa38   : > { %v3004_v16 = vpop.f32.mrb[28].mxu1 }
 0xa39   : > { %v6555_v15 = vpop.f32.mrb[29].mxu1  ;;  %6561 = vmatmul.mubr.msk.f32.vlgmr.msra.gmra.mrb[20].mxu0 %vm1826_vm3, %v3004_v16  ;;  %v3334_v16 = vpop.permute.xlu0 %3333 }
 0xa3a   : > { %6570 = vmatprep.mubr.msk.f32.mxu0 %vm7254_vm1, %v7253_v41 }
 0xb0c   : > { %v3086_v1 = vpop.f32.mrb[20].mxu0 }
 0xb0d   : > { %v7907_v24 = vadd.f32 %v6088_v14, %v3086_v1  ;;  %v6562_v25 = vpop.f32.mrb[21].mxu0 }
 0xb0e   : > { %v3499_v25 = vld [vmem:[%s8371_s23] sm:$0xff] }
 0xb0f   : > { %v3090_v26 = vmax.f32 %v7907_v24, 0.0 }
 0xb11   : > { %6564 = vmatpush3.msra.mxu1 %v3090_v26 }
 0xb12   : > { %6566 = vmatmul.mubr.msk.f32.vlgmr.msra.gmra.mrb[30].mxu1 %vm1885_vm6, %v3091_v27  ;;  %6986 = vmatprep.subr.bf16.mxu1 %v7252_v29  ;;  %v3500_v27 = vld [vmem:[%s8371_s23 + $0x8] sm:$0xff] }
 0xb13   : > { %6581 = vmatprep.mubr.msk.f32.mxu1 %vm7254_vm1, %v7253_v41  ;;  %6988 = vmatpush3.bf16.msra.mxu1 %v6987_v40  ;;  %v7005_v30 = vpack.c.bf16 %v3500_v27, %v3499_v25  ;;  %v3811_v27 = vld [vmem:[%s8376_s1 + $0x20] sm:$0xff] }
 0xb14   : > { %6989 = vmatprep.subr.bf16.mxu1 %v7252_v29 }
 0xb17   : > { %6991 = vmatpush3.bf16.msra.mxu1 %v6990_v48 }
 0xb18   : > { %7004 = vmatprep.subr.bf16.mxu1 %v7252_v29 }
 0xbe5   : > { %v3167_v33 = vpop.f32.mrb[30].mxu1 }
 0xbe6   : > { %v3168_v42 = vadd.f32 %v3167_v33, %v3096_v60  ;;  %v6567_v4 = vpop.f32.mrb[31].mxu1 }
 0xbe8   : > { %6569 = vmatpush3.msra.mxu0 %v3168_v42 }
 0xbe9   : > { %6571 = vmatmul.mubr.msk.f32.vlgmr.msra.gmra.mrb[22].mxu0 %vm1885_vm6, %v7925_v7  ;;  %6584 = vmatprep.subr.mxu0 %v7253_v41 }
 0xbea   : > { %6586 = vmatprep.mubr.msk.f32.mxu0 %vm7254_vm1, %v7253_v41 }
 0xcbc   : > { %v3240_v38 = vpop.f32.mrb[22].mxu0 }
 0xcbd   : > { %v6572_v28 = vpop.f32.mrb[23].mxu0  ;;  %6582 = vmatmul.mubr.msk.f32.vlgmr.msra.gmra.mrb[32].mxu1 %vm1748_vm2, %v3240_v38  ;;  %v3587_v38 = vld [vmem:[%s8374_s15] sm:$0xff]  ;;  %s8378_s15 = sld [smem:[#allocation36_spill]] }
 0xcbe   : > { %6614 = vmatprep.mubr.msk.f32.mxu1 %vm7254_vm1, %v7253_v41  ;;  %7006 = vmatpush3.bf16.msra.mxu1 %v7005_v30  ;;  %v3815_v28 = vld [vmem:[%s8375_s18] sm:$0xff]  ;;  %v3812_v30 = vld [vmem:[%s8376_s1 + $0x28] sm:$0xff] }
 0xcbf   : > { %6612 = vmatprep.subr.mxu1 %v7253_v41 }
 0xcc2   : > { %6613 = vmatpush3.msk.msra.mxu1 %vm2495_vm7, %v3501_v35  ;;  %v7026_v35 = vpack.c.bf16 %v3812_v30, %v3811_v27 }
 0xcc3   : > { %6617 = vmatprep.subr.mxu1 %v7253_v41 }
 0xd90   : > { %v3324_v39 = vpop.f32.mrb[32].mxu1 }
 0xd91   : > { %v3325_v47 = vadd.f32 %v6092_v23, %v3324_v39  ;;  %v6583_v62 = vpop.f32.mrb[33].mxu1  ;;  %v3816_v23 = vld [vmem:[%s8375_s18 + $0x8] sm:$0xff]  ;;  %v3817_v39 = vld [vmem:[%s8375_s18 + $0x10] sm:$0xff] }
 0xd92   : > { %v7008_v34 = vpack.c.bf16 %v3816_v23, %v3815_v28  ;;  %v3819_v62 = vld [vmem:[%s8375_s18 + $0x20] sm:$0xff] }
 0xd93   : > { %v3328_v45 = vmax.f32 %v3325_v47, 0.0  ;;  %v7011_v47 = vpack.c.bf16 %v3818_v52, %v3817_v39  ;;  %v3978_v23 = vld [vmem:[%s8378_s15] sm:$0xff]  ;;  %v4204_v52 = vld [vmem:[%s8379_s26 + $0x10] sm:$0xff]  ;;  %s8382_s15 = sld [smem:[#allocation20_spill]] }
 0xd94   : > { %v4202_v39 = vld [vmem:[%s8379_s26] sm:$0xff] }
 0xd95   : > { %6585 = vmatpush3.msra.mxu0 %v3328_v45 }
 0xd96   : > { %6587 = vmatmul.mubr.msk.f32.vlgmr.msra.gmra.mrb[24].mxu0 %vm1885_vm6, %v3329_v57  ;;  %6992 = vmatprep.subr.bf16.mxu0 %v7252_v29 }
 0xd97   : > { %6994 = vmatpush3.bf16.msra.mxu0 %v6993_v13  ;;  %6605 = vmatprep.mubr.msk.f32.mxu0 %vm7254_vm1, %v7253_v41  ;;  %v3821_v13 = vld [vmem:[%s8375_s18 + $0x30] sm:$0xff] }
 0xd98   : > { %6995 = vmatprep.subr.bf16.mxu0 %v7252_v29  ;;  %v7017_v51 = vpack.c.bf16 %v3822_v56, %v3821_v13  ;;  %v3983_v56 = vpop.permute.xlu1 %3982 }
 0xd99   : > { %v6111_v27 = vld [vmem:[%s8382_s15] ss:$0 sm:$0xff]  ;;  %s8385_s15 = sld [smem:[#allocation40_spill]] }
 0xd9b   : > { %6997 = vmatpush3.bf16.msra.mxu0 %v6996_v55  ;;  %v3807_v55 = vld [vmem:[%s8376_s1] sm:$0xff] }
 0xd9c   : > { %6998 = vmatprep.subr.bf16.mxu0 %v7252_v29 }
 0xd9f   : > { %7000 = vmatpush3.bf16.msra.mxu0 %v6999_v10 }
 0xda0   : > { %7001 = vmatprep.subr.bf16.mxu0 %v7252_v29 }
 0xda3   : > { %7003 = vmatpush3.bf16.msra.mxu0 %v7002_v19  ;;  %v7020_v19 = vpack.c.bf16 %v3808_v61, %v3807_v55 }
 0xda4   : > { %7007 = vmatprep.subr.bf16.mxu0 %v7252_v29 }
 0xe69   : > { %v3405_v15 = vpop.f32.mrb[24].mxu0 }
 0xe6a   : > { %v3406_v14 = vadd.f32 %v3405_v15, %v3334_v16  ;;  %v6588_v1 = vpop.f32.mrb[25].mxu0  ;;  %v3809_v16 = vld [vmem:[%s8376_s1 + $0x10] sm:$0xff]  ;;  %v3810_v15 = vld [vmem:[%s8376_s1 + $0x18] sm:$0xff] }
 0xe6b   : > { %v7023_v25 = vpack.c.bf16 %v3810_v15, %v3809_v16 }
 0xe6c   : > { %6606 = vmatmul.mubr.msk.f32.vlgmr.msra.gmra.mrb[26].mxu0 %vm3424_vm9, %v3406_v14 }
 0xe6d   : > { %6648 = vmatprep.mubr.msk.f32.mxu0 %vm7254_vm1, %v7253_v41  ;;  %7009 = vmatpush3.bf16.msra.mxu0 %v7008_v34  ;;  %v4203_v34 = vld [vmem:[%s8379_s26 + $0x8] sm:$0xff] }
 0xe6e   : > { %7010 = vmatprep.subr.bf16.mxu0 %v7252_v29 }
 0xe71   : > { %7012 = vmatpush3.bf16.msra.mxu0 %v7011_v47  ;;  %v7032_v47 = vpack.c.bf16 %v4203_v34, %v4202_v39 }
 0xe72   : > { %7013 = vmatprep.subr.bf16.mxu0 %v7252_v29 }
 0xf3f   : > { %v3494_v40 = vpop.f32.mrb[26].mxu0 }
 0xf40   : > { %v3495_v44 = vadd.f32 %v6095_v36, %v3494_v40  ;;  %v6607_v48 = vpop.f32.mrb[27].mxu0  ;;  %v3813_v36 = vld [vmem:[%s8376_s1 + $0x30] sm:$0xff]  ;;  %v3814_v40 = vld [vmem:[%s8376_s1 + $0x38] sm:$0xff]  ;;  %s8380_s1 = sld [smem:[#allocation18_spill]] }
 0xf42   : > { %v3498_v50 = vmax.f32 %v3495_v44, 0.0 }
 0xf44   : > { %6615 = vmatmul.mubr.msk.f32.vlgmr.msra.gmra.mrb[34].mxu1 %vm3509_vm10, %v3498_v50 }
 0xf45   : > { %6619 = vmatprep.mubr.msk.f32.mxu1 %vm7254_vm1, %v7253_v41 }
 0xf46   : > { %v4199_v13 = vld [vmem:[%s8380_s1 + $0x8] sm:$0xff] }
0x1017   : > { %v3582_v60 = vpop.f32.mrb[34].mxu1 }
0x1018   : > { %v3583_v33 = vadd.f32 %v6097_v59, %v3582_v60  ;;  %v6616_v42 = vpop.f32.mrb[35].mxu1 }
0x101a   : > { %v3586_v4 = vmax.f32 %v3583_v33, 0.0  ;;  %v6105_v33 = vld [vmem:[%s8377_s2] ss:$0 sm:$0xff]  ;;  %s8381_s2 = sld [smem:[#allocation38_spill]] }
0x101c   : > { %6618 = vmatpush3.msra.mxu1 %v3586_v4 }
0x101d   : > { %6620 = vmatmul.mubr.msk.f32.vlgmr.msra.gmra.mrb[36].mxu1 %vm1885_vm6, %v3587_v38  ;;  %6622 = vmatprep.subr.mxu1 %v7253_v41 }
0x101e   : > { %6623 = vmatpush3.msra.mxu1 %v3328_v45  ;;  %6624 = vmatprep.mubr.msk.f32.mxu1 %vm7254_vm1, %v7253_v41  ;;  %v3820_v45 = vld [vmem:[%s8375_s18 + $0x28] sm:$0xff] }
0x101f   : > { %6627 = vmatprep.subr.mxu1 %v7253_v41  ;;  %v7014_v57 = vpack.c.bf16 %v3820_v45, %v3819_v62  ;;  %v4205_v62 = vld [vmem:[%s8379_s26 + $0x18] sm:$0xff] }
0x1020   : > { %v7035_v45 = vpack.c.bf16 %v4205_v62, %v4204_v52 }
0x1021   : > { %6625 = vmatmul.mubr.msk.f32.vlgmr.msra.gmra.mrb[38].mxu1 %vm1885_vm6, %v7925_v7  ;;  %7015 = vmatpush3.bf16.msra.mxu0 %v7014_v57  ;;  %v4198_v57 = vld [vmem:[%s8380_s1] sm:$0xff] }
0x1022   : > { %6629 = vmatprep.mubr.msk.f32.mxu1 %vm7254_vm1, %v7253_v41  ;;  %7016 = vmatprep.subr.bf16.mxu0 %v7252_v29 }
0x1025   : > { %7018 = vmatpush3.bf16.msra.mxu0 %v7017_v51 }
0x1026   : > { %6670 = vmatprep.subr.mxu0 %v7253_v41 }
0x10f0   : > { %v3663_v10 = vpop.f32.mrb[36].mxu1 }
0x10f1   : > { %v3664_v12 = vadd.f32 %v3663_v10, %v3592_v5  ;;  %v6621_v37 = vpop.f32.mrb[37].mxu1  ;;  %v7038_v5 = vpack.c.bf16 %v4199_v13, %v4198_v57  ;;  %v4200_v10 = vld [vmem:[%s8380_s1 + $0x10] sm:$0xff] }
0x10f3   : > { %6628 = vmatpush3.msra.mxu1 %v3664_v12  ;;  %v4201_v12 = vld [vmem:[%s8380_s1 + $0x18] sm:$0xff]  ;;  %s8383_s1 = sld [smem:[#allocation22_spill]] }
0x10f4   : > { %v3733_v14 = vpop.f32.mrb[38].mxu1  ;;  %6630 = vmatmul.mubr.msk.f32.vlgmr.msra.gmra.mrb[40].mxu1 %vm1885_vm6, %v7925_v7  ;;  %7019 = vmatprep.subr.bf16.mxu1 %v7252_v29  ;;  %v7029_v7 = vpack.c.bf16 %v3814_v40, %v3813_v36  ;;  %v7041_v37 = vpack.c.bf16 %v4201_v12, %v4200_v10 }
0x10f5   : > { %v6626_v1 = vpop.f32.mrb[39].mxu1  ;;  %7021 = vmatpush3.bf16.msra.mxu1 %v7020_v19  ;;  %6667 = vmatprep.mubr.msk.f32.mxu1 %vm7254_vm1, %v7253_v41 }
0x10f6   : > { %7022 = vmatprep.subr.bf16.mxu1 %v7252_v29 }
0x10f9   : > { %7024 = vmatpush3.bf16.msra.mxu1 %v7023_v25  ;;  %v4361_v25 = vld [vmem:[%s8381_s2] sm:$0xff] }
0x10fa   : > { %7025 = vmatprep.subr.bf16.mxu1 %v7252_v29 }
0x10fd   : > { %7027 = vmatpush3.bf16.msra.mxu1 %v7026_v35 }
0x10fe   : > { %7028 = vmatprep.subr.bf16.mxu1 %v7252_v29 }
0x1101   : > { %7030 = vmatpush3.bf16.msra.mxu1 %v7029_v7  ;;  %v4362_v7 = vld [vmem:[%s8381_s2 + $0x8] sm:$0xff]  ;;  %s8386_s2 = sld [smem:[#allocation23_spill]] }
0x1102   : > { %6675 = vmatprep.subr.mxu1 %v7253_v41 }
0x1104   : > { %6668 = vmatmul.mubr.msk.f32.vlgmr.msra.gmra.mrb[42].mxu1 %vm3424_vm9, %v3733_v14 }
0x1105   : > { %6676 = vmatpush3.msra.mxu1 %v3090_v26  ;;  %6677 = vmatprep.mubr.msk.f32.mxu1 %vm7254_vm1, %v7253_v41 }
0x1106   : > { %7031 = vmatprep.subr.bf16.mxu1 %v7252_v29 }
0x1107   : > { %v6122_v34 = vld [vmem:[%s8386_s2] ss:$0 sm:$0xff]  ;;  %s8387_s2 = sld [smem:[#allocation25_spill]] }
0x1108   : > { %6678 = vmatmul.mubr.msk.f32.vlgmr.msra.gmra.mrb[44].mxu1 %vm1885_vm6, %v7896_v22 }
0x1109   : > { %6693 = vmatprep.mubr.msk.f32.mxu1 %vm7254_vm1, %v7253_v41  ;;  %7033 = vmatpush3.bf16.msra.mxu1 %v7032_v47 }
0x110a   : > { %7034 = vmatprep.subr.bf16.mxu1 %v7252_v29 }
0x110d   : > { %7036 = vmatpush3.bf16.msra.mxu1 %v7035_v45 }
0x11c7   : > { %v3803_v44 = vpop.f32.mrb[40].mxu1 }
0x11c8   : > { %v6631_v48 = vpop.f32.mrb[41].mxu1  ;;  %6649 = vmatmul.mubr.msk.f32.vlgmr.msra.gmra.mrb[28].mxu0 %vm3424_vm9, %v3803_v44  ;;  %v4608_v44 = vld [vmem:[%s8383_s1] sm:$0xff] }
0x11c9   : > { %6672 = vmatprep.mubr.msk.f32.mxu0 %vm7254_vm1, %v7253_v41  ;;  %v4609_v48 = vld [vmem:[%s8383_s1 + $0x8] sm:$0xff]  ;;  %s8388_s1 = sld [smem:[#allocation24_spill]] }
0x11d7   : > { %v3965_v24 = vpop.f32.mrb[42].mxu1 }
0x11d8   : > { %v6669_v26 = vpop.f32.mrb[43].mxu1 }
0x11d9   : > { %v4368_v26 = vpop.permute.xlu1 %4367 }
0x11db   : > { %v4124_v50 = vpop.f32.mrb[44].mxu1 }
0x11dc   : > { %v6679_v59 = vpop.f32.mrb[45].mxu1 }
0x129b   : > { %v3892_v60 = vpop.f32.mrb[28].mxu0 }
0x129c   : > { %v3966_v42 = vadd.f32 %v3965_v24, %v3892_v60  ;;  %v6650_v4 = vpop.f32.mrb[29].mxu0  ;;  %v7051_v24 = vpack.c.bf16 %v4609_v48, %v4608_v44 }
0x129e   : > { %v3976_v38 = vadd.f32 %v6105_v33, %v3966_v42 }
0x12a0   : > { %v3977_v28 = vmax.f32 %v3976_v38, 0.0  ;;  %v4607_v38 = vld [vmem:[%s8384_s3 + $0x8] sm:$0xff] }
0x12a2   : > { %6671 = vmatpush3.msra.mxu0 %v3977_v28 }
0x12a3   : > { %6673 = vmatmul.mubr.msk.f32.vlgmr.msra.gmra.mrb[30].mxu0 %vm1885_vm6, %v3978_v23  ;;  %6680 = vmatprep.subr.mxu0 %v7253_v41 }
0x12a4   : > { %6682 = vmatprep.mubr.msk.f32.mxu0 %vm7254_vm1, %v7253_v41 }
0x1376   : > { %v4054_v51 = vpop.f32.mrb[30].mxu0 }
0x1377   : > { %v4055_v55 = vadd.f32 %v4054_v51, %v3983_v56  ;;  %v6674_v61 = vpop.f32.mrb[31].mxu0  ;;  %v4784_v51 = vld [vmem:[%s8385_s15 + $0x8] sm:$0xff] }
0x1378   : > { %v4786_v61 = vld [vmem:[%s8385_s15 + $0x18] sm:$0xff] }
0x1379   : > { %6681 = vmatpush3.msra.mxu0 %v4055_v55  ;;  %v4785_v55 = vld [vmem:[%s8385_s15 + $0x10] sm:$0xff] }
0x137a   : > { %6683 = vmatmul.mubr.msk.f32.vlgmr.msra.gmra.mrb[32].mxu0 %vm1885_vm6, %v7896_v22  ;;  %7037 = vmatprep.subr.bf16.mxu0 %v7252_v29 }
0x137b   : > { %7039 = vmatpush3.bf16.msra.mxu0 %v7038_v5  ;;  %6704 = vmatprep.mubr.msk.f32.mxu0 %vm7254_vm1, %v7253_v41 }
0x137c   : > { %7040 = vmatprep.subr.bf16.mxu0 %v7252_v29 }
0x137f   : > { %7042 = vmatpush3.bf16.msra.mxu0 %v7041_v37 }
0x1380   : > { %7044 = vmatprep.subr.bf16.mxu0 %v7882_v17 }
0x1382   : > { %6705 = vmatmul.mubr.msk.f32.vlgmr.msra.gmra.mrb[34].mxu0 %vm1748_vm2, %v4124_v50  ;;  %v4373_v50 = vpop.permute.xlu1 %4372 }
0x1383   : > { %7046 = vmatpush3.bf16.msra.mxu0 %v7882_v17  ;;  %6716 = vmatprep.mubr.msk.f32.mxu0 %vm1826_vm3, %v7861_v49 }
0x1384   : > { %7052 = vmatprep.subr.bf16.mxu0 %v7051_v24 }
0x1386   : > { %6717 = vmatmul.mubr.msk.f32.vlgmr.msra.gmra.mrb[36].mxu0 %vm1826_vm3, %v7871_v6 }
0x1387   : > { %7054 = vmatpush3.bf16.msra.mxu0 %v7051_v24 }
0x144d   : > { %v4194_v22 = vpop.f32.mrb[32].mxu0 }
0x144e   : > { %v6684_v19 = vpop.f32.mrb[33].mxu0  ;;  %6694 = vmatmul.mubr.msk.f32.vlgmr.msra.gmra.mrb[46].mxu1 %vm1748_vm2, %v4194_v22 }
0x144f   : > { %6709 = vmatprep.mubr.msk.f32.mxu1 %vm1885_vm6, %v4361_v25 }
0x1455   : > { %v4348_v16 = vpop.f32.mrb[34].mxu0 }
0x1456   : > { %v6706_v15 = vpop.f32.mrb[35].mxu0 }
0x1459   : > { %v6718_v14 = vpop.f32.mrb[36].mxu0 }
0x145a   : > { %v4522_v1 = vpop.f32.mrb[37].mxu0 }
0x1521   : > { %v4275_v17 = vpop.f32.mrb[46].mxu1 }
0x1522   : > { %v4349_v30 = vadd.f32 %v4348_v16, %v4275_v17  ;;  %v6695_v35 = vpop.f32.mrb[47].mxu1 }
0x1524   : > { %v4359_v36 = vadd.f32 %v6111_v27, %v4349_v30 }
0x1526   : > { %v4360_v40 = vmax.f32 %v4359_v36, 0.0  ;;  %v5079_v36 = vld [vmem:[%s8387_s2] sm:$0xff]  ;;  %s8390_s2 = sld [smem:[#allocation28_spill]] }
0x1528   : > { %6707 = vmatprep.subr.mxu1 %v4360_v40 }
0x1529   : > { %6708 = vmatpush3.msra.mxu1 %v4360_v40  ;;  %v5078_v40 = vld [vmem:[%s8388_s1] sm:$0xff]  ;;  %s8389_s1 = sld [smem:[#allocation26_spill]] }
0x152a   : > { %6710 = vmatmul.mubr.msk.f32.vlgmr.msra.gmra.mrb[48].mxu1 %vm1885_vm6, %v4362_v7 }
0x152b   : > { %6723 = vmatprep.mubr.msk.f32.mxu1 %vm1826_vm3, %v7861_v49  ;;  %v4606_v49 = vld [vmem:[%s8384_s3] sm:$0xff] }
0x152c   : > { %v7055_v28 = vpack.c.bf16 %v4607_v38, %v4606_v49  ;;  %v5289_v38 = vld [vmem:[%s7528_s24] sm:$0xff] }
0x152e   : > { %7056 = vmatprep.subr.bf16.mxu0 %v7055_v28 }
0x15fd   : > { %v6711_v59 = vpop.f32.mrb[48].mxu1 }
0x15fe   : > { %v4453_v60 = vadd.f32 %v6711_v59, %v4373_v50  ;;  %v4447_v33 = vpop.f32.mrb[49].mxu1 }
0x15ff   : > { %v4448_v42 = vadd.f32 %v4447_v33, %v4368_v26 }
0x1601   : > { %v7047_v4 = vpack.c.bf16 %v4453_v60, %v4448_v42 }
0x1603   : > { %7048 = vmatprep.subr.bf16.mxu1 %v7047_v4 }
0x1604   : > { %7050 = vmatpush3.bf16.msra.mxu1 %v7047_v4 }
0x1607   : > { %6724 = vmatmul.mubr.msk.f32.vlgmr.msra.gmra.mrb[50].mxu1 %vm1826_vm3, %v7871_v6  ;;  %v4783_v6 = vld [vmem:[%s8385_s15] sm:$0xff] }
0x1608   : > { %6744 = vmatprep.mubr.msk.f32.mxu1 %vm1826_vm3, %v4783_v6 }
0x16da   : > { %v6725_v23 = vpop.f32.mrb[50].mxu1 }
0x16db   : > { %v4597_v39 = vpop.f32.mrb[51].mxu1 }
0x16dc   : > { %6730 = vmatprep.mubr.msk.f32.mxu0 %vm1826_vm3, %v4597_v39  ;;  %v5290_v39 = vld [vmem:[%s7528_s24 + $0x8] sm:$0xff] }
0x16dd   : > { %6731 = vmatmul.mubr.msk.f32.vlgmr.msra.gmra.mrb[38].mxu0 %vm1826_vm3, %v6725_v23 }
0x16de   : > { %6737 = vmatprep.mubr.msk.f32.mxu0 %vm1826_vm3, %v4522_v1  ;;  %7058 = vmatpush3.bf16.msra.mxu0 %v7055_v28 }
0x16e5   : > { %6738 = vmatmul.mubr.msk.f32.vlgmr.msra.gmra.mrb[38].mxu0 %vm1826_vm3, %v6718_v14 }
0x16e6   : > { %6772 = vmatprep.mubr.msk.f32.mxu0 %vm1748_vm2, %v7787_v9 }
0x17b8   : > { %v6739_v52 = vpop.f32.mrb[38].mxu0 }
0x17b9   : > { %v4780_v47 = vadd.f32 %v6739_v52, %v6122_v34  ;;  %v4763_v62 = vpop.f32.mrb[39].mxu0  ;;  %v5291_v52 = vld [vmem:[%s7528_s24 + $0x10] sm:$0xff] }
0x17ba   : > { %v4779_v45 = vadd.f32 %v6122_v34, %v4763_v62 }
0x17bb   : > { %v4782_v57 = vmax.f32 %v4780_v47, 0.0 }
0x17bc   : > { %v4781_v13 = vmax.f32 %v4779_v45, 0.0  ;;  %v5292_v45 = vld [vmem:[%s7528_s24 + $0x18] sm:$0xff] }
0x17be   : > { %v7059_v56 = vpack.c.bf16 %v4782_v57, %v4781_v13 }
0x17c0   : > { %7060 = vmatprep.subr.bf16.mxu1 %v7059_v56 }
0x17c1   : > { %7062 = vmatpush3.bf16.msra.mxu1 %v7059_v56  ;;  %v5293_v56 = vld [vmem:[%s7528_s24 + $0x20] sm:$0xff] }
0x17c2   : > { %7064 = vmatprep.subr.bf16.mxu1 %v7849_v31 }
0x17c4   : > { %6745 = vmatmul.mubr.msk.f32.vlgmr.msra.gmra.mrb[52].mxu1 %vm1826_vm3, %v4784_v51 }
0x17c5   : > { %7066 = vmatpush3.bf16.msra.mxu1 %v7849_v31  ;;  %6747 = vmatprep.mubr.msk.f32.mxu1 %vm1826_vm3, %v4785_v55  ;;  %v4794_v31 = vpop.permute.xlu1 %4793 }
0x17c6   : > { %7068 = vmatprep.subr.bf16.mxu1 %v7853_v43 }
0x17c8   : > { %6748 = vmatmul.mubr.msk.f32.gmra.mrb[54].mxu1 %vm1826_vm3, %v4786_v61  ;;  %v5294_v61 = vld [vmem:[%s7528_s24 + $0x28] sm:$0xff] }
0x17c9   : > { %7070 = vmatpush3.bf16.msra.mxu1 %v7853_v43  ;;  %6758 = vmatprep.mubr.msk.f32.mxu1 %vm1748_vm2, %v7787_v9  ;;  %v4799_v5 = vpop.permute.xlu1 %4798 }
0x17ca   : > { %6778 = vmatprep.subr.mxu1 %v5079_v36 }
0x17cc   : > { %6759 = vmatmul.mubr.msk.f32.vlgmr.msra.gmra.mrb[56].mxu1 %vm1748_vm2, %v7824_v53 }
0x17cd   : > { %6761 = vmatprep.mubr.msk.f32.mxu1 %vm1748_vm2, %v7829_v54  ;;  %v4804_v10 = vpop.permute.xlu1 %4803  ;;  %6779 = vmatpush3.msra.mxu1 %v5079_v36 }
0x17ce   : > { %6786 = vmatprep.subr.mxu1 %v5078_v40 }
0x17d0   : > { %6762 = vmatmul.mubr.msk.f32.gmra.mrb[58].mxu1 %vm1748_vm2, %v7836_v46 }
0x17d1   : > { %v4809_v43 = vpop.permute.xlu1 %4808 }
0x1897   : > { %v6746_v12 = vpop.f32.mrb[52].mxu1 }
0x1898   : > { %v4895_v37 = vadd.f32 %v6746_v12, %v4799_v5  ;;  %v4889_v22 = vpop.f32.mrb[53].mxu1 }
0x1899   : > { %v4890_v19 = vadd.f32 %v4889_v22, %v4794_v31  ;;  %v5660_v22 = vld [vmem:[%s8390_s2] sm:$0xf]  ;;  %s8392_s2 = sld [smem:[#allocation29_spill]] }
0x189b   : > { %v7071_v16 = vpack.c.bf16 %v4895_v37, %v4890_v19  ;;  %v6749_v15 = vpop.f32.mrb[54].mxu1  ;;  %v5306_v19 = vpop.permute.xlu1 %5305 }
0x189c   : > { %v4905_v9 = vadd.f32 %v6749_v15, %v4809_v43  ;;  %v4899_v14 = vpop.f32.mrb[55].mxu1 }
0x189d   : > { %v4900_v1 = vadd.f32 %v4899_v14, %v4804_v10  ;;  %7072 = vmatprep.subr.bf16.mxu0 %v7071_v16  ;;  %v5295_v10 = vld [vmem:[%s7528_s24 + $0x30] sm:$0xff] }
0x189e   : > { %7074 = vmatpush3.bf16.msra.mxu0 %v7071_v16 }
0x189f   : > { %v7075_v25 = vpack.c.bf16 %v4905_v9, %v4900_v1  ;;  %v6760_v17 = vpop.f32.mrb[56].mxu1  ;;  %v5311_v15 = vpop.permute.xlu1 %5310 }
0x18a0   : > { %v4974_v27 = vpop.f32.mrb[57].mxu1 }
0x18a1   : > { %7076 = vmatprep.subr.bf16.mxu0 %v7075_v25 }
0x18a2   : > { %7078 = vmatpush3.bf16.msra.mxu0 %v7075_v25 }
0x18a3   : > { %v6763_v30 = vpop.f32.mrb[58].mxu1  ;;  %7079 = vmatprep.subr.bf16.mxu0 %v7252_v29  ;;  %v5316_v36 = vpop.permute.xlu1 %5315 }
0x18a4   : > { %v4984_v35 = vpop.f32.mrb[59].mxu1 }
0x18a5   : > { %6773 = vmatmul.mubr.msk.f32.vlgmr.msra.gmra.mrb[40].mxu0 %vm1748_vm2, %v7824_v53 }
0x18a6   : > { %6775 = vmatprep.mubr.msk.f32.mxu0 %vm1748_vm2, %v7829_v54 }
0x18a9   : > { %6776 = vmatmul.mubr.msk.f32.gmra.mrb[42].mxu0 %vm1748_vm2, %v7836_v46 }
0x18aa   : > { %6802 = vmatprep.mubr.msk.f32.mxu0 %vm7254_vm1, %v7253_v41 }
0x1978   : > { %v6774_v7 = vpop.f32.mrb[40].mxu0 }
0x1979   : > { %v5059_v44 = vpop.f32.mrb[41].mxu0 }
0x197a   : > { %6780 = vmatprep.mubr.msk.f32.mxu1 %vm1885_vm6, %v5059_v44 }
0x197b   : > { %6781 = vmatmul.mubr.msk.f32.vlgmr.msra.gmra.mrb[60].mxu1 %vm1885_vm6, %v6774_v7 }
0x197c   : > { %v6777_v53 = vpop.f32.mrb[42].mxu0  ;;  %6787 = vmatpush3.msra.mxu1 %v5078_v40 }
0x197d   : > { %v5069_v54 = vpop.f32.mrb[43].mxu0  ;;  %7085 = vmatprep.subr.bf16.mxu1 %v7252_v29 }
0x197e   : > { %6783 = vmatprep.mubr.msk.f32.mxu1 %vm1885_vm6, %v5069_v54 }
0x197f   : > { %6784 = vmatmul.mubr.msk.f32.gmra.mrb[62].mxu1 %vm1885_vm6, %v6777_v53 }
0x1980   : > { %6788 = vmatprep.mubr.msk.f32.mxu1 %vm1885_vm6, %v4974_v27 }
0x1983   : > { %6789 = vmatmul.mubr.msk.f32.vlgmr.msra.gmra.mrb[60].mxu1 %vm1885_vm6, %v6760_v17 }
0x1984   : > { %7087 = vmatpush3.bf16.msra.mxu1 %v7760_v20  ;;  %6791 = vmatprep.mubr.msk.f32.mxu1 %vm1885_vm6, %v4984_v35  ;;  %v6143_v20 = vld [vmem:[%s8389_s1] ss:$0 sm:$0xff]  ;;  %v5321_v35 = vpop.permute.xlu0 %5320  ;;  %s8391_s1 = sld [smem:[#allocation27_spill]] }
0x1985   : > { %7088 = vmatprep.subr.bf16.mxu1 %v7252_v29 }
0x1987   : > { %6792 = vmatmul.mubr.msk.f32.gmra.mrb[62].mxu1 %vm1885_vm6, %v6763_v30 }
0x1988   : > { %7090 = vmatpush3.bf16.msra.mxu1 %v7767_v32  ;;  %6837 = vmatprep.mubr.msk.f32.mxu1 %vm7254_vm1, %v7253_v41 }
0x1989   : > { %7091 = vmatprep.subr.bf16.mxu1 %v7252_v29 }
0x198c   : > { %7093 = vmatpush3.bf16.msra.mxu1 %v7771_v58 }
0x198d   : > { %6835 = vmatprep.subr.mxu1 %v7253_v41 }
0x1990   : > { %6836 = vmatpush3.msra.mxu1 %v7773_v63 }
0x1991   : > { %6838 = vmatmul.mubr.msk.f32.vlgmr.msra.gmra.mrb[64].mxu1 %vm1641_vm0, %v7634_v18  ;;  %6893 = vmatprep.subr.mxu1 %v7253_v41 }
0x1992   : > { %6840 = vmatprep.mubr.msk.f32.mxu1 %vm7254_vm1, %v7253_v41  ;;  %6894 = vmatpush3.msk.msra.mxu1 %vm2495_vm7, %v5660_v22 }
0x1995   : > { %6841 = vmatmul.mubr.msk.f32.gmra.mrb[66].mxu1 %vm1641_vm0, %v7642_v21 }
0x1996   : > { %6843 = vmatprep.mubr.msk.f32.mxu1 %vm7254_vm1, %v7253_v41 }
0x1999   : > { %6844 = vmatmul.mubr.msk.f32.gmra.mrb[68].mxu1 %vm1641_vm0, %v7650_v0 }
0x199a   : > { %6846 = vmatprep.mubr.msk.f32.mxu1 %vm7254_vm1, %v7253_v41 }
0x199d   : > { %6847 = vmatmul.mubr.msk.f32.gmra.mrb[70].mxu1 %vm1641_vm0, %v7658_v2 }
0x199e   : > { %6849 = vmatprep.mubr.msk.f32.mxu1 %vm7254_vm1, %v7253_v41 }
0x19a1   : > { %6850 = vmatmul.mubr.msk.f32.gmra.mrb[72].mxu1 %vm1641_vm0, %v7666_v3 }
0x19a2   : > { %6852 = vmatprep.mubr.msk.f32.mxu1 %vm7254_vm1, %v7253_v41 }
0x19a5   : > { %6853 = vmatmul.mubr.msk.f32.gmra.mrb[74].mxu1 %vm1641_vm0, %v7674_v8 }
0x19a6   : > { %6855 = vmatprep.mubr.msk.f32.mxu1 %vm7254_vm1, %v7253_v41 }
0x19a9   : > { %6856 = vmatmul.mubr.msk.f32.gmra.mrb[76].mxu1 %vm1641_vm0, %v7682_v11 }
0x19aa   : > { %6895 = vmatprep.mubr.msk.f32.mxu1 %vm7254_vm1, %v7253_v41 }
0x1a56   : > { %v6790_v32 = vpop.f32.mrb[60].mxu1 }
0x1a57   : > { %v5282_v58 = vadd.f32 %v6790_v32, %v6143_v20  ;;  %v5255_v63 = vpop.f32.mrb[61].mxu1 }
0x1a58   : > { %v5281_v46 = vadd.f32 %v6143_v20, %v5255_v63  ;;  %v5326_v63 = vpop.permute.xlu1 %5325 }
0x1a59   : > { %v5286_v48 = vmax.f32 %v5282_v58, 0.0  ;;  %v5331_v58 = vpop.permute.xlu0 %5330 }
0x1a5a   : > { %v5285_v24 = vmax.f32 %v5281_v46, 0.0  ;;  %v6793_v26 = vpop.f32.mrb[62].mxu1 }
0x1a5b   : > { %v5284_v50 = vadd.f32 %v6793_v26, %v6143_v20  ;;  %v5265_v59 = vpop.f32.mrb[63].mxu1 }
0x1a5c   : > { %v7080_v60 = vpack.c.bf16 %v5286_v48, %v5285_v24  ;;  %v5283_v33 = vadd.f32 %v6143_v20, %v5265_v59 }
0x1a5d   : > { %v5288_v42 = vmax.f32 %v5284_v50, 0.0 }
0x1a5e   : > { %v5287_v4 = vmax.f32 %v5283_v33, 0.0  ;;  %7081 = vmatpush3.bf16.msra.mxu0 %v7080_v60  ;;  %v5336_v33 = vpop.permute.xlu1 %5335 }
0x1a5f   : > { %7082 = vmatprep.subr.bf16.mxu0 %v7252_v29 }
0x1a60   : > { %v7083_v49 = vpack.c.bf16 %v5288_v42, %v5287_v4  ;;  %v5659_v4 = vld [vmem:[%s8391_s1] sm:$0xf]  ;;  %s8393_s1 = sshll.u32 %s8395_s0, 3 }
0x1a61   : > { %s8275_s3 = scalar_lea.vmem %s7538_s6, %s8393_s1 }
0x1a62   : > { %7084 = vmatpush3.bf16.msra.mxu0 %v7083_v49 }
0x1a63   : > { %7094 = vmatprep.subr.bf16.mxu0 %v7252_v29 }
0x1a64   : > { %v8149_v28 = vpop.f32.mrb[64].mxu1 }
0x1a65   : > { %v6839_v23 = vpop.f32.mrb[65].mxu1  ;;  %6803 = vmatmul.mubr.msk.f32.vlgmr.msra.gmra.mrb[44].mxu0 %vm1748_vm2, %v5289_v38 }
0x1a66   : > { %6805 = vmatprep.mubr.msk.f32.mxu0 %vm7254_vm1, %v7253_v41 }
0x1a68   : > { %v8155_v6 = vpop.f32.mrb[66].mxu1 }
0x1a69   : > { %v6842_v34 = vpop.f32.mrb[67].mxu1  ;;  %6806 = vmatmul.mubr.msk.f32.gmra.mrb[46].mxu0 %vm1748_vm2, %v5290_v39 }
0x1a6a   : > { %6808 = vmatprep.mubr.msk.f32.mxu0 %vm7254_vm1, %v7253_v41 }
0x1a6c   : > { %v8161_v47 = vpop.f32.mrb[68].mxu1 }
0x1a6d   : > { %v6845_v62 = vpop.f32.mrb[69].mxu1  ;;  %6809 = vmatmul.mubr.msk.f32.gmra.mrb[48].mxu0 %vm1748_vm2, %v5291_v52 }
0x1a6e   : > { %6811 = vmatprep.mubr.msk.f32.mxu0 %vm7254_vm1, %v7253_v41 }
0x1a70   : > { %v8167_v57 = vpop.f32.mrb[70].mxu1 }
0x1a71   : > { %v6848_v13 = vpop.f32.mrb[71].mxu1  ;;  %6812 = vmatmul.mubr.msk.f32.gmra.mrb[50].mxu0 %vm1748_vm2, %v5292_v45 }
0x1a72   : > { %6814 = vmatprep.mubr.msk.f32.mxu0 %vm7254_vm1, %v7253_v41 }
0x1a74   : > { %v8173_v51 = vpop.f32.mrb[72].mxu1 }
0x1a75   : > { %v6851_v55 = vpop.f32.mrb[73].mxu1  ;;  %6815 = vmatmul.mubr.msk.f32.gmra.mrb[52].mxu0 %vm1748_vm2, %v5293_v56 }
0x1a76   : > { %6817 = vmatprep.mubr.msk.f32.mxu0 %vm7254_vm1, %v7253_v41 }
0x1a78   : > { %v8179_v31 = vpop.f32.mrb[74].mxu1 }
0x1a79   : > { %v6854_v5 = vpop.f32.mrb[75].mxu1  ;;  %6818 = vmatmul.mubr.msk.f32.gmra.mrb[54].mxu0 %vm1748_vm2, %v5294_v61 }
0x1a7a   : > { %6820 = vmatprep.mubr.msk.f32.mxu0 %vm7254_vm1, %v7253_v41 }
0x1a7c   : > { %v8185_v12 = vpop.f32.mrb[76].mxu1 }
0x1a7d   : > { %v6857_v37 = vpop.f32.mrb[77].mxu1  ;;  %6821 = vmatmul.mubr.msk.f32.gmra.mrb[56].mxu0 %vm1748_vm2, %v5295_v10 }
0x1a7e   : > { %6872 = vmatprep.mubr.msk.f32.mxu0 %vm7254_vm1, %v7253_v41 }
0x1b38   : > { %v5425_v43 = vpop.f32.mrb[44].mxu0 }
0x1b39   : > { %v6804_v16 = vpop.f32.mrb[45].mxu0  ;;  %v5426_v14 = vadd.f32 %v5425_v43, %v5306_v19 }
0x1b3c   : > { %v5430_v9 = vpop.f32.mrb[46].mxu0 }
0x1b3d   : > { %v5431_v1 = vadd.f32 %v5430_v9, %v5311_v15  ;;  %v6807_v25 = vpop.f32.mrb[47].mxu0 }
0x1b3f   : > { %v7095_v17 = vpack.c.bf16 %v5431_v1, %v5426_v14 }
0x1b40   : > { %v5435_v27 = vpop.f32.mrb[48].mxu0 }
0x1b41   : > { %v6810_v30 = vpop.f32.mrb[49].mxu0  ;;  %7096 = vmatpush3.bf16.msra.mxu0 %v7095_v17  ;;  %v5436_v7 = vadd.f32 %v5435_v27, %v5316_v36 }
0x1b42   : > { %7097 = vmatprep.subr.bf16.mxu0 %v7252_v29 }
0x1b44   : > { %v5440_v40 = vpop.f32.mrb[50].mxu0 }
0x1b45   : > { %v5441_v44 = vadd.f32 %v5440_v40, %v5321_v35  ;;  %v6813_v53 = vpop.f32.mrb[51].mxu0 }
0x1b47   : > { %v7098_v54 = vpack.c.bf16 %v5441_v44, %v5436_v7 }
0x1b48   : > { %v5445_v20 = vpop.f32.mrb[52].mxu0 }
0x1b49   : > { %v6816_v32 = vpop.f32.mrb[53].mxu0  ;;  %7099 = vmatpush3.bf16.msra.mxu0 %v7098_v54  ;;  %v5446_v48 = vadd.f32 %v5445_v20, %v5326_v63 }
0x1b4a   : > { %7100 = vmatprep.subr.bf16.mxu0 %v7252_v29 }
0x1b4c   : > { %v5450_v46 = vpop.f32.mrb[54].mxu0 }
0x1b4d   : > { %v5451_v24 = vadd.f32 %v5450_v46, %v5331_v58  ;;  %v6819_v26 = vpop.f32.mrb[55].mxu0 }
0x1b4f   : > { %v7101_v50 = vpack.c.bf16 %v5451_v24, %v5446_v48 }
0x1b50   : > { %v5455_v59 = vpop.f32.mrb[56].mxu0 }
0x1b51   : > { %7102 = vmatpush3.bf16.msra.mxu0 %v7101_v50  ;;  %v6822_v60 = vpop.f32.mrb[57].mxu0  ;;  %v5456_v42 = vadd.f32 %v5455_v59, %v5336_v33 }
0x1b52   : > { %6870 = vmatprep.subr.mxu0 %v7253_v41 }
0x1b55   : > { %6871 = vmatpush3.msra.mxu0 %v5456_v42 }
0x1b56   : > { %6873 = vmatmul.mubr.msk.f32.vlgmr.msra.gmra.mrb[58].mxu0 %vm1641_vm0, %v7634_v18  ;;  %6916 = vmatprep.subr.mxu0 %v7253_v41 }
0x1b57   : > { %6875 = vmatprep.mubr.msk.f32.mxu0 %vm7254_vm1, %v7253_v41  ;;  %6917 = vmatpush3.msk.msra.mxu0 %vm2495_vm7, %v5659_v4 }
0x1b5a   : > { %6876 = vmatmul.mubr.msk.f32.gmra.mrb[60].mxu0 %vm1641_vm0, %v7642_v21 }
0x1b5b   : > { %6878 = vmatprep.mubr.msk.f32.mxu0 %vm7254_vm1, %v7253_v41 }
0x1b5e   : > { %6879 = vmatmul.mubr.msk.f32.gmra.mrb[62].mxu0 %vm1641_vm0, %v7650_v0 }
0x1b5f   : > { %6881 = vmatprep.mubr.msk.f32.mxu0 %vm7254_vm1, %v7253_v41 }
0x1b62   : > { %6882 = vmatmul.mubr.msk.f32.gmra.mrb[64].mxu0 %vm1641_vm0, %v7658_v2 }
0x1b63   : > { %6884 = vmatprep.mubr.msk.f32.mxu0 %vm7254_vm1, %v7253_v41 }
0x1b66   : > { %6885 = vmatmul.mubr.msk.f32.gmra.mrb[66].mxu0 %vm1641_vm0, %v7666_v3 }
0x1b67   : > { %6887 = vmatprep.mubr.msk.f32.mxu0 %vm7254_vm1, %v7253_v41 }
0x1b6a   : > { %6888 = vmatmul.mubr.msk.f32.gmra.mrb[68].mxu0 %vm1641_vm0, %v7674_v8 }
0x1b6b   : > { %6890 = vmatprep.mubr.msk.f32.mxu0 %vm7254_vm1, %v7253_v41 }
0x1b6e   : > { %6891 = vmatmul.mubr.msk.f32.gmra.mrb[70].mxu0 %vm1641_vm0, %v7682_v11 }
0x1b6f   : > { %6918 = vmatprep.mubr.msk.f32.mxu0 %vm7254_vm1, %v7253_v41 }
0x1b72   : > { %6919 = vmatmul.mubr.msk.f32.vlgmr.msra.gmra.mrb[72].mxu0 %vm2482_vm8, %v8149_v28 }
0x1b73   : > { %6921 = vmatprep.mubr.msk.f32.mxu0 %vm7254_vm1, %v7253_v41 }
0x1b76   : > { %6922 = vmatmul.mubr.msk.f32.gmra.mrb[74].mxu0 %vm2482_vm8, %v8155_v6 }
0x1b77   : > { %6924 = vmatprep.mubr.msk.f32.mxu0 %vm7254_vm1, %v7253_v41 }
0x1b7a   : > { %6925 = vmatmul.mubr.msk.f32.gmra.mrb[76].mxu0 %vm2482_vm8, %v8161_v47 }
0x1b7b   : > { %6927 = vmatprep.mubr.msk.f32.mxu0 %vm7254_vm1, %v7253_v41 }
0x1b7e   : > { %6928 = vmatmul.mubr.msk.f32.gmra.mrb[78].mxu0 %vm2482_vm8, %v8167_v57 }
0x1b7f   : > { %6930 = vmatprep.mubr.msk.f32.mxu0 %vm7254_vm1, %v7253_v41 }
0x1b82   : > { %6931 = vmatmul.mubr.msk.f32.gmra.mrb[80].mxu0 %vm2482_vm8, %v8173_v51 }
0x1b83   : > { %6933 = vmatprep.mubr.msk.f32.mxu0 %vm7254_vm1, %v7253_v41 }
0x1b86   : > { %6934 = vmatmul.mubr.msk.f32.gmra.mrb[82].mxu0 %vm2482_vm8, %v8179_v31 }
0x1b87   : > { %6936 = vmatprep.mubr.msk.f32.mxu0 %vm7254_vm1, %v7253_v41 }
0x1b8a   : > { %6937 = vmatmul.mubr.msk.f32.gmra.mrb[84].mxu0 %vm2482_vm8, %v8185_v12  ;;  %v6181_v12 = vld [vmem:[%s8392_s2] ss:$0 sm:$0xff] }
0x1c29   : > { %v5625_v29 = vpop.f32.mrb[58].mxu0 }
0x1c2a   : > { %v6874_v18 = vpop.f32.mrb[59].mxu0  ;;  %6896 = vmatmul.mubr.msk.f32.vlgmr.msra.gmra.mrb[78].mxu1 %vm2482_vm8, %v5625_v29 }
0x1c2b   : > { %6898 = vmatprep.mubr.msk.f32.mxu1 %vm7254_vm1, %v7253_v41 }
0x1c2d   : > { %v5630_v21 = vpop.f32.mrb[60].mxu0 }
0x1c2e   : > { %v6877_v0 = vpop.f32.mrb[61].mxu0  ;;  %6899 = vmatmul.mubr.msk.f32.gmra.mrb[80].mxu1 %vm2482_vm8, %v5630_v21 }
0x1c2f   : > { %6901 = vmatprep.mubr.msk.f32.mxu1 %vm7254_vm1, %v7253_v41 }
0x1c31   : > { %v5635_v2 = vpop.f32.mrb[62].mxu0 }
0x1c32   : > { %v6880_v3 = vpop.f32.mrb[63].mxu0  ;;  %6902 = vmatmul.mubr.msk.f32.gmra.mrb[82].mxu1 %vm2482_vm8, %v5635_v2 }
0x1c33   : > { %6904 = vmatprep.mubr.msk.f32.mxu1 %vm7254_vm1, %v7253_v41 }
0x1c35   : > { %v5640_v8 = vpop.f32.mrb[64].mxu0 }
0x1c36   : > { %v6883_v11 = vpop.f32.mrb[65].mxu0  ;;  %6905 = vmatmul.mubr.msk.f32.gmra.mrb[84].mxu1 %vm2482_vm8, %v5640_v8 }
0x1c37   : > { %6907 = vmatprep.mubr.msk.f32.mxu1 %vm7254_vm1, %v7253_v41 }
0x1c39   : > { %v5645_v49 = vpop.f32.mrb[66].mxu0 }
0x1c3a   : > { %v6886_v38 = vpop.f32.mrb[67].mxu0  ;;  %6908 = vmatmul.mubr.msk.f32.gmra.mrb[86].mxu1 %vm2482_vm8, %v5645_v49 }
0x1c3b   : > { %6910 = vmatprep.mubr.msk.f32.mxu1 %vm7254_vm1, %v7253_v41 }
0x1c3d   : > { %v5650_v28 = vpop.f32.mrb[68].mxu0 }
0x1c3e   : > { %v6889_v23 = vpop.f32.mrb[69].mxu0  ;;  %6911 = vmatmul.mubr.msk.f32.gmra.mrb[88].mxu1 %vm2482_vm8, %v5650_v28 }
0x1c3f   : > { %6913 = vmatprep.mubr.msk.f32.mxu1 %vm7254_vm1, %v7253_v41 }
0x1c41   : > { %v5655_v39 = vpop.f32.mrb[70].mxu0 }
0x1c42   : > { %v6892_v6 = vpop.f32.mrb[71].mxu0  ;;  %6914 = vmatmul.mubr.msk.f32.gmra.mrb[90].mxu1 %vm2482_vm8, %v5655_v39 }
0x1c45   : > { %v5875_v34 = vpop.f32.mrb[72].mxu0 }
0x1c46   : > { %v6920_v52 = vpop.f32.mrb[73].mxu0 }
0x1c49   : > { %v5880_v47 = vpop.f32.mrb[74].mxu0 }
0x1c4a   : > { %v6923_v62 = vpop.f32.mrb[75].mxu0 }
0x1c4d   : > { %v5885_v45 = vpop.f32.mrb[76].mxu0 }
0x1c4e   : > { %v6926_v57 = vpop.f32.mrb[77].mxu0 }
0x1c51   : > { %v5890_v13 = vpop.f32.mrb[78].mxu0 }
0x1c52   : > { %v6929_v56 = vpop.f32.mrb[79].mxu0 }
0x1c55   : > { %v5895_v51 = vpop.f32.mrb[80].mxu0 }
0x1c56   : > { %v6932_v55 = vpop.f32.mrb[81].mxu0 }
0x1c59   : > { %v5900_v61 = vpop.f32.mrb[82].mxu0 }
0x1c5a   : > { %v6935_v31 = vpop.f32.mrb[83].mxu0 }
0x1c5d   : > { %v5905_v41 = vpop.f32.mrb[84].mxu0 }
0x1c5e   : > { %v6938_v5 = vpop.f32.mrb[85].mxu0 }
0x1cfd   : > { %v5751_v10 = vpop.f32.mrb[78].mxu1 }
0x1cfe   : > { %v5876_v37 = vadd.f32 %v5875_v34, %v5751_v10  ;;  %v6897_v22 = vpop.f32.mrb[79].mxu1 }
0x1d00   : > { %v5916_v19 = vadd.f32 %v6181_v12, %v5876_v37 }
0x1d01   : > { %v5756_v43 = vpop.f32.mrb[80].mxu1 }
0x1d02   : > { %5924 = vst.msk [vmem:[%s8275_s3] sm:$0xff] %vm5923_vm11, %v5916_v19  ;;  %v5881_v16 = vadd.f32 %v5880_v47, %v5756_v43  ;;  %v6900_v15 = vpop.f32.mrb[81].mxu1 }
0x1d04   : > { %v5917_v9 = vadd.f32 %v6181_v12, %v5881_v16 }
0x1d05   : > { %v5761_v14 = vpop.f32.mrb[82].mxu1 }
0x1d06   : > { %5925 = vst.msk [vmem:[%s8275_s3 + $0x8] sm:$0xff] %vm5923_vm11, %v5917_v9  ;;  %v5886_v1 = vadd.f32 %v5885_v45, %v5761_v14  ;;  %v6903_v25 = vpop.f32.mrb[83].mxu1 }
0x1d08   : > { %v5918_v17 = vadd.f32 %v6181_v12, %v5886_v1 }
0x1d09   : > { %v5766_v27 = vpop.f32.mrb[84].mxu1 }
0x1d0a   : > { %5926 = vst.msk [vmem:[%s8275_s3 + $0x10] sm:$0xff] %vm5923_vm11, %v5918_v17  ;;  %v5891_v30 = vadd.f32 %v5890_v13, %v5766_v27  ;;  %v6906_v35 = vpop.f32.mrb[85].mxu1 }
0x1d0c   : > { %v5919_v36 = vadd.f32 %v6181_v12, %v5891_v30 }
0x1d0d   : > { %v5771_v40 = vpop.f32.mrb[86].mxu1 }
0x1d0e   : > { %5927 = vst.msk [vmem:[%s8275_s3 + $0x18] sm:$0xff] %vm5923_vm11, %v5919_v36  ;;  %v5896_v7 = vadd.f32 %v5895_v51, %v5771_v40  ;;  %v6909_v44 = vpop.f32.mrb[87].mxu1 }
0x1d10   : > { %v5920_v53 = vadd.f32 %v6181_v12, %v5896_v7 }
0x1d11   : > { %v5776_v54 = vpop.f32.mrb[88].mxu1 }
0x1d12   : > { %5928 = vst.msk [vmem:[%s8275_s3 + $0x20] sm:$0xff] %vm5923_vm11, %v5920_v53  ;;  %v5901_v20 = vadd.f32 %v5900_v61, %v5776_v54  ;;  %v6912_v32 = vpop.f32.mrb[89].mxu1 }
0x1d14   : > { %v5921_v58 = vadd.f32 %v6181_v12, %v5901_v20 }
0x1d15   : > { %v5781_v63 = vpop.f32.mrb[90].mxu1 }
0x1d16   : > { %5929 = vst.msk [vmem:[%s8275_s3 + $0x28] sm:$0xff] %vm5923_vm11, %v5921_v58  ;;  %v5906_v46 = vadd.f32 %v5905_v41, %v5781_v63  ;;  %v6915_v48 = vpop.f32.mrb[91].mxu1 }
0x1d18   : > { %v5922_v24 = vadd.f32 %v6181_v12, %v5906_v46 }
0x1d1a   : > { %5930 = vst.msk [vmem:[%s8275_s3 + $0x30] sm:$0xff] %vm5923_vm11, %v5922_v24 }
0x1d1b PF: > { %s121_s22 = sadd.s32 1, %s7194_s22  }
0x1d1c   : > { %p118_p4 = scmp.ge.s32.totalorder %s121_s22, 4  }
0x1d1e   :  { %120 = sbr.rel (!%p118_p4) target bundleno = 107 (0x6b), region = 325 }

</bundles_post_ra>
